<compile_context>
chip_gen: v7x
topology: tpu7x:2x2x1
jax: 0.10.0
libtpu: 0.0.40
codegen_flags: <defaults>
</compile_context>

<pallas_src>
import math

import jax
import jax.numpy as jnp
from jax.experimental import pallas as pl
from jax.experimental.pallas import tpu as pltpu

# ---- module-consistent hyper-parameters ----
HIDDEN = 32                    # hidden_size
INTER = 64                     # intermediate_size
PACK = 4                       # tokens packed per 128-lane vreg row
LANES = HIDDEN * PACK          # 128
INTER_P = INTER * PACK         # 256
LN_EPS = 1e-12
DEFAULT_TOKENS_PER_STEP = 4096  # 1024 packed rows per grid step
_INV_SQRT2 = 1.0 / math.sqrt(2.0)


def _round_up(n, m):
    return ((n + m - 1) // m) * m


def ffn_kernel(x_ref, w1_ref, b1_ref, w2_ref, pk_ref, mred_ref, out_ref):
    """One (rows, 128) slab of 4-token-packed activations."""
    x = x_ref[...].astype(jnp.float32)                                    # (TM, 128)

    # Linear 1 (block-diagonal, 4 tokens per row) + exact-erf GELU (torch default).
    y = jnp.dot(x.astype(w1_ref.dtype), w1_ref[...],
                preferred_element_type=jnp.float32) + b1_ref[...]         # (TM, 256)
    y = 0.5 * y * (1.0 + jax.lax.erf(y * _INV_SQRT2))

    # Linear 2 (block-diagonal); its bias lives in row 0 of the packed params.
    y = jnp.dot(y.astype(w2_ref.dtype), w2_ref[...],
                preferred_element_type=jnp.float32) + pk_ref[0:1, :]      # (TM, 128)

    # Dropout -> identity (eval).  Residual + LayerNorm over each 32-lane group.
    # Group mean / biased variance via the block-diag averaging matrix (exact f32).
    z = x + y
    mu = jnp.dot(z, mred_ref[...], preferred_element_type=jnp.float32,
                 precision=jax.lax.Precision.HIGHEST)                     # per-group mean, broadcast
    c = z - mu
    var = jnp.dot(c * c, mred_ref[...], preferred_element_type=jnp.float32,
                  precision=jax.lax.Precision.HIGHEST)                    # per-group var, broadcast
    out_ref[...] = (c * jax.lax.rsqrt(var + LN_EPS)
                    * pk_ref[1:2, :] + pk_ref[2:3, :]).astype(out_ref.dtype)


def feed_forward_network(x, params, tokens_per_step=DEFAULT_TOKENS_PER_STEP,
                         matmul_dtype=jnp.float32):
    """x: (..., HIDDEN) float32; params: dict of w1, bf1, w2, bf2, gamma, beta.

    matmul_dtype=jnp.bfloat16 is the fast path on v6e/v7x (Linear operands only;
    residual + LayerNorm stay f32).
    """
    orig_shape = x.shape
    h = orig_shape[-1]
    assert h == HIDDEN
    xf = x.reshape(-1, h)
    n_tokens = xf.shape[0]

    # --- 4-token lane packing (zero-copy reshape; pad ragged token counts) ---
    n_tok_p = _round_up(n_tokens, PACK)
    if n_tok_p != n_tokens:
        xf = jnp.pad(xf, ((0, n_tok_p - n_tokens), (0, 0)))
    xp = xf.reshape(n_tok_p // PACK, LANES)
    n_rows = xp.shape[0]

    # Token tile (in packed rows); multiple of 8 sublanes, clamped for small inputs.
    rows_per_step = max(8, min(tokens_per_step // PACK, _round_up(n_rows, 8)))
    rows_per_step = _round_up(rows_per_step, 8)
    n_rows_p = _round_up(n_rows, rows_per_step)
    if n_rows_p != n_rows:
        xp = jnp.pad(xp, ((0, n_rows_p - n_rows), (0, 0)))

    # --- block-diagonal replicated weights + lane-tiled biases / LN params ---
    eye = jnp.eye(PACK, dtype=jnp.float32)
    w1bd = jnp.kron(eye, params["w1"]).astype(matmul_dtype)           # (128, 256)
    w2bd = jnp.kron(eye, params["w2"]).astype(matmul_dtype)           # (256, 128)
    b1t = jnp.tile(params["bf1"], (1, PACK))                          # (1, 256)
    pack = jnp.concatenate([jnp.tile(params["bf2"], (1, PACK)),
                            jnp.tile(params["gamma"], (1, PACK)),
                            jnp.tile(params["beta"], (1, PACK))], axis=0)   # (3, 128)
    # Block-diag ones/HIDDEN matrix -> per-32-lane-group mean, broadcast in-group.
    mred = jnp.kron(eye, jnp.full((HIDDEN, HIDDEN), 1.0 / HIDDEN, jnp.float32))  # (128, 128)

    out = pl.pallas_call(
        ffn_kernel,
        out_shape=jax.ShapeDtypeStruct((n_rows_p, LANES), x.dtype),
        grid_spec=pltpu.PrefetchScalarGridSpec(
            num_scalar_prefetch=0,
            grid=(n_rows_p // rows_per_step,),
            in_specs=[
                pl.BlockSpec((rows_per_step, LANES), lambda i: (i, 0)),  # activations: streamed
                pl.BlockSpec((LANES, INTER_P),       lambda i: (0, 0)),  # W1 block-diag: resident
                pl.BlockSpec((1, INTER_P),           lambda i: (0, 0)),  # b1 tiled: resident
                pl.BlockSpec((INTER_P, LANES),       lambda i: (0, 0)),  # W2 block-diag: resident
                pl.BlockSpec((3, LANES),             lambda i: (0, 0)),  # bf2 / gamma / beta tiled
                pl.BlockSpec((LANES, LANES),         lambda i: (0, 0)),  # LN group-mean matrix
            ],
            out_specs=pl.BlockSpec((rows_per_step, LANES), lambda i: (i, 0)),
        ),
        compiler_params=pltpu.CompilerParams(
            dimension_semantics=("parallel",)),   # shards token blocks across TCs (v7x)
    )(xp, w1bd, b1t, w2bd, pack, mred)

    # Undo row padding, packing, and token padding.
    out = out[:n_rows].reshape(n_tok_p, h)[:n_tokens]
    return out.reshape(orig_shape)


# ------------------------- pure-JAX reference & init -------------------------

def _reference(x, p):
    y = x @ p["w1"] + p["bf1"]
    y = 0.5 * y * (1.0 + jax.lax.erf(y * _INV_SQRT2))
    y = y @ p["w2"] + p["bf2"]
    z = x + y
    mu = jnp.mean(z, axis=-1, keepdims=True)
    var = jnp.mean((z - mu) ** 2, axis=-1, keepdims=True)
    return (z - mu) * jax.lax.rsqrt(var + LN_EPS) * p["gamma"] + p["beta"]


def _init_params(key):
    def linear(k, fan_in, fan_out):
        kw, kb = jax.random.split(k)
        bound = 1.0 / math.sqrt(fan_in)
        w = jax.random.uniform(kw, (fan_in, fan_out), jnp.float32, -bound, bound)
        b = jax.random.uniform(kb, (1, fan_out), jnp.float32, -bound, bound)
        return w, b

    k1, k2 = jax.random.split(key)
    w1, bf1 = linear(k1, HIDDEN, INTER)
    w2, bf2 = linear(k2, INTER, HIDDEN)
    return dict(
        w1=w1, bf1=bf1, w2=w2, bf2=bf2,
        gamma=jnp.ones((1, HIDDEN), jnp.float32),
        beta=jnp.zeros((1, HIDDEN), jnp.float32),
    )


if __name__ == "__main__":
    key = jax.random.PRNGKey(0)
    kx, kp = jax.random.split(key)

    # batch=2, seq=512, hidden=32 -> 1024 tokens (256 packed rows)
    x = jax.random.normal(kx, (2, 512, HIDDEN), jnp.float32)
    params = _init_params(kp)
    ref = _reference(x.reshape(-1, HIDDEN), params).reshape(x.shape)

    # Default large-tile path (single grid step here).
    out = jax.block_until_ready(feed_forward_network(x, params))
    assert out.shape == x.shape
    err = float(jnp.max(jnp.abs(out - ref)))
    assert jnp.allclose(out, ref, atol=1e-4, rtol=1e-4), err

    # Multi-step streamed grid (4 steps of 256 tokens) to exercise pipelining.
    out_g = jax.block_until_ready(feed_forward_network(x, params, tokens_per_step=256))
    assert jnp.allclose(out_g, ref, atol=1e-4, rtol=1e-4), float(jnp.max(jnp.abs(out_g - ref)))

    # Ragged token count (exercises pad / unpad path).
    xr = jax.random.normal(kp, (3, 7, HIDDEN), jnp.float32)
    ref_r = _reference(xr.reshape(-1, HIDDEN), params).reshape(xr.shape)
    out_r = jax.block_until_ready(feed_forward_network(xr, params))
    assert jnp.allclose(out_r, ref_r, atol=1e-4, rtol=1e-4)

    # bf16 matmul operands (v6e/v7x fast path); looser tolerance vs the f32 reference.
    out_bf = jax.block_until_ready(
        feed_forward_network(x, params, matmul_dtype=jnp.bfloat16))
    assert jnp.allclose(out_bf, ref, atol=5e-2, rtol=5e-2), float(jnp.max(jnp.abs(out_bf - ref)))

    # TODO(synk): training-mode dropout would need an in-kernel PRNG mask path.
    print("KERNEL_OK")
</pallas_src>

<mosaic_0001>
module attributes {stable_mosaic.version = 11 : i64} {
  func.func @ffn_kernel(%arg0: i32, %arg1: memref<256x128xf32, #tpu.memory_space<vmem>>, %arg2: memref<128x256xf32, #tpu.memory_space<vmem>>, %arg3: memref<1x256xf32, #tpu.memory_space<vmem>>, %arg4: memref<256x128xf32, #tpu.memory_space<vmem>>, %arg5: memref<3x128xf32, #tpu.memory_space<vmem>>, %arg6: memref<128x128xf32, #tpu.memory_space<vmem>>, %arg7: memref<256x128xf32, #tpu.memory_space<vmem>>) attributes {dimension_semantics = [#tpu.dimension_semantics<parallel>], iteration_bounds = array<i64: 1>, scalar_prefetch = 0 : i64, scratch_operands = 0 : i64, tpu.core_type = #tpu.core_type<tc>, window_params = [{transform_indices = @transform_0, window_bounds = array<i64: 256, 128>}, {pipeline_mode = #tpu.pipeline_mode<synchronous>, transform_indices = @transform_1, window_bounds = array<i64: 128, 256>}, {pipeline_mode = #tpu.pipeline_mode<synchronous>, transform_indices = @transform_2, window_bounds = array<i64: 1, 256>}, {pipeline_mode = #tpu.pipeline_mode<synchronous>, transform_indices = @transform_3, window_bounds = array<i64: 256, 128>}, {pipeline_mode = #tpu.pipeline_mode<synchronous>, transform_indices = @transform_4, window_bounds = array<i64: 3, 128>}, {pipeline_mode = #tpu.pipeline_mode<synchronous>, transform_indices = @transform_5, window_bounds = array<i64: 128, 128>}, {transform_indices = @transform_6, window_bounds = array<i64: 256, 128>}]} {
    %c0 = arith.constant 0 : index
    %c0_0 = arith.constant 0 : index
    %0 = vector.load %arg1[%c0, %c0_0] : memref<256x128xf32, #tpu.memory_space<vmem>>, vector<256x128xf32>
    %c0_1 = arith.constant 0 : index
    %c0_2 = arith.constant 0 : index
    %1 = vector.load %arg2[%c0_1, %c0_2] : memref<128x256xf32, #tpu.memory_space<vmem>>, vector<128x256xf32>
    %cst = arith.constant dense<0.000000e+00> : vector<256x256xf32>
    %2 = tpu.matmul %0, %1, %cst {dimension_numbers = #tpu.dot_dimension_numbers<[1], [0], [0], [1], [0, 0, 1, 1], [], []>} : vector<256x128xf32>, vector<128x256xf32>, vector<256x256xf32> -> vector<256x256xf32>
    %c0_3 = arith.constant 0 : index
    %c0_4 = arith.constant 0 : index
    %3 = vector.load %arg3[%c0_3, %c0_4] : memref<1x256xf32, #tpu.memory_space<vmem>>, vector<1x256xf32>
    %4 = vector.broadcast %3 : vector<1x256xf32> to vector<256x256xf32>
    %5 = arith.addf %2, %4 : vector<256x256xf32>
    %cst_5 = arith.constant 5.000000e-01 : f32
    %6 = vector.broadcast %cst_5 : f32 to vector<256x256xf32>
    %7 = arith.mulf %6, %5 : vector<256x256xf32>
    %cst_6 = arith.constant 0.707106769 : f32
    %8 = vector.broadcast %cst_6 : f32 to vector<256x256xf32>
    %9 = arith.mulf %5, %8 : vector<256x256xf32>
    %10 = math.erf %9 : vector<256x256xf32>
    %cst_7 = arith.constant 1.000000e+00 : f32
    %11 = vector.broadcast %cst_7 : f32 to vector<256x256xf32>
    %12 = arith.addf %11, %10 : vector<256x256xf32>
    %13 = arith.mulf %7, %12 : vector<256x256xf32>
    %c0_8 = arith.constant 0 : index
    %c0_9 = arith.constant 0 : index
    %14 = vector.load %arg4[%c0_8, %c0_9] : memref<256x128xf32, #tpu.memory_space<vmem>>, vector<256x128xf32>
    %cst_10 = arith.constant dense<0.000000e+00> : vector<256x128xf32>
    %15 = tpu.matmul %13, %14, %cst_10 {dimension_numbers = #tpu.dot_dimension_numbers<[1], [0], [0], [1], [0, 0, 1, 1], [], []>} : vector<256x256xf32>, vector<256x128xf32>, vector<256x128xf32> -> vector<256x128xf32>
    %c0_11 = arith.constant 0 : index
    %c0_12 = arith.constant 0 : index
    %16 = vector.load %arg5[%c0_11, %c0_12] : memref<3x128xf32, #tpu.memory_space<vmem>>, vector<1x128xf32>
    %17 = vector.broadcast %16 : vector<1x128xf32> to vector<256x128xf32>
    %18 = arith.addf %15, %17 : vector<256x128xf32>
    %19 = arith.addf %0, %18 : vector<256x128xf32>
    %c0_13 = arith.constant 0 : index
    %c0_14 = arith.constant 0 : index
    %20 = vector.load %arg6[%c0_13, %c0_14] : memref<128x128xf32, #tpu.memory_space<vmem>>, vector<128x128xf32>
    %cst_15 = arith.constant dense<0.000000e+00> : vector<256x128xf32>
    %21 = tpu.matmul %19, %20, %cst_15 {dimension_numbers = #tpu.dot_dimension_numbers<[1], [0], [0], [1], [0, 0, 1, 1], [], []>, precision = #tpu.contract_precision<fp32>} : vector<256x128xf32>, vector<128x128xf32>, vector<256x128xf32> -> vector<256x128xf32>
    %22 = arith.subf %19, %21 : vector<256x128xf32>
    %23 = arith.mulf %22, %22 : vector<256x128xf32>
    %c0_16 = arith.constant 0 : index
    %c0_17 = arith.constant 0 : index
    %24 = vector.load %arg6[%c0_16, %c0_17] : memref<128x128xf32, #tpu.memory_space<vmem>>, vector<128x128xf32>
    %cst_18 = arith.constant dense<0.000000e+00> : vector<256x128xf32>
    %25 = tpu.matmul %23, %24, %cst_18 {dimension_numbers = #tpu.dot_dimension_numbers<[1], [0], [0], [1], [0, 0, 1, 1], [], []>, precision = #tpu.contract_precision<fp32>} : vector<256x128xf32>, vector<128x128xf32>, vector<256x128xf32> -> vector<256x128xf32>
    %cst_19 = arith.constant 9.99999996E-13 : f32
    %26 = vector.broadcast %cst_19 : f32 to vector<256x128xf32>
    %27 = arith.addf %25, %26 : vector<256x128xf32>
    %28 = math.rsqrt %27 : vector<256x128xf32>
    %29 = arith.mulf %22, %28 : vector<256x128xf32>
    %c1 = arith.constant 1 : index
    %c0_20 = arith.constant 0 : index
    %30 = vector.load %arg5[%c1, %c0_20] : memref<3x128xf32, #tpu.memory_space<vmem>>, vector<1x128xf32>
    %31 = vector.broadcast %30 : vector<1x128xf32> to vector<256x128xf32>
    %32 = arith.mulf %29, %31 : vector<256x128xf32>
    %c2 = arith.constant 2 : index
    %c0_21 = arith.constant 0 : index
    %33 = vector.load %arg5[%c2, %c0_21] : memref<3x128xf32, #tpu.memory_space<vmem>>, vector<1x128xf32>
    %34 = vector.broadcast %33 : vector<1x128xf32> to vector<256x128xf32>
    %35 = arith.addf %32, %34 : vector<256x128xf32>
    %c0_22 = arith.constant 0 : index
    %c0_23 = arith.constant 0 : index
    %36 = vector.load %arg7[%c0_22, %c0_23] : memref<256x128xf32, #tpu.memory_space<vmem>>, vector<256x128xf32>
    tpu.vector_store %arg7[%c0_22, %c0_23], %35 {strides = array<i32>} : memref<256x128xf32, #tpu.memory_space<vmem>>, vector<256x128xf32>,
    return
  }
  func.func @transform_0(%arg0: i32) -> (i32, i32) {
    %c0_i32 = arith.constant 0 : i32
    %c0_i32_0 = arith.constant 0 : i32
    return %arg0, %c0_i32 : i32, i32
  }
  func.func @transform_1(%arg0: i32) -> (i32, i32) {
    %c0_i32 = arith.constant 0 : i32
    %c0_i32_0 = arith.constant 0 : i32
    %c0_i32_1 = arith.constant 0 : i32
    return %c0_i32, %c0_i32_0 : i32, i32
  }
  func.func @transform_2(%arg0: i32) -> (i32, i32) {
    %c0_i32 = arith.constant 0 : i32
    %c0_i32_0 = arith.constant 0 : i32
    %c0_i32_1 = arith.constant 0 : i32
    return %c0_i32, %c0_i32_0 : i32, i32
  }
  func.func @transform_3(%arg0: i32) -> (i32, i32) {
    %c0_i32 = arith.constant 0 : i32
    %c0_i32_0 = arith.constant 0 : i32
    %c0_i32_1 = arith.constant 0 : i32
    return %c0_i32, %c0_i32_0 : i32, i32
  }
  func.func @transform_4(%arg0: i32) -> (i32, i32) {
    %c0_i32 = arith.constant 0 : i32
    %c0_i32_0 = arith.constant 0 : i32
    %c0_i32_1 = arith.constant 0 : i32
    return %c0_i32, %c0_i32_0 : i32, i32
  }
  func.func @transform_5(%arg0: i32) -> (i32, i32) {
    %c0_i32 = arith.constant 0 : i32
    %c0_i32_0 = arith.constant 0 : i32
    %c0_i32_1 = arith.constant 0 : i32
    return %c0_i32, %c0_i32_0 : i32, i32
  }
  func.func @transform_6(%arg0: i32) -> (i32, i32) {
    %c0_i32 = arith.constant 0 : i32
    %c0_i32_0 = arith.constant 0 : i32
    return %arg0, %c0_i32 : i32, i32
  }
}

</mosaic_0001>

<bundles_post_ra>
// kernel: tpu_custom_call.1
= control target key start
LH: loop header
LB: loop body
LE: loop exit
PB: predicated region body
PF: predicated region fallthrough
CT: control target
= control target key end

     0   :  { %11 = vsyncpa [#allocation3], 0  ;;  %s10382_s0 = inlined_call_operand.hbm [shape: f32[256,128], index: 0, kind: input, shape index: {}]   ;;  %s10383_s1 = inlined_call_operand.hbm [shape: f32[128,256], index: 1, kind: input, shape index: {}]   ;;  %s10384_s2 = inlined_call_operand.vmem [shape: f32[1,256], index: 2, kind: input, shape index: {}]   ;;  %s10385_s3 = inlined_call_operand.hbm [shape: f32[256,128], index: 3, kind: input, shape index: {}]   ;;  %s10386_s4 = inlined_call_operand.vmem [shape: f32[3,128], index: 4, kind: input, shape index: {}]   ;;  %s10387_s5 = inlined_call_operand.hbm [shape: f32[128,128], index: 5, kind: input, shape index: {}]   ;;  %s10388_s6 = inlined_call_operand.hbm [shape: f32[256,128], index: 6, kind: output, shape index: {}]  }
   0x1   :  { %12 = vsyncpa [#allocation6], 0 }
   0x2   :  { %13 = vsyncpa [#allocation9], 0 }
   0x3   :  { %14 = vsyncpa [#allocation4], 0  ;;  %s7975_s21 = smov [#allocation5]   ;;  %s7857_s25 = scalar_lea.hbm %s10383_s1, 4096 }
   0x4   :  { %s32_s22 = sshll.u32 %s7975_s21, 4  ;;  %p7858_p0 = scmp.ne.s32.totalorder %s10383_s1, %s7857_s25  ;;  %s33_s22 = int_to_ptr.vmem [resolvable:$true] %s32_s22 }
   0x5   :  { %p7861_p1 = scmp.lt.u32.totalorder %s7857_s25, %s10383_s1 }
   0x7   :  { %p7863_p2 = pnand %p7861_p1, %p7858_p0 }
   0x9   :  { %7866 = shalt.err (!%p7863_p2)
}
   0xa   :  { %s7867_s30 = scalar_lea.vmem %s33_s22, 4096  ;;  %p7872_p4 = scmp.lt.s32.totalorder %s33_s22, %s33_s22 }
   0xb   :  { %p7868_p3 = scmp.ne.s32.totalorder %s33_s22, %s7867_s30  ;;  %p7873_p5 = scmp.lt.s32.totalorder %s7867_s30, %s7867_s30 }
   0xd   :  { %p7874_p6 = por %p7873_p5, %p7872_p4 }
   0xf   :  { %p7875_p7 = pnand %p7874_p6, %p7868_p3 }
  0x11   :  { %7878 = shalt.err (!%p7875_p7)
}
  0x12   :  { %s7976_s7 = smov 256   ;;  %s7977_s8 = smov 16  }
  0x13   :  { %38 = dma.hbm_to_vmem [thread:$0]  %s10383_s1, 4096, %s33_s22, [#allocation6], %s7976_s7, %s7976_s7, %s7977_s8  }
  0x14   :  { %s7978_s11 = smov [#allocation2]   ;;  %s7879_s15 = scalar_lea.hbm %s10382_s0, 4096 }
  0x15   :  { %s20_s12 = sshll.u32 %s7978_s11, 4  ;;  %p7880_p8 = scmp.ne.s32.totalorder %s10382_s0, %s7879_s15  ;;  %s21_s12 = int_to_ptr.vmem [resolvable:$true] %s20_s12 }
  0x16   :  { %p7883_p9 = scmp.lt.u32.totalorder %s7879_s15, %s10382_s0 }
  0x18   :  { %p7885_p10 = pnand %p7883_p9, %p7880_p8 }
  0x1a   :  { %7888 = shalt.err (!%p7885_p10)
}
  0x1b   :  { %s7889_s20 = scalar_lea.vmem %s21_s12, 4096  ;;  %p7894_p12 = scmp.lt.s32.totalorder %s21_s12, %s21_s12 }
  0x1c   :  { %p7890_p11 = scmp.ne.s32.totalorder %s21_s12, %s7889_s20  ;;  %p7895_p13 = scmp.lt.s32.totalorder %s7889_s20, %s7889_s20 }
  0x1e   :  { %p7896_p0 = por %p7895_p13, %p7894_p12 }
  0x20   :  { %p7897_p1 = pnand %p7896_p0, %p7890_p11 }
  0x22   :  { %7900 = shalt.err (!%p7897_p1)
}
  0x23   :  { %s7979_s1 = smov 128   ;;  %s7980_s21 = smov 8  }
  0x24   :  { %26 = dma.hbm_to_vmem [thread:$0]  %s10382_s0, 4096, %s21_s12, [#allocation3], %s7979_s1, %s7979_s1, %s7980_s21  }
  0x25   :  { %s7981_s24 = smov [#allocation7]   ;;  %s7982_s26 = smov [#allocation8]  }
  0x26   :  { %s46_s25 = sshll.u32 %s7981_s24, 4  ;;  %s60_s27 = sshll.u32 %s7982_s26, 4  ;;  %s47_s25 = int_to_ptr.vmem [resolvable:$true] %s46_s25  ;;  %s8048_s27 = int_to_ptr.vmem [resolvable:$true] %s60_s27 }
  0x27   :  { %s7901_s30 = scalar_lea.hbm %s10385_s3, 4096 }
  0x28   :  { %p7902_p2 = scmp.ne.s32.totalorder %s10385_s3, %s7901_s30  ;;  %p7905_p3 = scmp.lt.u32.totalorder %s7901_s30, %s10385_s3 }
  0x2a   :  { %p7907_p4 = pnand %p7905_p3, %p7902_p2 }
  0x2c   :  { %7910 = shalt.err (!%p7907_p4)
}
  0x2d   :  { %s7911_s0 = scalar_lea.vmem %s47_s25, 4096  ;;  %p7916_p6 = scmp.lt.s32.totalorder %s47_s25, %s47_s25 }
  0x2e   :  { %p7912_p5 = scmp.ne.s32.totalorder %s47_s25, %s7911_s0  ;;  %p7917_p7 = scmp.lt.s32.totalorder %s7911_s0, %s7911_s0 }
  0x30   :  { %p7918_p8 = por %p7917_p7, %p7916_p6 }
  0x32   :  { %p7919_p9 = pnand %p7918_p8, %p7912_p5 }
  0x34   :  { %7922 = shalt.err (!%p7919_p9)
}
  0x35   :  { %52 = dma.hbm_to_vmem [thread:$0]  %s10385_s3, 4096, %s47_s25, [#allocation6], %s7979_s1, %s7979_s1, %s7980_s21  }
  0x36   :  { %s7923_s15 = scalar_lea.hbm %s10387_s5, 2048 }
  0x37   :  { %p7924_p10 = scmp.ne.s32.totalorder %s10387_s5, %s7923_s15  ;;  %p7927_p11 = scmp.lt.u32.totalorder %s7923_s15, %s10387_s5 }
  0x39   :  { %p7929_p12 = pnand %p7927_p11, %p7924_p10 }
  0x3b   :  { %7932 = shalt.err (!%p7929_p12)
}
  0x3c   :  { %s7933_s20 = scalar_lea.vmem %s8048_s27, 2048  ;;  %p7938_p0 = scmp.lt.s32.totalorder %s8048_s27, %s8048_s27 }
  0x3d   :  { %p7934_p13 = scmp.ne.s32.totalorder %s8048_s27, %s7933_s20  ;;  %p7939_p1 = scmp.lt.s32.totalorder %s7933_s20, %s7933_s20 }
  0x3f   :  { %p7940_p2 = por %p7939_p1, %p7938_p0 }
  0x41   :  { %p7941_p3 = pnand %p7940_p2, %p7934_p13 }
  0x43   :  { %7944 = shalt.err (!%p7941_p3)
}
  0x44   :  { %66 = dma.hbm_to_vmem [thread:$0]  %s10387_s5, 2048, %s8048_s27, [#allocation9], %s7979_s1, %s7979_s1, %s7980_s21  }
  0x45   :  { %7967 = dma.done.wait [#allocation3], 4096  }
  0x46   :  { %7968 = vsyncadd [#allocation3], 4294963200 }
  0x47   :  { %7969 = dma.done.wait [#allocation6], 8192  }
  0x48   :  { %7970 = vsyncadd [#allocation6], 4294959104 }
  0x49   :  { %7971 = dma.done.wait [#allocation9], 2048  }
  0x4a   :  { %7972 = vsyncadd [#allocation9], 4294965248  ;;  %v7983_v0 = vmov 0.0   ;;  %v112_v1 = vld [vmem:[#allocation5 + $0x8] sm:$0xff]  ;;  %v114_v2 = vld [vmem:[#allocation5 + $0x18] sm:$0xff]  ;;  %v7984_v53 = vmov 0.0|0.0  }
  0x4b   :  { %219 = vmatprep.mubr.f32.mxu0 %v7983_v0  ;;  %v111_v3 = vld [vmem:[#allocation5] sm:$0xff]  ;;  %v6782_v4 = vpack.c.bf16 %v114_v2, %v112_v1  ;;  %v113_v5 = vld [vmem:[#allocation5 + $0x10] sm:$0xff]  ;;  %v116_v6 = vld [vmem:[#allocation5 + $0x28] sm:$0xff]  ;;  %6814 = vmatprep.subr.bf16.mxu1 %v7984_v53 }
  0x4c   :  { %v118_v7 = vld [vmem:[#allocation5 + $0x38] sm:$0xff]  ;;  %v6784_v8 = vpack.c.bf16 %v113_v5, %v111_v3  ;;  %v115_v10 = vld [vmem:[#allocation5 + $0x20] sm:$0xff]  ;;  %v117_v11 = vld [vmem:[#allocation5 + $0x30] sm:$0xff] }
  0x4d   :  { %v6786_v9 = vpack.c.bf16 %v118_v7, %v116_v6  ;;  %v120_v12 = vld [vmem:[#allocation5 + $0x48] sm:$0xff]  ;;  %6783 = vmatprep.subr.bf16.mxu0 %v6782_v4  ;;  %v122_v13 = vld [vmem:[#allocation5 + $0x58] sm:$0xff]  ;;  %v6788_v14 = vpack.c.bf16 %v117_v11, %v115_v10  ;;  %v119_v16 = vld [vmem:[#allocation5 + $0x40] sm:$0xff] }
  0x4e   :  { %6785 = vmatpush1.bf16.msra.mxu0 %v6784_v8  ;;  %v6790_v15 = vpack.c.bf16 %v122_v13, %v120_v12  ;;  %v121_v17 = vld [vmem:[#allocation5 + $0x50] sm:$0xff]  ;;  %v124_v18 = vld [vmem:[#allocation5 + $0x68] sm:$0xff]  ;;  %v126_v19 = vld [vmem:[#allocation5 + $0x78] sm:$0xff] }
  0x4f   :  { %6787 = vmatprep.subr.bf16.mxu0 %v6786_v9  ;;  %v6792_v20 = vpack.c.bf16 %v121_v17, %v119_v16  ;;  %v6794_v21 = vpack.c.bf16 %v126_v19, %v124_v18  ;;  %v123_v22 = vld [vmem:[#allocation5 + $0x60] sm:$0xff]  ;;  %v125_v23 = vld [vmem:[#allocation5 + $0x70] sm:$0xff]  ;;  %v128_v24 = vld [vmem:[#allocation5 + $0x88] sm:$0xff] }
  0x50   :  { %v130_v25 = vld [vmem:[#allocation5 + $0x98] sm:$0xff]  ;;  %v6796_v26 = vpack.c.bf16 %v125_v23, %v123_v22  ;;  %v127_v28 = vld [vmem:[#allocation5 + $0x80] sm:$0xff]  ;;  %v129_v29 = vld [vmem:[#allocation5 + $0x90] sm:$0xff] }
  0x51   :  { %v6798_v27 = vpack.c.bf16 %v130_v25, %v128_v24  ;;  %v132_v30 = vld [vmem:[#allocation5 + $0xa8] sm:$0xff]  ;;  %v134_v31 = vld [vmem:[#allocation5 + $0xb8] sm:$0xff]  ;;  %v6800_v32 = vpack.c.bf16 %v129_v29, %v127_v28  ;;  %v131_v34 = vld [vmem:[#allocation5 + $0xa0] sm:$0xff] }
  0x52   :  { %6789 = vmatpush1.bf16.msra.mxu0 %v6788_v14  ;;  %v6802_v33 = vpack.c.bf16 %v134_v31, %v132_v30  ;;  %v133_v35 = vld [vmem:[#allocation5 + $0xb0] sm:$0xff]  ;;  %v136_v36 = vld [vmem:[#allocation5 + $0xc8] sm:$0xff]  ;;  %v138_v37 = vld [vmem:[#allocation5 + $0xd8] sm:$0xff] }
  0x53   :  { %6791 = vmatprep.subr.bf16.mxu0 %v6790_v15  ;;  %v6804_v38 = vpack.c.bf16 %v133_v35, %v131_v34  ;;  %v6806_v39 = vpack.c.bf16 %v138_v37, %v136_v36  ;;  %v135_v40 = vld [vmem:[#allocation5 + $0xc0] sm:$0xff]  ;;  %v137_v41 = vld [vmem:[#allocation5 + $0xd0] sm:$0xff]  ;;  %v140_v42 = vld [vmem:[#allocation5 + $0xe8] sm:$0xff] }
  0x54   :  { %v142_v43 = vld [vmem:[#allocation5 + $0xf8] sm:$0xff]  ;;  %v6808_v44 = vpack.c.bf16 %v137_v41, %v135_v40  ;;  %v139_v46 = vld [vmem:[#allocation5 + $0xe0] sm:$0xff]  ;;  %v141_v47 = vld [vmem:[#allocation5 + $0xf0] sm:$0xff] }
  0x55   :  { %v6810_v45 = vpack.c.bf16 %v142_v43, %v140_v42  ;;  %v6812_v48 = vpack.c.bf16 %v141_v47, %v139_v46  ;;  %v732_v49 = vld [vmem:[#allocation7] sm:$0xff]  ;;  %v733_v50 = vld [vmem:[#allocation7 + $0x8] sm:$0xff]  ;;  %v734_v51 = vld [vmem:[#allocation7 + $0x10] sm:$0xff] }
  0x56   :  { %6793 = vmatpush1.bf16.msra.mxu0 %v6792_v20  ;;  %v79_v52 = vld [vmem:[#allocation2] sm:$0xff]  ;;  %v6815_v54 = vpack.c.bf16 %v733_v50, %v732_v49  ;;  %v735_v55 = vld [vmem:[#allocation7 + $0x18] sm:$0xff]  ;;  %v737_v58 = vld [vmem:[#allocation7 + $0x28] sm:$0xff] }
  0x57   :  { %6795 = vmatprep.subr.bf16.mxu0 %v6794_v21  ;;  %v6818_v56 = vpack.c.bf16 %v735_v55, %v734_v51  ;;  %v736_v57 = vld [vmem:[#allocation7 + $0x20] sm:$0xff]  ;;  %v80_v59 = vld [vmem:[#allocation2 + $0x8] sm:$0xff]  ;;  %v738_v61 = vld [vmem:[#allocation7 + $0x30] sm:$0xff] }
  0x58   :  { %6816 = vmatpush1.bf16.msra.mxu1 %v6815_v54  ;;  %v6821_v60 = vpack.c.bf16 %v737_v58, %v736_v57  ;;  %v739_v62 = vld [vmem:[#allocation7 + $0x38] sm:$0xff]  ;;  %v81_v63 = vld [vmem:[#allocation2 + $0x10] sm:$0xff]  ;;  %v740_v2 = vld [vmem:[#allocation7 + $0x40] sm:$0xff] }
  0x59   :  { %6817 = vmatprep.subr.bf16.mxu1 %v7984_v53  ;;  %v6824_v1 = vpack.c.bf16 %v739_v62, %v738_v61  ;;  %v741_v3 = vld [vmem:[#allocation7 + $0x48] sm:$0xff]  ;;  %v82_v4 = vld [vmem:[#allocation2 + $0x18] sm:$0xff]  ;;  %v742_v6 = vld [vmem:[#allocation7 + $0x50] sm:$0xff] }
  0x5a   :  { %6797 = vmatpush1.bf16.msra.mxu0 %v6796_v26  ;;  %v6827_v5 = vpack.c.bf16 %v741_v3, %v740_v2  ;;  %v743_v7 = vld [vmem:[#allocation7 + $0x58] sm:$0xff]  ;;  %v83_v8 = vld [vmem:[#allocation2 + $0x20] sm:$0xff]  ;;  %v745_v11 = vld [vmem:[#allocation7 + $0x68] sm:$0xff] }
  0x5b   :  { %6799 = vmatprep.subr.bf16.mxu0 %v6798_v27  ;;  %v6830_v9 = vpack.c.bf16 %v743_v7, %v742_v6  ;;  %v744_v10 = vld [vmem:[#allocation7 + $0x60] sm:$0xff]  ;;  %v84_v12 = vld [vmem:[#allocation2 + $0x28] sm:$0xff]  ;;  %v746_v14 = vld [vmem:[#allocation7 + $0x70] sm:$0xff] }
  0x5c   :  { %6819 = vmatpush1.bf16.msra.mxu1 %v6818_v56  ;;  %v6833_v13 = vpack.c.bf16 %v745_v11, %v744_v10  ;;  %v747_v15 = vld [vmem:[#allocation7 + $0x78] sm:$0xff]  ;;  %v85_v16 = vld [vmem:[#allocation2 + $0x30] sm:$0xff]  ;;  %v748_v18 = vld [vmem:[#allocation7 + $0x80] sm:$0xff] }
  0x5d   :  { %6820 = vmatprep.subr.bf16.mxu1 %v7984_v53  ;;  %v6836_v17 = vpack.c.bf16 %v747_v15, %v746_v14  ;;  %v749_v19 = vld [vmem:[#allocation7 + $0x88] sm:$0xff]  ;;  %v86_v20 = vld [vmem:[#allocation2 + $0x38] sm:$0xff]  ;;  %v750_v22 = vld [vmem:[#allocation7 + $0x90] sm:$0xff] }
  0x5e   :  { %6801 = vmatpush1.bf16.msra.mxu0 %v6800_v32  ;;  %v6839_v21 = vpack.c.bf16 %v749_v19, %v748_v18  ;;  %v751_v23 = vld [vmem:[#allocation7 + $0x98] sm:$0xff]  ;;  %v87_v24 = vld [vmem:[#allocation2 + $0x40] sm:$0xff]  ;;  %v753_v27 = vld [vmem:[#allocation7 + $0xa8] sm:$0xff] }
  0x5f   :  { %6803 = vmatprep.subr.bf16.mxu0 %v6802_v33  ;;  %v6842_v25 = vpack.c.bf16 %v751_v23, %v750_v22  ;;  %v752_v26 = vld [vmem:[#allocation7 + $0xa0] sm:$0xff]  ;;  %v88_v28 = vld [vmem:[#allocation2 + $0x48] sm:$0xff]  ;;  %v89_v30 = vld [vmem:[#allocation2 + $0x50] sm:$0xff] }
  0x60   :  { %6822 = vmatpush1.bf16.msra.mxu1 %v6821_v60  ;;  %v6845_v29 = vpack.c.bf16 %v753_v27, %v752_v26  ;;  %v90_v31 = vld [vmem:[#allocation2 + $0x58] sm:$0xff]  ;;  %v91_v32 = vld [vmem:[#allocation2 + $0x60] sm:$0xff]  ;;  %v92_v33 = vld [vmem:[#allocation2 + $0x68] sm:$0xff] }
  0x61   :  { %6823 = vmatprep.subr.bf16.mxu1 %v7984_v53  ;;  %v93_v34 = vld [vmem:[#allocation2 + $0x70] sm:$0xff]  ;;  %v94_v35 = vld [vmem:[#allocation2 + $0x78] sm:$0xff]  ;;  %v95_v36 = vld [vmem:[#allocation2 + $0x80] sm:$0xff] }
  0x62   :  { %6805 = vmatpush1.bf16.msra.mxu0 %v6804_v38  ;;  %v96_v37 = vld [vmem:[#allocation2 + $0x88] sm:$0xff]  ;;  %v97_v38 = vld [vmem:[#allocation2 + $0x90] sm:$0xff]  ;;  %v99_v40 = vld [vmem:[#allocation2 + $0xa0] sm:$0xff] }
  0x63   :  { %6807 = vmatprep.subr.bf16.mxu0 %v6806_v39  ;;  %v98_v39 = vld [vmem:[#allocation2 + $0x98] sm:$0xff]  ;;  %v100_v41 = vld [vmem:[#allocation2 + $0xa8] sm:$0xff]  ;;  %v754_v42 = vld [vmem:[#allocation7 + $0xb0] sm:$0xff] }
  0x64   :  { %6825 = vmatpush1.bf16.msra.mxu1 %v6824_v1  ;;  %v755_v43 = vld [vmem:[#allocation7 + $0xb8] sm:$0xff]  ;;  %v756_v46 = vld [vmem:[#allocation7 + $0xc0] sm:$0xff]  ;;  %v757_v47 = vld [vmem:[#allocation7 + $0xc8] sm:$0xff] }
  0x65   :  { %6826 = vmatprep.subr.bf16.mxu1 %v7984_v53  ;;  %v102_v49 = vld [vmem:[#allocation2 + $0xb8] sm:$0xff]  ;;  %v758_v50 = vld [vmem:[#allocation7 + $0xd0] sm:$0xff]  ;;  %v103_v54 = vld [vmem:[#allocation2 + $0xc0] sm:$0xff] }
  0x66   :  { %6809 = vmatpush1.bf16.msra.mxu0 %v6808_v44  ;;  %v6848_v44 = vpack.c.bf16 %v755_v43, %v754_v42  ;;  %v759_v51 = vld [vmem:[#allocation7 + $0xd8] sm:$0xff]  ;;  %v760_v55 = vld [vmem:[#allocation7 + $0xe0] sm:$0xff]  ;;  %v761_v56 = vld [vmem:[#allocation7 + $0xe8] sm:$0xff] }
  0x67   :  { %6811 = vmatprep.subr.bf16.mxu0 %v6810_v45  ;;  %v101_v45 = vld [vmem:[#allocation2 + $0xb0] sm:$0xff]  ;;  %v6857_v57 = vpack.c.bf16 %v761_v56, %v760_v55  ;;  %v104_v58 = vld [vmem:[#allocation2 + $0xc8] sm:$0xff]  ;;  %v763_v60 = vld [vmem:[#allocation7 + $0xf8] sm:$0xff] }
  0x68   :  { %6828 = vmatpush1.bf16.msra.mxu1 %v6827_v5  ;;  %v105_v62 = vld [vmem:[#allocation2 + $0xd0] sm:$0xff]  ;;  %v107_v1 = vld [vmem:[#allocation2 + $0xe0] sm:$0xff]  ;;  %v110_v3 = vld [vmem:[#allocation2 + $0xf8] sm:$0xff] }
  0x69   :  { %6829 = vmatprep.subr.bf16.mxu1 %v7984_v53  ;;  %v109_v2 = vld [vmem:[#allocation2 + $0xf0] sm:$0xff]  ;;  %v143_v7 = vld [vmem:[%s10384_s2] sm:$0x3] }
  0x6a   :  { %6813 = vmatpush1.bf16.msra.mxu0 %v6812_v48  ;;  %v6851_v48 = vpack.c.bf16 %v757_v47, %v756_v46  ;;  %v8167_v46 = vld [vmem:[#allocation8 + $0x10] sm:$0xff] }
  0x6c   :  { %6831 = vmatpush1.bf16.msra.mxu1 %v6830_v9 }
  0x6d   :  { %220 = vmatmul.mubr.f32.vlgmr.msra.gmra.mrb[0].mxu0 %v79_v52  ;;  %6832 = vmatprep.subr.bf16.mxu1 %v7984_v53  ;;  %v6854_v52 = vpack.c.bf16 %v759_v51, %v758_v50 }
  0x6e   :  { %225 = vmatprep.mubr.f32.mxu0 %v7983_v0 }
  0x70   :  { %6834 = vmatpush1.bf16.msra.mxu1 %v6833_v13 }
  0x71   :  { %226 = vmatmul.mubr.f32.gmra.mrb[2].mxu0 %v80_v59  ;;  %6835 = vmatprep.subr.bf16.mxu1 %v7984_v53  ;;  %v762_v59 = vld [vmem:[#allocation7 + $0xf0] sm:$0xff] }
  0x72   :  { %231 = vmatprep.mubr.f32.mxu0 %v7983_v0  ;;  %v6860_v61 = vpack.c.bf16 %v763_v60, %v762_v59  ;;  %v8173_v59 = vld [vmem:[#allocation8 + $0x18] sm:$0xff] }
  0x74   :  { %6837 = vmatpush1.bf16.msra.mxu1 %v6836_v17 }
  0x75   :  { %232 = vmatmul.mubr.f32.gmra.mrb[4].mxu0 %v81_v63  ;;  %6838 = vmatprep.subr.bf16.mxu1 %v7984_v53  ;;  %v106_v63 = vld [vmem:[#allocation2 + $0xd8] sm:$0xff] }
  0x76   :  { %237 = vmatprep.mubr.f32.mxu0 %v7983_v0 }
  0x78   :  { %6840 = vmatpush1.bf16.msra.mxu1 %v6839_v21 }
  0x79   :  { %238 = vmatmul.mubr.f32.gmra.mrb[6].mxu0 %v82_v4  ;;  %6841 = vmatprep.subr.bf16.mxu1 %v7984_v53  ;;  %v145_v4 = vlaneseq }
  0x7a   :  { %243 = vmatprep.mubr.f32.mxu0 %v7983_v0 }
  0x7b   :  { %v146_v5 = vshrl.u32 %v145_v4, 7 }
  0x7c   :  { %6843 = vmatpush1.bf16.msra.mxu1 %v6842_v25 }
  0x7d   :  { %244 = vmatmul.mubr.f32.gmra.mrb[8].mxu0 %v83_v8  ;;  %6844 = vmatprep.subr.bf16.mxu1 %v7984_v53  ;;  %v147_v6 = vsub.s32 0, %v146_v5  ;;  %v151_v8 = vsub.s32 1, %v146_v5 }
  0x7e   :  { %249 = vmatprep.mubr.f32.mxu0 %v7983_v0 }
  0x7f   :  { %v8136_v9 = vrot.slane %v143_v7, %v147_v6  ;;  %v8138_v10 = vrot.slane %v143_v7, %v151_v8  ;;  %v1052_v8 = vand.u32 4294901760, %v8173_v59 }
  0x80   :  { %6846 = vmatpush1.bf16.msra.mxu1 %v6845_v29 }
  0x81   :  { %250 = vmatmul.mubr.f32.gmra.mrb[10].mxu0 %v84_v12  ;;  %6847 = vmatprep.subr.bf16.mxu1 %v7984_v53 }
  0x82   :  { %255 = vmatprep.mubr.f32.mxu0 %v7983_v0 }
  0x84   :  { %6849 = vmatpush1.bf16.msra.mxu1 %v6848_v44  ;;  %v8163_v44 = vld [vmem:[#allocation8] sm:$0xff] }
  0x85   :  { %256 = vmatmul.mubr.f32.gmra.mrb[12].mxu0 %v85_v16  ;;  %6850 = vmatprep.subr.bf16.mxu1 %v7984_v53  ;;  %v1043_v51 = vand.u32 4294901760, %v8163_v44 }
  0x86   :  { %261 = vmatprep.mubr.f32.mxu0 %v7983_v0 }
  0x88   :  { %6852 = vmatpush1.bf16.msra.mxu1 %v6851_v48 }
  0x89   :  { %262 = vmatmul.mubr.f32.gmra.mrb[14].mxu0 %v86_v20  ;;  %6853 = vmatprep.subr.bf16.mxu1 %v7984_v53 }
  0x8a   :  { %267 = vmatprep.mubr.f32.mxu0 %v7983_v0 }
  0x8c   :  { %6855 = vmatpush1.bf16.msra.mxu1 %v6854_v52 }
  0x8d   :  { %268 = vmatmul.mubr.f32.gmra.mrb[16].mxu0 %v87_v24  ;;  %6856 = vmatprep.subr.bf16.mxu1 %v7984_v53 }
  0x8e   :  { %273 = vmatprep.mubr.f32.mxu0 %v7983_v0 }
  0x90   :  { %6858 = vmatpush1.bf16.msra.mxu1 %v6857_v57 }
  0x91   :  { %274 = vmatmul.mubr.f32.gmra.mrb[18].mxu0 %v88_v28  ;;  %6859 = vmatprep.subr.bf16.mxu1 %v7984_v53  ;;  %v108_v53 = vld [vmem:[#allocation2 + $0xe8] sm:$0xff] }
  0x92   :  { %279 = vmatprep.mubr.f32.mxu0 %v7983_v0 }
  0x94   :  { %6861 = vmatpush1.bf16.msra.mxu1 %v6860_v61 }
  0x95   :  { %280 = vmatmul.mubr.f32.gmra.mrb[20].mxu0 %v89_v30 }
  0x96   :  { %285 = vmatprep.mubr.f32.mxu0 %v7983_v0 }
  0x99   :  { %286 = vmatmul.mubr.f32.gmra.mrb[22].mxu0 %v90_v31 }
  0x9a   :  { %291 = vmatprep.mubr.f32.mxu0 %v7983_v0 }
  0x9d   :  { %292 = vmatmul.mubr.f32.gmra.mrb[24].mxu0 %v91_v32 }
  0x9e   :  { %297 = vmatprep.mubr.f32.mxu0 %v7983_v0 }
  0xa1   :  { %298 = vmatmul.mubr.f32.gmra.mrb[26].mxu0 %v92_v33 }
  0xa2   :  { %303 = vmatprep.mubr.f32.mxu0 %v7983_v0 }
  0xa5   :  { %304 = vmatmul.mubr.f32.gmra.mrb[28].mxu0 %v93_v34 }
  0xa6   :  { %309 = vmatprep.mubr.f32.mxu0 %v7983_v0 }
  0xa9   :  { %310 = vmatmul.mubr.f32.gmra.mrb[30].mxu0 %v94_v35 }
  0xaa   :  { %315 = vmatprep.mubr.f32.mxu0 %v7983_v0 }
  0xad   :  { %316 = vmatmul.mubr.f32.gmra.mrb[32].mxu0 %v95_v36 }
  0xae   :  { %321 = vmatprep.mubr.f32.mxu0 %v7983_v0 }
  0xb1   :  { %322 = vmatmul.mubr.f32.gmra.mrb[34].mxu0 %v96_v37 }
  0xb2   :  { %327 = vmatprep.mubr.f32.mxu0 %v7983_v0 }
  0xb5   :  { %328 = vmatmul.mubr.f32.gmra.mrb[36].mxu0 %v97_v38 }
  0xb6   :  { %333 = vmatprep.mubr.f32.mxu0 %v7983_v0 }
  0xb9   :  { %334 = vmatmul.mubr.f32.gmra.mrb[38].mxu0 %v98_v39 }
  0xba   :  { %339 = vmatprep.mubr.f32.mxu0 %v7983_v0 }
  0xbd   :  { %340 = vmatmul.mubr.f32.gmra.mrb[40].mxu0 %v99_v40 }
  0xbe   :  { %345 = vmatprep.mubr.f32.mxu0 %v7983_v0 }
  0xc1   :  { %346 = vmatmul.mubr.f32.gmra.mrb[42].mxu0 %v100_v41 }
  0xc2   :  { %351 = vmatprep.mubr.f32.mxu0 %v7983_v0 }
  0xc5   :  { %352 = vmatmul.mubr.f32.gmra.mrb[44].mxu0 %v101_v45  ;;  %v8165_v45 = vld [vmem:[#allocation8 + $0x8] sm:$0xff] }
  0xc6   :  { %357 = vmatprep.mubr.f32.mxu0 %v7983_v0 }
  0xc9   :  { %358 = vmatmul.mubr.f32.gmra.mrb[46].mxu0 %v102_v49 }
  0xca   :  { %363 = vmatprep.mubr.f32.mxu0 %v7983_v0 }
  0xcd   :  { %364 = vmatmul.mubr.f32.gmra.mrb[48].mxu0 %v103_v54 }
  0xce   :  { %369 = vmatprep.mubr.f32.mxu0 %v7983_v0 }
  0xd1   :  { %370 = vmatmul.mubr.f32.gmra.mrb[50].mxu0 %v104_v58  ;;  %v1046_v58 = vand.u32 4294901760, %v8165_v45  ;;  %v8567_v45 = vld [vmem:[%s10386_s4] ss:$0 sm:$0xff] }
  0xd2   :  { %375 = vmatprep.mubr.f32.mxu0 %v7983_v0 }
  0xd5   :  { %376 = vmatmul.mubr.f32.gmra.mrb[52].mxu0 %v105_v62 }
  0xd6   :  { %381 = vmatprep.mubr.f32.mxu0 %v7983_v0 }
  0xd9   :  { %382 = vmatmul.mubr.f32.gmra.mrb[54].mxu0 %v106_v63  ;;  %v1049_v63 = vand.u32 4294901760, %v8167_v46 }
  0xda   :  { %387 = vmatprep.mubr.f32.mxu0 %v7983_v0 }
  0xdd   :  { %388 = vmatmul.mubr.f32.gmra.mrb[56].mxu0 %v107_v1  ;;  %v8179_v1 = vld [vmem:[#allocation8 + $0x20] sm:$0xff] }
  0xde   :  { %393 = vmatprep.mubr.f32.mxu0 %v7983_v0 }
  0xe1   :  { %394 = vmatmul.mubr.f32.gmra.mrb[58].mxu0 %v108_v53 }
  0xe2   :  { %399 = vmatprep.mubr.f32.mxu0 %v7983_v0 }
  0xe5   :  { %400 = vmatmul.mubr.f32.gmra.mrb[60].mxu0 %v109_v2 }
  0xe6   :  { %405 = vmatprep.mubr.f32.mxu0 %v7983_v0 }
  0xe9   :  { %406 = vmatmul.mubr.f32.gmra.mrb[62].mxu0 %v110_v3  ;;  %v8188_v3 = vpack.c.bf16 %v1046_v58, %v1043_v51 }
  0xeb   :  { %6863 = vmatprep.subr.bf16.mxu0 %v8188_v3  ;;  %7246 = vmatprep.subr.bf16.mxu1 %v8188_v3 }
  0xec   :  { %6865 = vmatpush3.bf16.msra.mxu0 %v8188_v3 }
 0x140   :  { %v221_v11 = vpop.f32.mrb[0].mxu0 }
 0x141   :  { %v222_v12 = vadd.f32 %v221_v11, %v8136_v9  ;;  %v223_v13 = vpop.f32.mrb[1].mxu0  ;;  %v8192_v11 = vld [vmem:[#allocation8 + $0x28] sm:$0xff] }
 0x142   :  { %v224_v0 = vadd.f32 %v223_v13, %v8138_v10 }
 0x143   :  { %v476_v14 = vmul.f32 0.70710677, %v222_v12  ;;  %v412_v42 = vmul.f32 0.5, %v222_v12 }
 0x144   :  { %v477_v15 = vmul.f32 0.70710677, %v224_v0  ;;  %v227_v16 = vpop.f32.mrb[2].mxu0  ;;  %v413_v40 = vmul.f32 0.5, %v224_v0 }
 0x145   :  { %7625 = verf.f32 %v476_v14  ;;  %v228_v17 = vadd.f32 %v227_v16, %v8136_v9  ;;  %v229_v18 = vpop.f32.mrb[3].mxu0  ;;  %v1055_v16 = vand.u32 4294901760, %v8179_v1 }
 0x146   :  { %7627 = verf.f32 %v477_v15  ;;  %v230_v19 = vadd.f32 %v229_v18, %v8138_v10 }
 0x147   :  { %v478_v20 = vmul.f32 0.70710677, %v228_v17  ;;  %v414_v53 = vmul.f32 0.5, %v228_v17  ;;  %v8197_v17 = vld [vmem:[#allocation8 + $0x30] sm:$0xff] }
 0x148   :  { %v479_v21 = vmul.f32 0.70710677, %v230_v19  ;;  %v233_v22 = vpop.f32.mrb[4].mxu0  ;;  %v415_v48 = vmul.f32 0.5, %v230_v19 }
 0x149   :  { %7629 = verf.f32 %v478_v20  ;;  %v8145_v23 = vadd.f32 %v233_v22, %v8136_v9  ;;  %v235_v24 = vpop.f32.mrb[5].mxu0 }
 0x14a   :  { %7631 = verf.f32 %v479_v21  ;;  %v236_v25 = vadd.f32 %v235_v24, %v8138_v10  ;;  %v8208_v21 = vpack.c.bf16 %v1052_v8, %v1049_v63 }
 0x14b   :  { %v480_v26 = vmul.f32 0.70710677, %v8145_v23  ;;  %v416_v22 = vmul.f32 0.5, %v8145_v23 }
 0x14c   :  { %v481_v27 = vmul.f32 0.70710677, %v236_v25  ;;  %v239_v28 = vpop.f32.mrb[6].mxu0  ;;  %v417_v5 = vmul.f32 0.5, %v236_v25  ;;  %v1058_v25 = vand.u32 4294901760, %v8192_v11  ;;  %6867 = vmatprep.subr.bf16.mxu0 %v8208_v21 }
 0x14d   :  { %7633 = verf.f32 %v480_v26  ;;  %v8150_v29 = vadd.f32 %v239_v28, %v8136_v9  ;;  %v241_v30 = vpop.f32.mrb[7].mxu0  ;;  %v8215_v26 = vld [vmem:[#allocation8 + $0x38] sm:$0xff]  ;;  %6869 = vmatpush3.bf16.msra.mxu0 %v8208_v21 }
 0x14e   :  { %7635 = verf.f32 %v481_v27  ;;  %v8153_v31 = vadd.f32 %v241_v30, %v8138_v10 }
 0x14f   :  { %v7626_v32 = vpop.eup %7625  ;;  %v482_v33 = vmul.f32 0.70710677, %v8150_v29 }
 0x150   :  { %v7628_v34 = vpop.eup %7627  ;;  %v604_v35 = vadd.f32 1.0, %v7626_v32  ;;  %v483_v36 = vmul.f32 0.70710677, %v8153_v31  ;;  %v245_v37 = vpop.f32.mrb[8].mxu0  ;;  %v419_v28 = vmul.f32 0.5, %v8153_v31  ;;  %v8227_v31 = vpack.c.bf16 %v1058_v25, %v1055_v16 }
 0x151   :  { %7637 = verf.f32 %v482_v33  ;;  %v8158_v38 = vadd.f32 %v245_v37, %v8136_v9  ;;  %v247_v39 = vpop.f32.mrb[9].mxu0  ;;  %v605_v41 = vadd.f32 1.0, %v7628_v34  ;;  %v1061_v33 = vand.u32 4294901760, %v8197_v17 }
 0x152   :  { %7639 = verf.f32 %v483_v36  ;;  %v8161_v43 = vadd.f32 %v247_v39, %v8138_v10  ;;  %v668_v57 = vmul.f32 %v604_v35, %v412_v42  ;;  %v1064_v42 = vand.u32 4294901760, %v8215_v26  ;;  %6871 = vmatprep.subr.bf16.mxu0 %v8227_v31 }
 0x153   :  { %v7630_v47 = vpop.eup %7629  ;;  %v484_v49 = vmul.f32 0.70710677, %v8158_v38  ;;  %v669_v50 = vmul.f32 %v605_v41, %v413_v40  ;;  %6873 = vmatpush3.bf16.msra.mxu0 %v8227_v31 }
 0x154   :  { %v7632_v52 = vpop.eup %7631  ;;  %v606_v54 = vadd.f32 1.0, %v7630_v47  ;;  %v485_v55 = vmul.f32 0.70710677, %v8161_v43  ;;  %v251_v56 = vpop.f32.mrb[10].mxu0  ;;  %v418_v47 = vmul.f32 0.5, %v8150_v29 }
 0x155   :  { %v607_v60 = vadd.f32 1.0, %v7632_v52  ;;  %7641 = verf.f32 %v484_v49  ;;  %v8176_v61 = vadd.f32 %v251_v56, %v8136_v9  ;;  %v253_v62 = vpop.f32.mrb[11].mxu0  ;;  %833 = vmatprep.mubr.f32.mxu1 %v669_v50 }
 0x156   :  { %7643 = verf.f32 %v485_v55  ;;  %v8182_v2 = vadd.f32 %v253_v62, %v8138_v10  ;;  %834 = vmatmul.mubr.f32.vlgmr.msra.gmra.mrb[0].mxu1 %v668_v57  ;;  %v670_v15 = vmul.f32 %v606_v54, %v414_v53  ;;  %v8245_v54 = vpack.c.bf16 %v1064_v42, %v1061_v33 }
 0x157   :  { %v7634_v4 = vpop.eup %7633  ;;  %v486_v6 = vmul.f32 0.70710677, %v8176_v61  ;;  %v671_v7 = vmul.f32 %v607_v60, %v415_v48  ;;  %7254 = vmatpush3.bf16.msra.mxu1 %v8188_v3  ;;  %v421_v62 = vmul.f32 0.5, %v8161_v43 }
 0x158   :  { %v7636_v12 = vpop.eup %7635  ;;  %v608_v13 = vadd.f32 1.0, %v7634_v4  ;;  %v487_v0 = vmul.f32 0.70710677, %v8182_v2  ;;  %v257_v14 = vpop.f32.mrb[12].mxu0  ;;  %7247 = vmatprep.subr.bf16.mxu1 %v8208_v21  ;;  %10758 = vst [vmem:[#allocation15_spill] sm:$0xff] %v8245_v54  ;;  %6875 = vmatprep.subr.bf16.mxu0 %v8245_v54 }
 0x159   :  { %v609_v18 = vadd.f32 1.0, %v7636_v12  ;;  %7645 = verf.f32 %v486_v6  ;;  %v8201_v19 = vadd.f32 %v257_v14, %v8136_v9  ;;  %v259_v20 = vpop.f32.mrb[13].mxu0  ;;  %838 = vmatprep.mubr.f32.mxu1 %v671_v7  ;;  %v420_v6 = vmul.f32 0.5, %v8158_v38  ;;  %6877 = vmatpush3.bf16.msra.mxu0 %v8245_v54 }
 0x15a   :  { %7647 = verf.f32 %v487_v0  ;;  %v8212_v24 = vadd.f32 %v259_v20, %v8138_v10  ;;  %839 = vmatmul.mubr.f32.gmra.mrb[2].mxu1 %v670_v15  ;;  %v672_v37 = vmul.f32 %v608_v13, %v416_v22  ;;  %v423_v38 = vmul.f32 0.5, %v8182_v2 }
 0x15b   :  { %v7638_v27 = vpop.eup %7637  ;;  %v488_v30 = vmul.f32 0.70710677, %v8201_v19  ;;  %v673_v32 = vmul.f32 %v609_v18, %v417_v5  ;;  %7255 = vmatpush3.bf16.msra.mxu1 %v8208_v21 }
 0x15c   :  { %v7640_v23 = vpop.eup %7639  ;;  %v610_v34 = vadd.f32 1.0, %v7638_v27  ;;  %v489_v35 = vmul.f32 0.70710677, %v8212_v24  ;;  %v263_v36 = vpop.f32.mrb[14].mxu0  ;;  %7248 = vmatprep.subr.bf16.mxu1 %v8227_v31 }
 0x15d   :  { %v611_v39 = vadd.f32 1.0, %v7640_v23  ;;  %7649 = verf.f32 %v488_v30  ;;  %v8231_v40 = vadd.f32 %v263_v36, %v8136_v9  ;;  %v265_v41 = vpop.f32.mrb[15].mxu0  ;;  %843 = vmatprep.mubr.f32.mxu1 %v673_v32  ;;  %v422_v30 = vmul.f32 0.5, %v8176_v61 }
 0x15e   :  { %7651 = verf.f32 %v489_v35  ;;  %v8237_v48 = vadd.f32 %v265_v41, %v8138_v10  ;;  %844 = vmatmul.mubr.f32.gmra.mrb[4].mxu1 %v672_v37  ;;  %v674_v60 = vmul.f32 %v610_v34, %v418_v47  ;;  %v425_v47 = vmul.f32 0.5, %v8212_v24 }
 0x15f   :  { %v7642_v49 = vpop.eup %7641  ;;  %v490_v50 = vmul.f32 0.70710677, %v8231_v40  ;;  %v675_v52 = vmul.f32 %v611_v39, %v419_v28  ;;  %7256 = vmatpush3.bf16.msra.mxu1 %v8227_v31 }
 0x160   :  { %v7644_v29 = vpop.eup %7643  ;;  %v612_v55 = vadd.f32 1.0, %v7642_v49  ;;  %v491_v56 = vmul.f32 0.70710677, %v8237_v48  ;;  %v269_v57 = vpop.f32.mrb[16].mxu0  ;;  %7249 = vmatprep.subr.bf16.mxu1 %v8245_v54 }
 0x161   :  { %v613_v53 = vadd.f32 1.0, %v7644_v29  ;;  %7653 = verf.f32 %v490_v50  ;;  %v8252_v4 = vadd.f32 %v269_v57, %v8136_v9  ;;  %v271_v5 = vpop.f32.mrb[17].mxu0  ;;  %848 = vmatprep.mubr.f32.mxu1 %v675_v52  ;;  %v424_v52 = vmul.f32 0.5, %v8201_v19 }
 0x162   :  { %7655 = verf.f32 %v491_v56  ;;  %v8257_v7 = vadd.f32 %v271_v5, %v8138_v10  ;;  %849 = vmatmul.mubr.f32.gmra.mrb[6].mxu1 %v674_v60  ;;  %v676_v20 = vmul.f32 %v612_v55, %v420_v6  ;;  %v427_v6 = vmul.f32 0.5, %v8237_v48 }
 0x163   :  { %v7646_v12 = vpop.eup %7645  ;;  %v492_v43 = vmul.f32 0.70710677, %v8252_v4  ;;  %v677_v13 = vmul.f32 %v613_v53, %v421_v62  ;;  %7257 = vmatpush3.bf16.msra.mxu1 %v8245_v54 }
 0x164   :  { %v7648_v0 = vpop.eup %7647  ;;  %v614_v14 = vadd.f32 1.0, %v7646_v12  ;;  %v493_v15 = vmul.f32 0.70710677, %v8257_v7  ;;  %v275_v18 = vpop.f32.mrb[18].mxu0 }
 0x165   :  { %v615_v22 = vadd.f32 1.0, %v7648_v0  ;;  %7657 = verf.f32 %v492_v43  ;;  %v8266_v27 = vadd.f32 %v275_v18, %v8136_v9  ;;  %v277_v28 = vpop.f32.mrb[19].mxu0  ;;  %853 = vmatprep.mubr.f32.mxu1 %v677_v13  ;;  %v426_v13 = vmul.f32 0.5, %v8231_v40 }
 0x166   :  { %7659 = verf.f32 %v493_v15  ;;  %v8271_v32 = vadd.f32 %v277_v28, %v8138_v10  ;;  %854 = vmatmul.mubr.f32.gmra.mrb[8].mxu1 %v676_v20  ;;  %v678_v41 = vmul.f32 %v614_v14, %v422_v30  ;;  %v429_v30 = vmul.f32 0.5, %v8257_v7 }
 0x167   :  { %v7650_v23 = vpop.eup %7649  ;;  %v494_v34 = vmul.f32 0.70710677, %v8266_v27  ;;  %v679_v2 = vmul.f32 %v615_v22, %v423_v38 }
 0x168   :  { %v7652_v35 = vpop.eup %7651  ;;  %v616_v36 = vadd.f32 1.0, %v7650_v23  ;;  %v495_v37 = vmul.f32 0.70710677, %v8271_v32  ;;  %v281_v39 = vpop.f32.mrb[20].mxu0 }
 0x169   :  { %v617_v61 = vadd.f32 1.0, %v7652_v35  ;;  %7661 = verf.f32 %v494_v34  ;;  %v8278_v49 = vadd.f32 %v281_v39, %v8136_v9  ;;  %v283_v50 = vpop.f32.mrb[21].mxu0  ;;  %858 = vmatprep.mubr.f32.mxu1 %v679_v2  ;;  %v428_v2 = vmul.f32 0.5, %v8252_v4 }
 0x16a   :  { %7663 = verf.f32 %v495_v37  ;;  %v8282_v29 = vadd.f32 %v283_v50, %v8138_v10  ;;  %859 = vmatmul.mubr.f32.gmra.mrb[10].mxu1 %v678_v41  ;;  %v680_v5 = vmul.f32 %v616_v36, %v424_v52  ;;  %v431_v52 = vmul.f32 0.5, %v8271_v32 }
 0x16b   :  { %v7654_v55 = vpop.eup %7653  ;;  %v496_v56 = vmul.f32 0.70710677, %v8278_v49  ;;  %v681_v57 = vmul.f32 %v617_v61, %v425_v47 }
 0x16c   :  { %v7656_v60 = vpop.eup %7655  ;;  %v618_v24 = vadd.f32 1.0, %v7654_v55  ;;  %v497_v62 = vmul.f32 0.70710677, %v8282_v29  ;;  %v287_v53 = vpop.f32.mrb[22].mxu0 }
 0x16d   :  { %v619_v12 = vadd.f32 1.0, %v7656_v60  ;;  %7665 = verf.f32 %v496_v56  ;;  %v8288_v19 = vadd.f32 %v287_v53, %v8136_v9  ;;  %v289_v43 = vpop.f32.mrb[23].mxu0  ;;  %863 = vmatprep.mubr.f32.mxu1 %v681_v57  ;;  %v430_v57 = vmul.f32 0.5, %v8266_v27 }
 0x16e   :  { %7667 = verf.f32 %v497_v62  ;;  %v8292_v0 = vadd.f32 %v289_v43, %v8138_v10  ;;  %864 = vmatmul.mubr.f32.gmra.mrb[12].mxu1 %v680_v5  ;;  %v682_v28 = vmul.f32 %v618_v24, %v426_v13  ;;  %v433_v13 = vmul.f32 0.5, %v8282_v29 }
 0x16f   :  { %v7658_v14 = vpop.eup %7657  ;;  %v498_v15 = vmul.f32 0.70710677, %v8288_v19  ;;  %v683_v18 = vmul.f32 %v619_v12, %v427_v6 }
 0x170   :  { %v7660_v20 = vpop.eup %7659  ;;  %v620_v48 = vadd.f32 1.0, %v7658_v14  ;;  %v499_v38 = vmul.f32 0.70710677, %v8292_v0  ;;  %v293_v22 = vpop.f32.mrb[24].mxu0 }
 0x171   :  { %v621_v23 = vadd.f32 1.0, %v7660_v20  ;;  %7669 = verf.f32 %v498_v15  ;;  %v8298_v40 = vadd.f32 %v293_v22, %v8136_v9  ;;  %v295_v34 = vpop.f32.mrb[25].mxu0  ;;  %868 = vmatprep.mubr.f32.mxu1 %v683_v18  ;;  %v432_v18 = vmul.f32 0.5, %v8278_v49 }
 0x172   :  { %7671 = verf.f32 %v499_v38  ;;  %v8302_v35 = vadd.f32 %v295_v34, %v8138_v10  ;;  %869 = vmatmul.mubr.f32.gmra.mrb[14].mxu1 %v682_v28  ;;  %v684_v50 = vmul.f32 %v620_v48, %v428_v2  ;;  %v435_v2 = vmul.f32 0.5, %v8292_v0 }
 0x173   :  { %v7662_v36 = vpop.eup %7661  ;;  %v500_v37 = vmul.f32 0.70710677, %v8298_v40  ;;  %v685_v39 = vmul.f32 %v621_v23, %v429_v30 }
 0x174   :  { %v7664_v41 = vpop.eup %7663  ;;  %v622_v7 = vadd.f32 1.0, %v7662_v36  ;;  %v501_v47 = vmul.f32 0.70710677, %v8302_v35  ;;  %v299_v61 = vpop.f32.mrb[26].mxu0 }
 0x175   :  { %v623_v55 = vadd.f32 1.0, %v7664_v41  ;;  %7673 = verf.f32 %v500_v37  ;;  %v8308_v4 = vadd.f32 %v299_v61, %v8136_v9  ;;  %v301_v56 = vpop.f32.mrb[27].mxu0  ;;  %873 = vmatprep.mubr.f32.mxu1 %v685_v39  ;;  %v434_v39 = vmul.f32 0.5, %v8288_v19 }
 0x176   :  { %7675 = verf.f32 %v501_v47  ;;  %v8312_v60 = vadd.f32 %v301_v56, %v8138_v10  ;;  %874 = vmatmul.mubr.f32.gmra.mrb[16].mxu1 %v684_v50  ;;  %v686_v43 = vmul.f32 %v622_v7, %v430_v57  ;;  %v437_v57 = vmul.f32 0.5, %v8302_v35 }
 0x177   :  { %v7666_v24 = vpop.eup %7665  ;;  %v502_v62 = vmul.f32 0.70710677, %v8308_v4  ;;  %v687_v53 = vmul.f32 %v623_v55, %v431_v52 }
 0x178   :  { %v7668_v5 = vpop.eup %7667  ;;  %v624_v32 = vadd.f32 1.0, %v7666_v24  ;;  %v503_v6 = vmul.f32 0.70710677, %v8312_v60  ;;  %v305_v12 = vpop.f32.mrb[28].mxu0 }
 0x179   :  { %v625_v14 = vadd.f32 1.0, %v7668_v5  ;;  %7677 = verf.f32 %v502_v62  ;;  %v8318_v27 = vadd.f32 %v305_v12, %v8136_v9  ;;  %v307_v15 = vpop.f32.mrb[29].mxu0  ;;  %878 = vmatprep.mubr.f32.mxu1 %v687_v53  ;;  %v436_v53 = vmul.f32 0.5, %v8298_v40 }
 0x17a   :  { %7679 = verf.f32 %v503_v6  ;;  %v8322_v20 = vadd.f32 %v307_v15, %v8138_v10  ;;  %879 = vmatmul.mubr.f32.gmra.mrb[18].mxu1 %v686_v43  ;;  %v688_v34 = vmul.f32 %v624_v32, %v432_v18  ;;  %v439_v18 = vmul.f32 0.5, %v8312_v60 }
 0x17b   :  { %v7670_v48 = vpop.eup %7669  ;;  %v504_v38 = vmul.f32 0.70710677, %v8318_v27  ;;  %v689_v22 = vmul.f32 %v625_v14, %v433_v13 }
 0x17c   :  { %v7672_v28 = vpop.eup %7671  ;;  %v626_v29 = vadd.f32 1.0, %v7670_v48  ;;  %v505_v30 = vmul.f32 0.70710677, %v8322_v20  ;;  %v311_v23 = vpop.f32.mrb[30].mxu0 }
 0x17d   :  { %v627_v36 = vadd.f32 1.0, %v7672_v28  ;;  %7681 = verf.f32 %v504_v38  ;;  %v8328_v49 = vadd.f32 %v311_v23, %v8136_v9  ;;  %v313_v37 = vpop.f32.mrb[31].mxu0  ;;  %883 = vmatprep.mubr.f32.mxu1 %v689_v22  ;;  %v438_v22 = vmul.f32 0.5, %v8308_v4 }
 0x17e   :  { %7683 = verf.f32 %v505_v30  ;;  %v8332_v41 = vadd.f32 %v313_v37, %v8138_v10  ;;  %884 = vmatmul.mubr.f32.gmra.mrb[20].mxu1 %v688_v34  ;;  %v690_v56 = vmul.f32 %v626_v29, %v434_v39  ;;  %v441_v39 = vmul.f32 0.5, %v8322_v20 }
 0x17f   :  { %v7674_v7 = vpop.eup %7673  ;;  %v506_v47 = vmul.f32 0.70710677, %v8328_v49  ;;  %v691_v61 = vmul.f32 %v627_v36, %v435_v2 }
 0x180   :  { %v7676_v50 = vpop.eup %7675  ;;  %v628_v0 = vadd.f32 1.0, %v7674_v7  ;;  %v507_v52 = vmul.f32 0.70710677, %v8332_v41  ;;  %v317_v55 = vpop.f32.mrb[32].mxu0 }
 0x181   :  { %v629_v24 = vadd.f32 1.0, %v7676_v50  ;;  %7685 = verf.f32 %v506_v47  ;;  %v8338_v19 = vadd.f32 %v317_v55, %v8136_v9  ;;  %v319_v62 = vpop.f32.mrb[33].mxu0  ;;  %888 = vmatprep.mubr.f32.mxu1 %v691_v61  ;;  %v440_v61 = vmul.f32 0.5, %v8318_v27 }
 0x182   :  { %7687 = verf.f32 %v507_v52  ;;  %v8342_v5 = vadd.f32 %v319_v62, %v8138_v10  ;;  %889 = vmatmul.mubr.f32.gmra.mrb[22].mxu1 %v690_v56  ;;  %v692_v15 = vmul.f32 %v628_v0, %v436_v53  ;;  %v443_v53 = vmul.f32 0.5, %v8332_v41 }
 0x183   :  { %v7678_v32 = vpop.eup %7677  ;;  %v508_v6 = vmul.f32 0.70710677, %v8338_v19  ;;  %v693_v12 = vmul.f32 %v629_v24, %v437_v57 }
 0x184   :  { %v7680_v43 = vpop.eup %7679  ;;  %v630_v35 = vadd.f32 1.0, %v7678_v32  ;;  %v509_v13 = vmul.f32 0.70710677, %v8342_v5  ;;  %v323_v14 = vpop.f32.mrb[34].mxu0 }
 0x185   :  { %v631_v48 = vadd.f32 1.0, %v7680_v43  ;;  %7689 = verf.f32 %v508_v6  ;;  %v8348_v40 = vadd.f32 %v323_v14, %v8136_v9  ;;  %v325_v38 = vpop.f32.mrb[35].mxu0  ;;  %893 = vmatprep.mubr.f32.mxu1 %v693_v12  ;;  %v442_v12 = vmul.f32 0.5, %v8328_v49 }
 0x186   :  { %7691 = verf.f32 %v509_v13  ;;  %v8352_v28 = vadd.f32 %v325_v38, %v8138_v10  ;;  %894 = vmatmul.mubr.f32.gmra.mrb[24].mxu1 %v692_v15  ;;  %v694_v37 = vmul.f32 %v630_v35, %v438_v22  ;;  %v445_v22 = vmul.f32 0.5, %v8342_v5 }
 0x187   :  { %v7682_v29 = vpop.eup %7681  ;;  %v510_v30 = vmul.f32 0.70710677, %v8348_v40  ;;  %v695_v23 = vmul.f32 %v631_v48, %v439_v18 }
 0x188   :  { %v7684_v34 = vpop.eup %7683  ;;  %v632_v60 = vadd.f32 1.0, %v7682_v29  ;;  %v511_v2 = vmul.f32 0.70710677, %v8352_v28  ;;  %v329_v36 = vpop.f32.mrb[36].mxu0 }
 0x189   :  { %v633_v7 = vadd.f32 1.0, %v7684_v34  ;;  %7693 = verf.f32 %v510_v30  ;;  %v8358_v4 = vadd.f32 %v329_v36, %v8136_v9  ;;  %v331_v47 = vpop.f32.mrb[37].mxu0  ;;  %898 = vmatprep.mubr.f32.mxu1 %v695_v23  ;;  %v444_v23 = vmul.f32 0.5, %v8338_v19 }
 0x18a   :  { %7695 = verf.f32 %v511_v2  ;;  %v8362_v50 = vadd.f32 %v331_v47, %v8138_v10  ;;  %899 = vmatmul.mubr.f32.gmra.mrb[26].mxu1 %v694_v37  ;;  %v696_v62 = vmul.f32 %v632_v60, %v440_v61  ;;  %v447_v61 = vmul.f32 0.5, %v8352_v28 }
 0x18b   :  { %v7686_v0 = vpop.eup %7685  ;;  %v512_v52 = vmul.f32 0.70710677, %v8358_v4  ;;  %v697_v55 = vmul.f32 %v633_v7, %v441_v39 }
 0x18c   :  { %v7688_v56 = vpop.eup %7687  ;;  %v634_v20 = vadd.f32 1.0, %v7686_v0  ;;  %v513_v57 = vmul.f32 0.70710677, %v8362_v50  ;;  %v335_v24 = vpop.f32.mrb[38].mxu0 }
 0x18d   :  { %v635_v32 = vadd.f32 1.0, %v7688_v56  ;;  %7697 = verf.f32 %v512_v52  ;;  %v8368_v27 = vadd.f32 %v335_v24, %v8136_v9  ;;  %v337_v6 = vpop.f32.mrb[39].mxu0  ;;  %903 = vmatprep.mubr.f32.mxu1 %v697_v55  ;;  %v446_v55 = vmul.f32 0.5, %v8348_v40 }
 0x18e   :  { %7699 = verf.f32 %v513_v57  ;;  %v8372_v43 = vadd.f32 %v337_v6, %v8138_v10  ;;  %904 = vmatmul.mubr.f32.gmra.mrb[28].mxu1 %v696_v62  ;;  %v698_v38 = vmul.f32 %v634_v20, %v442_v12  ;;  %v449_v12 = vmul.f32 0.5, %v8362_v50 }
 0x18f   :  { %v7690_v35 = vpop.eup %7689  ;;  %v514_v13 = vmul.f32 0.70710677, %v8368_v27  ;;  %v699_v14 = vmul.f32 %v635_v32, %v443_v53 }
 0x190   :  { %v7692_v15 = vpop.eup %7691  ;;  %v636_v41 = vadd.f32 1.0, %v7690_v35  ;;  %v515_v18 = vmul.f32 0.70710677, %v8372_v43  ;;  %v341_v48 = vpop.f32.mrb[40].mxu0 }
 0x191   :  { %v637_v29 = vadd.f32 1.0, %v7692_v15  ;;  %7701 = verf.f32 %v514_v13  ;;  %v8378_v49 = vadd.f32 %v341_v48, %v8136_v9  ;;  %v343_v30 = vpop.f32.mrb[41].mxu0  ;;  %908 = vmatprep.mubr.f32.mxu1 %v699_v14  ;;  %v448_v14 = vmul.f32 0.5, %v8358_v4 }
 0x192   :  { %7703 = verf.f32 %v515_v18  ;;  %v8382_v34 = vadd.f32 %v343_v30, %v8138_v10  ;;  %909 = vmatmul.mubr.f32.gmra.mrb[30].mxu1 %v698_v38  ;;  %v700_v47 = vmul.f32 %v636_v41, %v444_v23  ;;  %v451_v23 = vmul.f32 0.5, %v8372_v43 }
 0x193   :  { %v7694_v60 = vpop.eup %7693  ;;  %v516_v2 = vmul.f32 0.70710677, %v8378_v49  ;;  %v701_v36 = vmul.f32 %v637_v29, %v445_v22 }
 0x194   :  { %v7696_v37 = vpop.eup %7695  ;;  %v638_v5 = vadd.f32 1.0, %v7694_v60  ;;  %v517_v39 = vmul.f32 0.70710677, %v8382_v34  ;;  %v347_v7 = vpop.f32.mrb[42].mxu0 }
 0x195   :  { %v639_v0 = vadd.f32 1.0, %v7696_v37  ;;  %7705 = verf.f32 %v516_v2  ;;  %v8388_v19 = vadd.f32 %v347_v7, %v8136_v9  ;;  %v349_v52 = vpop.f32.mrb[43].mxu0  ;;  %913 = vmatprep.mubr.f32.mxu1 %v701_v36  ;;  %v450_v36 = vmul.f32 0.5, %v8368_v27 }
 0x196   :  { %7707 = verf.f32 %v517_v39  ;;  %v8392_v56 = vadd.f32 %v349_v52, %v8138_v10  ;;  %914 = vmatmul.mubr.f32.gmra.mrb[32].mxu1 %v700_v47  ;;  %v702_v6 = vmul.f32 %v638_v5, %v446_v55  ;;  %v453_v55 = vmul.f32 0.5, %v8382_v34 }
 0x197   :  { %v7698_v20 = vpop.eup %7697  ;;  %v518_v57 = vmul.f32 0.70710677, %v8388_v19  ;;  %v703_v24 = vmul.f32 %v639_v0, %v447_v61 }
 0x198   :  { %v7700_v62 = vpop.eup %7699  ;;  %v640_v28 = vadd.f32 1.0, %v7698_v20  ;;  %v519_v53 = vmul.f32 0.70710677, %v8392_v56  ;;  %v353_v32 = vpop.f32.mrb[44].mxu0 }
 0x199   :  { %v641_v35 = vadd.f32 1.0, %v7700_v62  ;;  %7709 = verf.f32 %v518_v57  ;;  %v8398_v40 = vadd.f32 %v353_v32, %v8136_v9  ;;  %v355_v13 = vpop.f32.mrb[45].mxu0  ;;  %918 = vmatprep.mubr.f32.mxu1 %v703_v24  ;;  %v452_v24 = vmul.f32 0.5, %v8378_v49 }
 0x19a   :  { %7711 = verf.f32 %v519_v53  ;;  %v356_v15 = vadd.f32 %v355_v13, %v8138_v10  ;;  %919 = vmatmul.mubr.f32.gmra.mrb[34].mxu1 %v702_v6  ;;  %v704_v30 = vmul.f32 %v640_v28, %v448_v14  ;;  %v455_v14 = vmul.f32 0.5, %v8392_v56  ;;  %v8429_v56 = vld [vmem:[#allocation8 + $0x40] sm:$0xff] }
 0x19b   :  { %v7702_v41 = vpop.eup %7701  ;;  %v520_v18 = vmul.f32 0.70710677, %v8398_v40  ;;  %v705_v48 = vmul.f32 %v641_v35, %v449_v12 }
 0x19c   :  { %v7704_v38 = vpop.eup %7703  ;;  %v642_v22 = vadd.f32 1.0, %v7702_v41  ;;  %v521_v50 = vmul.f32 0.70710677, %v356_v15  ;;  %v359_v29 = vpop.f32.mrb[46].mxu0 }
 0x19d   :  { %v643_v60 = vadd.f32 1.0, %v7704_v38  ;;  %7713 = verf.f32 %v520_v18  ;;  %v8405_v2 = vadd.f32 %v359_v29, %v8136_v9  ;;  %v361_v4 = vpop.f32.mrb[47].mxu0  ;;  %923 = vmatprep.mubr.f32.mxu1 %v705_v48  ;;  %v454_v48 = vmul.f32 0.5, %v8388_v19 }
 0x19e   :  { %7715 = verf.f32 %v521_v50  ;;  %v362_v37 = vadd.f32 %v361_v4, %v8138_v10  ;;  %924 = vmatmul.mubr.f32.gmra.mrb[36].mxu1 %v704_v30  ;;  %v706_v52 = vmul.f32 %v642_v22, %v450_v36  ;;  %v457_v50 = vmul.f32 0.5, %v356_v15 }
 0x19f   :  { %v7706_v5 = vpop.eup %7705  ;;  %v522_v39 = vmul.f32 0.70710677, %v8405_v2  ;;  %v707_v7 = vmul.f32 %v643_v60, %v451_v23  ;;  %v8431_v23 = vld [vmem:[#allocation8 + $0x48] sm:$0xff] }
 0x1a0   :  { %v7708_v47 = vpop.eup %7707  ;;  %v644_v61 = vadd.f32 1.0, %v7706_v5  ;;  %v523_v43 = vmul.f32 0.70710677, %v362_v37  ;;  %v365_v0 = vpop.f32.mrb[48].mxu0 }
 0x1a1   :  { %v645_v20 = vadd.f32 1.0, %v7708_v47  ;;  %7717 = verf.f32 %v522_v39  ;;  %v8412_v57 = vadd.f32 %v365_v0, %v8136_v9  ;;  %v367_v27 = vpop.f32.mrb[49].mxu0  ;;  %928 = vmatprep.mubr.f32.mxu1 %v707_v7  ;;  %v1067_v39 = vand.u32 4294901760, %v8429_v56 }
 0x1a2   :  { %7719 = verf.f32 %v523_v43  ;;  %v8416_v62 = vadd.f32 %v367_v27, %v8138_v10  ;;  %929 = vmatmul.mubr.f32.gmra.mrb[38].mxu1 %v706_v52  ;;  %v708_v13 = vmul.f32 %v644_v61, %v452_v24  ;;  %v1070_v61 = vand.u32 4294901760, %v8431_v23 }
 0x1a3   :  { %v7710_v28 = vpop.eup %7709  ;;  %v524_v53 = vmul.f32 0.70710677, %v8412_v57  ;;  %v709_v32 = vmul.f32 %v645_v20, %v453_v55  ;;  %v456_v43 = vmul.f32 0.5, %v8398_v40  ;;  %v459_v55 = vmul.f32 0.5, %v362_v37 }
 0x1a4   :  { %v7712_v6 = vpop.eup %7711  ;;  %v646_v34 = vadd.f32 1.0, %v7710_v28  ;;  %v525_v12 = vmul.f32 0.70710677, %v8416_v62  ;;  %v371_v35 = vpop.f32.mrb[50].mxu0  ;;  %v8448_v24 = vpack.c.bf16 %v1070_v61, %v1067_v39  ;;  %v8450_v28 = vld [vmem:[#allocation8 + $0x50] sm:$0xff]  ;;  %v8630_v17 = vsub.f32 %v8429_v56, %v1067_v39 }
 0x1a5   :  { %v647_v41 = vadd.f32 1.0, %v7712_v6  ;;  %7721 = verf.f32 %v524_v53  ;;  %v8422_v49 = vadd.f32 %v371_v35, %v8136_v9  ;;  %v373_v18 = vpop.f32.mrb[51].mxu0  ;;  %933 = vmatprep.mubr.f32.mxu1 %v709_v32  ;;  %v8452_v53 = vld [vmem:[#allocation8 + $0x58] sm:$0xff]  ;;  %v10394_v37 = vand.u32 4294901760, %v8450_v28 }
 0x1a6   :  { %7723 = verf.f32 %v525_v12  ;;  %v8426_v38 = vadd.f32 %v373_v18, %v8138_v10  ;;  %934 = vmatmul.mubr.f32.gmra.mrb[40].mxu1 %v708_v13  ;;  %v710_v19 = vmul.f32 %v646_v34, %v454_v48  ;;  %10759 = vst [vmem:[#allocation16_spill] sm:$0xff] %v8448_v24  ;;  %6879 = vmatprep.subr.bf16.mxu0 %v8448_v24  ;;  %v458_v18 = vmul.f32 0.5, %v8405_v2  ;;  %v8474_v2 = vld [vmem:[#allocation8 + $0x60] sm:$0xff] }
 0x1a7   :  { %v7714_v22 = vpop.eup %7713  ;;  %v526_v29 = vmul.f32 0.70710677, %v8422_v49  ;;  %v711_v30 = vmul.f32 %v647_v41, %v455_v14  ;;  %v10393_v41 = vand.u32 4294901760, %v8452_v53  ;;  %6881 = vmatpush3.bf16.msra.mxu0 %v8448_v24  ;;  %7250 = vmatprep.subr.bf16.mxu1 %v8448_v24  ;;  %10774 = vst [vmem:[#allocation31_spill] sm:$0xff] %v8630_v17  ;;  %v8635_v26 = vsub.f32 %v8431_v23, %v1070_v61 }
 0x1a8   :  { %v7716_v60 = vpop.eup %7715  ;;  %v648_v4 = vadd.f32 1.0, %v7714_v22  ;;  %v527_v36 = vmul.f32 0.70710677, %v8426_v38  ;;  %v377_v5 = vpop.f32.mrb[52].mxu0  ;;  %7258 = vmatpush3.bf16.msra.mxu1 %v8448_v24 }
 0x1a9   :  { %v649_v7 = vadd.f32 1.0, %v7716_v60  ;;  %7725 = verf.f32 %v526_v29  ;;  %v8436_v47 = vadd.f32 %v377_v5, %v8136_v9  ;;  %v379_v15 = vpop.f32.mrb[53].mxu0  ;;  %938 = vmatprep.mubr.f32.mxu1 %v711_v30  ;;  %v8472_v60 = vpack.c.bf16 %v10393_v41, %v10394_v37  ;;  %10775 = vst [vmem:[#allocation32_spill] sm:$0xff] %v8635_v26 }
 0x1aa   :  { %7727 = verf.f32 %v527_v36  ;;  %v8441_v0 = vadd.f32 %v379_v15, %v8138_v10  ;;  %939 = vmatmul.mubr.f32.gmra.mrb[42].mxu1 %v710_v19  ;;  %v712_v12 = vmul.f32 %v648_v4, %v456_v43  ;;  %v8476_v4 = vld [vmem:[#allocation8 + $0x68] sm:$0xff]  ;;  %v10392_v15 = vand.u32 4294901760, %v8474_v2 }
 0x1ab   :  { %v7718_v52 = vpop.eup %7717  ;;  %v528_v20 = vmul.f32 0.70710677, %v8436_v47  ;;  %v713_v27 = vmul.f32 %v649_v7, %v457_v50  ;;  %v461_v50 = vmul.f32 0.5, %v8416_v62  ;;  %10760 = vst [vmem:[#allocation17_spill] sm:$0xff] %v8472_v60  ;;  %6883 = vmatprep.subr.bf16.mxu0 %v8472_v60  ;;  %7251 = vmatprep.subr.bf16.mxu1 %v8472_v60 }
 0x1ac   :  { %v7720_v40 = vpop.eup %7719  ;;  %v650_v32 = vadd.f32 1.0, %v7718_v52  ;;  %v529_v6 = vmul.f32 0.70710677, %v8441_v0  ;;  %v383_v34 = vpop.f32.mrb[54].mxu0  ;;  %6885 = vmatpush3.bf16.msra.mxu0 %v8472_v60  ;;  %7259 = vmatpush3.bf16.msra.mxu1 %v8472_v60 }
 0x1ad   :  { %v651_v35 = vadd.f32 1.0, %v7720_v40  ;;  %7729 = verf.f32 %v528_v20  ;;  %v8457_v13 = vadd.f32 %v383_v34, %v8136_v9  ;;  %v385_v14 = vpop.f32.mrb[55].mxu0  ;;  %943 = vmatprep.mubr.f32.mxu1 %v713_v27  ;;  %v10391_v20 = vand.u32 4294901760, %v8476_v4 }
 0x1ae   :  { %7731 = verf.f32 %v529_v6  ;;  %v8463_v48 = vadd.f32 %v385_v14, %v8138_v10  ;;  %944 = vmatmul.mubr.f32.gmra.mrb[44].mxu1 %v712_v12  ;;  %v714_v7 = vmul.f32 %v650_v32, %v458_v18  ;;  %v460_v27 = vmul.f32 0.5, %v8412_v57  ;;  %v8500_v57 = vld [vmem:[#allocation8 + $0x70] sm:$0xff]  ;;  %v8502_v14 = vld [vmem:[#allocation8 + $0x78] sm:$0xff] }
 0x1af   :  { %v7722_v22 = vpop.eup %7721  ;;  %v530_v29 = vmul.f32 0.70710677, %v8457_v13  ;;  %v715_v30 = vmul.f32 %v651_v35, %v459_v55  ;;  %v463_v6 = vmul.f32 0.5, %v8426_v38  ;;  %v8498_v35 = vpack.c.bf16 %v10391_v20, %v10392_v15 }
 0x1b0   :  { %v7724_v36 = vpop.eup %7723  ;;  %v652_v5 = vadd.f32 1.0, %v7722_v22  ;;  %v531_v19 = vmul.f32 0.70710677, %v8463_v48  ;;  %v389_v62 = vpop.f32.mrb[56].mxu0  ;;  %v466_v20 = vmul.f32 0.5, %v8457_v13 }
 0x1b1   :  { %v653_v43 = vadd.f32 1.0, %v7724_v36  ;;  %7733 = verf.f32 %v530_v29  ;;  %v8483_v52 = vadd.f32 %v389_v62, %v8136_v9  ;;  %v391_v55 = vpop.f32.mrb[57].mxu0  ;;  %948 = vmatprep.mubr.f32.mxu1 %v715_v30  ;;  %10761 = vst [vmem:[#allocation18_spill] sm:$0xff] %v8498_v35  ;;  %6887 = vmatprep.subr.bf16.mxu0 %v8498_v35 }
 0x1b2   :  { %7735 = verf.f32 %v531_v19  ;;  %v8489_v40 = vadd.f32 %v391_v55, %v8138_v10  ;;  %949 = vmatmul.mubr.f32.gmra.mrb[46].mxu1 %v714_v7  ;;  %v716_v30 = vmul.f32 %v652_v5, %v460_v27  ;;  %v10389_v7 = vand.u32 4294901760, %v8502_v14  ;;  %6889 = vmatpush3.bf16.msra.mxu0 %v8498_v35 }
 0x1b3   :  { %v7726_v32 = vpop.eup %7725  ;;  %v532_v34 = vmul.f32 0.70710677, %v8483_v52  ;;  %v717_v12 = vmul.f32 %v653_v43, %v461_v50  ;;  %v10390_v50 = vand.u32 4294901760, %v8500_v57  ;;  %v462_v43 = vmul.f32 0.5, %v8422_v49  ;;  %7252 = vmatprep.subr.bf16.mxu1 %v8498_v35 }
 0x1b4   :  { %v7728_v18 = vpop.eup %7727  ;;  %v654_v22 = vadd.f32 1.0, %v7726_v32  ;;  %v533_v29 = vmul.f32 0.70710677, %v8489_v40  ;;  %v395_v38 = vpop.f32.mrb[58].mxu0  ;;  %7260 = vmatpush3.bf16.msra.mxu1 %v8498_v35 }
 0x1b5   :  { %v655_v36 = vadd.f32 1.0, %v7728_v18  ;;  %7737 = verf.f32 %v532_v34  ;;  %v8509_v19 = vadd.f32 %v395_v38, %v8136_v9  ;;  %v397_v62 = vpop.f32.mrb[59].mxu0  ;;  %953 = vmatprep.mubr.f32.mxu1 %v717_v12  ;;  %v8523_v34 = vpack.c.bf16 %v10389_v7, %v10390_v50 }
 0x1b6   :  { %7739 = verf.f32 %v533_v29  ;;  %v8515_v5 = vadd.f32 %v397_v62, %v8138_v10  ;;  %954 = vmatmul.mubr.f32.gmra.mrb[48].mxu1 %v716_v30  ;;  %v718_v38 = vmul.f32 %v654_v22, %v462_v43  ;;  %v465_v30 = vmul.f32 0.5, %v8441_v0 }
 0x1b7   :  { %v7730_v55 = vpop.eup %7729  ;;  %v534_v27 = vmul.f32 0.70710677, %v8509_v19  ;;  %v719_v32 = vmul.f32 %v655_v36, %v463_v6  ;;  %10762 = vst [vmem:[#allocation19_spill] sm:$0xff] %v8523_v34  ;;  %6891 = vmatprep.subr.bf16.mxu0 %v8523_v34  ;;  %v464_v7 = vmul.f32 0.5, %v8436_v47  ;;  %7253 = vmatprep.subr.bf16.mxu1 %v8523_v34  ;;  %v467_v47 = vmul.f32 0.5, %v8463_v48 }
 0x1b8   :  { %v7732_v49 = vpop.eup %7731  ;;  %v656_v12 = vadd.f32 1.0, %v7730_v55  ;;  %v535_v18 = vmul.f32 0.70710677, %v8515_v5  ;;  %v401_v29 = vpop.f32.mrb[60].mxu0  ;;  %6893 = vmatpush3.bf16.msra.mxu0 %v8523_v34  ;;  %7261 = vmatpush3.bf16.msra.mxu1 %v8523_v34  ;;  %v469_v48 = vmul.f32 0.5, %v8489_v40 }
 0x1b9   :  { %v657_v62 = vadd.f32 1.0, %v7732_v49  ;;  %7741 = verf.f32 %v534_v27  ;;  %v402_v6 = vadd.f32 %v401_v29, %v8136_v9  ;;  %v403_v36 = vpop.f32.mrb[61].mxu0  ;;  %958 = vmatprep.mubr.f32.mxu1 %v719_v32 }
 0x1ba   :  { %7743 = verf.f32 %v535_v18  ;;  %v404_v55 = vadd.f32 %v403_v36, %v8138_v10  ;;  %959 = vmatmul.mubr.f32.gmra.mrb[50].mxu1 %v718_v38  ;;  %v720_v32 = vmul.f32 %v656_v12, %v464_v7 }
 0x1bb   :  { %v7734_v22 = vpop.eup %7733  ;;  %v536_v43 = vmul.f32 0.70710677, %v402_v6  ;;  %v721_v50 = vmul.f32 %v657_v62, %v465_v30 }
 0x1bc   :  { %v7736_v0 = vpop.eup %7735  ;;  %v658_v27 = vadd.f32 1.0, %v7734_v22  ;;  %v537_v49 = vmul.f32 0.70710677, %v404_v55  ;;  %v407_v29 = vpop.f32.mrb[62].mxu0 }
 0x1bd   :  { %v659_v18 = vadd.f32 1.0, %v7736_v0  ;;  %7745 = verf.f32 %v536_v43  ;;  %v408_v38 = vadd.f32 %v407_v29, %v8136_v9  ;;  %v409_v36 = vpop.f32.mrb[63].mxu0  ;;  %963 = vmatprep.mubr.f32.mxu1 %v721_v50  ;;  %v468_v9 = vmul.f32 0.5, %v8483_v52 }
 0x1be   :  { %7747 = verf.f32 %v537_v49  ;;  %v410_v30 = vadd.f32 %v409_v36, %v8138_v10  ;;  %964 = vmatmul.mubr.f32.gmra.mrb[52].mxu1 %v720_v32  ;;  %v722_v37 = vmul.f32 %v658_v27, %v466_v20  ;;  %v471_v29 = vmul.f32 0.5, %v8515_v5 }
 0x1bf   :  { %v7738_v62 = vpop.eup %7737  ;;  %v538_v22 = vmul.f32 0.70710677, %v408_v38  ;;  %v723_v15 = vmul.f32 %v659_v18, %v467_v47  ;;  %v470_v20 = vmul.f32 0.5, %v8509_v19  ;;  %v473_v52 = vmul.f32 0.5, %v404_v55 }
 0x1c0   :  { %v7740_v7 = vpop.eup %7739  ;;  %v660_v12 = vadd.f32 1.0, %v7738_v62  ;;  %v539_v41 = vmul.f32 0.70710677, %v410_v30  ;;  %v474_v19 = vmul.f32 0.5, %v408_v38 }
 0x1c1   :  { %v661_v43 = vadd.f32 1.0, %v7740_v7  ;;  %7749 = verf.f32 %v538_v22  ;;  %968 = vmatprep.mubr.f32.mxu1 %v723_v15 }
 0x1c2   :  { %7751 = verf.f32 %v539_v41  ;;  %969 = vmatmul.mubr.f32.gmra.mrb[54].mxu1 %v722_v37  ;;  %v724_v49 = vmul.f32 %v660_v12, %v468_v9  ;;  %v472_v37 = vmul.f32 0.5, %v402_v6  ;;  %v475_v12 = vmul.f32 0.5, %v410_v30  ;;  %v7818_v6 = vld [vmem:[#allocation8 + $0x8] sm:$0xff] }
 0x1c3   :  { %v7742_v13 = vpop.eup %7741  ;;  %v725_v50 = vmul.f32 %v661_v43, %v469_v48 }
 0x1c4   :  { %v7744_v10 = vpop.eup %7743  ;;  %v662_v0 = vadd.f32 1.0, %v7742_v13  ;;  %v7817_v13 = vld [vmem:[#allocation8] sm:$0xff] }
 0x1c5   :  { %v663_v32 = vadd.f32 1.0, %v7744_v10  ;;  %973 = vmatprep.mubr.f32.mxu1 %v725_v50  ;;  %v8546_v55 = vsub.f32 %v7817_v13, %v1043_v51  ;;  %v8550_v50 = vsub.f32 %v7818_v6, %v1046_v58  ;;  %v7819_v58 = vld [vmem:[#allocation8 + $0x10] sm:$0xff]  ;;  %v7826_v6 = vld [vmem:[#allocation8 + $0x38] sm:$0xff] }
 0x1c6   :  { %974 = vmatmul.mubr.f32.gmra.mrb[56].mxu1 %v724_v49  ;;  %v726_v18 = vmul.f32 %v662_v0, %v470_v20 }
 0x1c7   :  { %v7746_v40 = vpop.eup %7745  ;;  %v727_v27 = vmul.f32 %v663_v32, %v471_v29  ;;  %10763 = vst [vmem:[#allocation20_spill] sm:$0xff] %v8546_v55  ;;  %10764 = vst [vmem:[#allocation21_spill] sm:$0xff] %v8550_v50  ;;  %v10410_v30 = vand.u32 4294901760, %v8546_v55  ;;  %v10408_v10 = vand.u32 4294901760, %v8550_v50  ;;  %v8571_v29 = vsub.f32 %v7819_v58, %v1049_v63  ;;  %v7820_v32 = vld [vmem:[#allocation8 + $0x18] sm:$0xff] }
 0x1c8   :  { %v7748_v47 = vpop.eup %7747  ;;  %v664_v15 = vadd.f32 1.0, %v7746_v40  ;;  %v8575_v20 = vsub.f32 %v7820_v32, %v1052_v8  ;;  %v7821_v40 = vld [vmem:[#allocation8 + $0x20] sm:$0xff]  ;;  %v8650_v23 = vpack.c.bf16 %v8550_v50, %v8546_v55 }
 0x1c9   :  { %v665_v41 = vadd.f32 1.0, %v7748_v47  ;;  %978 = vmatprep.mubr.f32.mxu1 %v727_v27  ;;  %v1447_v38 = vsub.f32 %v8546_v55, %v10410_v30  ;;  %v1454_v0 = vsub.f32 %v8550_v50, %v10408_v10  ;;  %10766 = vst [vmem:[#allocation23_spill] sm:$0xff] %v8571_v29  ;;  %v8579_v27 = vsub.f32 %v7821_v40, %v1055_v16  ;;  %v7823_v8 = vld [vmem:[#allocation2] sm:$0xff] }
 0x1ca   :  { %979 = vmatmul.mubr.f32.gmra.mrb[58].mxu1 %v726_v18  ;;  %v728_v5 = vmul.f32 %v664_v15, %v472_v37  ;;  %10767 = vst [vmem:[#allocation24_spill] sm:$0xff] %v8575_v20  ;;  %v7822_v15 = vld [vmem:[#allocation8 + $0x28] sm:$0xff]  ;;  %v10403_v59 = vand.u32 4294901760, %v8575_v20  ;;  %10777 = vst [vmem:[#allocation34_spill] sm:$0xff] %v8650_v23 }
 0x1cb   :  { %v7750_v36 = vpop.eup %7749  ;;  %v729_v62 = vmul.f32 %v665_v41, %v473_v52  ;;  %v1448_v44 = vand.u32 4294901760, %v1447_v38  ;;  %v1455_v51 = vand.u32 4294901760, %v1454_v0  ;;  %10768 = vst [vmem:[#allocation25_spill] sm:$0xff] %v8579_v27  ;;  %v8583_v18 = vsub.f32 %v7822_v15, %v1058_v25 }
 0x1cc   :  { %v7752_v22 = vpop.eup %7751  ;;  %v666_v7 = vadd.f32 1.0, %v7750_v36  ;;  %v10404_v52 = vand.u32 4294901760, %v8571_v29  ;;  %v10400_v1 = vand.u32 4294901760, %v8579_v27  ;;  %v8620_v38 = vsub.f32 %v7826_v6, %v1064_v42  ;;  %v7827_v42 = vld [vmem:[#allocation2 + $0x10] sm:$0xff] }
 0x1cd   :  { %v667_v48 = vadd.f32 1.0, %v7752_v22  ;;  %983 = vmatprep.mubr.f32.mxu1 %v729_v62  ;;  %v8560_v49 = vpack.c.bf16 %v1455_v51, %v1448_v44  ;;  %10769 = vst [vmem:[#allocation26_spill] sm:$0xff] %v8583_v18  ;;  %v10399_v37 = vand.u32 4294901760, %v8583_v18  ;;  %v1468_v22 = vsub.f32 %v8575_v20, %v10403_v59 }
 0x1ce   :  { %984 = vmatmul.mubr.f32.gmra.mrb[60].mxu1 %v728_v5  ;;  %v730_v9 = vmul.f32 %v666_v7, %v474_v19  ;;  %v1461_v62 = vsub.f32 %v8571_v29, %v10404_v52  ;;  %v7824_v5 = vld [vmem:[#allocation2 + $0x8] sm:$0xff]  ;;  %10773 = vst [vmem:[#allocation30_spill] sm:$0xff] %v8620_v38 }
 0x1cf   :  { %v731_v43 = vmul.f32 %v667_v48, %v475_v12  ;;  %10765 = vst [vmem:[#allocation22_spill] sm:$0xff] %v8560_v49  ;;  %6895 = vmatprep.subr.bf16.mxu0 %v8560_v49  ;;  %7087 = vmatprep.subr.bf16.mxu1 %v8560_v49  ;;  %v1475_v48 = vsub.f32 %v8579_v27, %v10400_v1  ;;  %v1469_v40 = vand.u32 4294901760, %v1468_v22  ;;  %v10396_v22 = vand.u32 4294901760, %v8630_v17 }
 0x1d0   :  { %v1462_v32 = vand.u32 4294901760, %v1461_v62 }
 0x1d1   :  { %988 = vmatprep.mubr.f32.mxu1 %v731_v43  ;;  %v1482_v43 = vsub.f32 %v8583_v18, %v10399_v37 }
 0x1d2   :  { %989 = vmatmul.mubr.f32.gmra.mrb[62].mxu1 %v730_v9  ;;  %v7825_v9 = vld [vmem:[#allocation8 + $0x30] sm:$0xff] }
 0x1d3   :  { %v8616_v13 = vsub.f32 %v7825_v9, %v1061_v33  ;;  %v1483_v56 = vand.u32 4294901760, %v1482_v43  ;;  %v10780_v43 = vand.u32 4294901760, %v8452_v53 }
 0x1d5   :  { %10772 = vst [vmem:[#allocation29_spill] sm:$0xff] %v8616_v13  ;;  %v10398_v39 = vand.u32 4294901760, %v8616_v13  ;;  %v8667_v9 = vsub.f32 %v8452_v53, %v10780_v43 }
 0x1d7   :  { %10781 = vst [vmem:[#allocation36_spill] sm:$0xff] %v8667_v9  ;;  %v1489_v53 = vsub.f32 %v8616_v13, %v10398_v39 }
 0x1d9   :  { %v1490_v37 = vand.u32 4294901760, %v1489_v53 }
 0x229   :  { %v835_v47 = vpop.f32.mrb[0].mxu1 }
 0x22a   :  { %v836_v46 = vadd.f32 %v8567_v45, %v835_v47  ;;  %v837_v63 = vpop.f32.mrb[1].mxu1 }
 0x22c   :  { %v8588_v41 = vadd.f32 %v7823_v8, %v836_v46  ;;  %v1476_v46 = vand.u32 4294901760, %v1475_v48  ;;  %v10395_v8 = vand.u32 4294901760, %v8620_v38  ;;  %v10778_v48 = vand.u32 4294901760, %v8450_v28 }
 0x22d   :  { %v840_v16 = vpop.f32.mrb[2].mxu1 }
 0x22e   :  { %10770 = vst [vmem:[#allocation27_spill] sm:$0xff] %v8588_v41  ;;  %v8593_v36 = vand.u32 4294901760, %v8588_v41  ;;  %v841_v11 = vadd.f32 %v8567_v45, %v840_v16  ;;  %v842_v25 = vpop.f32.mrb[3].mxu1 }
 0x230   :  { %v8604_v7 = vsub.f32 %v8588_v41, %v8593_v36  ;;  %v8606_v12 = vadd.f32 %v7824_v5, %v841_v11  ;;  %v10397_v5 = vand.u32 4294901760, %v8635_v26 }
 0x231   :  { %v845_v19 = vpop.f32.mrb[4].mxu1 }
 0x232   :  { %10771 = vst [vmem:[#allocation28_spill] sm:$0xff] %v8606_v12  ;;  %v8623_v0 = vand.u32 4294901760, %v8606_v12  ;;  %v846_v44 = vadd.f32 %v8567_v45, %v845_v19  ;;  %v847_v51 = vpop.f32.mrb[5].mxu1  ;;  %v10407_v58 = vand.u32 4294901760, %v8604_v7  ;;  %v8662_v19 = vsub.f32 %v8450_v28, %v10778_v48 }
 0x233   :  { %v7828_v51 = vld [vmem:[#allocation2 + $0x18] sm:$0xff]  ;;  %v8678_v28 = vpack.c.bf16 %v1469_v40, %v1462_v32  ;;  %v1503_v40 = vsub.f32 %v8630_v17, %v10396_v22  ;;  %v10786_v22 = vand.u32 4294901760, %v8474_v2 }
 0x234   :  { %v8639_v33 = vsub.f32 %v8606_v12, %v8623_v0  ;;  %v8641_v47 = vadd.f32 %v7827_v42, %v846_v44  ;;  %v1126_v15 = vsub.f32 %v8604_v7, %v10407_v58  ;;  %10779 = vst [vmem:[#allocation35_spill] sm:$0xff] %v8662_v19  ;;  %v10793_v58 = vand.u32 4294901760, %v8500_v57 }
 0x235   :  { %v850_v63 = vpop.f32.mrb[6].mxu1  ;;  %10783 = vst [vmem:[#allocation38_spill] sm:$0xff] %v8678_v28  ;;  %v1504_v53 = vand.u32 4294901760, %v1503_v40 }
 0x236   :  { %10776 = vst [vmem:[#allocation33_spill] sm:$0xff] %v8641_v47  ;;  %v10401_v61 = vand.u32 4294901760, %v8639_v33  ;;  %v8654_v16 = vand.u32 4294901760, %v8641_v47  ;;  %v851_v11 = vadd.f32 %v8567_v45, %v850_v63  ;;  %v852_v25 = vpop.f32.mrb[7].mxu1  ;;  %v1127_v62 = vand.u32 4294901760, %v1126_v15 }
 0x237   :  { %v8680_v63 = vpack.c.bf16 %v1483_v56, %v1476_v46  ;;  %v1496_v25 = vsub.f32 %v8620_v38, %v10395_v8  ;;  %v1510_v46 = vsub.f32 %v8635_v26, %v10397_v5  ;;  %v10405_v56 = vand.u32 4294901760, %v8662_v19 }
 0x238   :  { %v1136_v6 = vsub.f32 %v8639_v33, %v10401_v61  ;;  %v8674_v44 = vsub.f32 %v8641_v47, %v8654_v16  ;;  %v8676_v42 = vadd.f32 %v7828_v51, %v851_v11  ;;  %5854 = vmatprep.mubr.f32.mxu0 %v1127_v62  ;;  %v10406_v51 = vand.u32 4294901760, %v8667_v9 }
 0x239   :  { %v855_v15 = vpop.f32.mrb[8].mxu1  ;;  %10784 = vst [vmem:[#allocation39_spill] sm:$0xff] %v8680_v63  ;;  %v8713_v5 = vsub.f32 %v8474_v2, %v10786_v22  ;;  %v1497_v1 = vand.u32 4294901760, %v1496_v25  ;;  %v10788_v61 = vand.u32 4294901760, %v8476_v4  ;;  %v1511_v25 = vand.u32 4294901760, %v1510_v46 }
 0x23a   :  { %10782 = vst [vmem:[#allocation37_spill] sm:$0xff] %v8676_v42  ;;  %v8689_v48 = vand.u32 4294901760, %v8676_v42  ;;  %v856_v11 = vadd.f32 %v8567_v45, %v855_v15  ;;  %v857_v43 = vpop.f32.mrb[9].mxu1  ;;  %v1137_v62 = vand.u32 4294901760, %v1136_v6  ;;  %v10402_v32 = vand.u32 4294901760, %v8674_v44  ;;  %v7829_v15 = vld [vmem:[#allocation2 + $0x20] sm:$0xff] }
 0x23b   :  { %10787 = vst [vmem:[#allocation41_spill] sm:$0xff] %v8713_v5  ;;  %v8754_v10 = vsub.f32 %v8500_v57, %v10793_v58 }
 0x23c   :  { %v8703_v8 = vsub.f32 %v8676_v42, %v8689_v48  ;;  %v8705_v6 = vadd.f32 %v7829_v15, %v856_v11  ;;  %5855 = vmatmul.mubr.f32.vlgmr.msra.gmra.mrb[64].mxu0 %v1137_v62  ;;  %v1146_v43 = vsub.f32 %v8674_v44, %v10402_v32  ;;  %v8719_v11 = vsub.f32 %v8476_v4, %v10788_v61 }
 0x23d   :  { %v860_v39 = vpop.f32.mrb[10].mxu1  ;;  %6897 = vmatpush3.bf16.msra.mxu0 %v8560_v49  ;;  %v8723_v62 = vpack.c.bf16 %v8575_v20, %v8571_v29  ;;  %v1517_v4 = vsub.f32 %v8662_v19, %v10405_v56  ;;  %v1524_v61 = vsub.f32 %v8667_v9, %v10406_v51  ;;  %v8748_v56 = vpack.c.bf16 %v1497_v1, %v1490_v37 }
 0x23e   :  { %10785 = vst [vmem:[#allocation40_spill] sm:$0xff] %v8705_v6  ;;  %10789 = vst [vmem:[#allocation42_spill] sm:$0xff] %v8719_v11  ;;  %v8726_v15 = vand.u32 4294901760, %v8705_v6  ;;  %v861_v2 = vadd.f32 %v8567_v45, %v860_v39  ;;  %v862_v22 = vpop.f32.mrb[11].mxu1  ;;  %v1147_v32 = vand.u32 4294901760, %v1146_v43  ;;  %v10409_v59 = vand.u32 4294901760, %v8703_v8  ;;  %6899 = vmatprep.subr.bf16.mxu0 %v8678_v28 }
 0x23f   :  { %10790 = vst [vmem:[#allocation43_spill] sm:$0xff] %v8723_v62  ;;  %v7830_v39 = vld [vmem:[#allocation2 + $0x28] sm:$0xff]  ;;  %10792 = vst [vmem:[#allocation45_spill] sm:$0xff] %v8748_v56  ;;  %v8767_v51 = vpack.c.bf16 %v1511_v25, %v1504_v53  ;;  %v1518_v57 = vand.u32 4294901760, %v1517_v4  ;;  %v1525_v58 = vand.u32 4294901760, %v1524_v61  ;;  %v10800_v25 = vand.u32 4294901760, %v8719_v11 }
 0x240   :  { %v8739_v52 = vsub.f32 %v8705_v6, %v8726_v15  ;;  %v8741_v43 = vadd.f32 %v7830_v39, %v861_v2  ;;  %5857 = vmatprep.mubr.f32.mxu0 %v1147_v32  ;;  %v1156_v40 = vsub.f32 %v8703_v8, %v10409_v59  ;;  %10794 = vst [vmem:[#allocation46_spill] sm:$0xff] %v8754_v10  ;;  %v10795_v32 = vand.u32 4294901760, %v8502_v14 }
 0x241   :  { %v865_v22 = vpop.f32.mrb[12].mxu1  ;;  %6901 = vmatpush3.bf16.msra.mxu0 %v8678_v28  ;;  %10797 = vst [vmem:[#allocation48_spill] sm:$0xff] %v8767_v51  ;;  %v1538_v4 = vsub.f32 %v8719_v11, %v10800_v25  ;;  %v8806_v6 = vpack.c.bf16 %v1525_v58, %v1518_v57  ;;  %v8835_v42 = vpack.c.bf16 %v8620_v38, %v8616_v13 }
 0x242   :  { %10791 = vst [vmem:[#allocation44_spill] sm:$0xff] %v8741_v43  ;;  %v8759_v2 = vsub.f32 %v8502_v14, %v10795_v32  ;;  %v8762_v39 = vand.u32 4294901760, %v8741_v43  ;;  %v866_v59 = vadd.f32 %v8567_v45, %v865_v22  ;;  %v867_v30 = vpop.f32.mrb[13].mxu1  ;;  %v1157_v1 = vand.u32 4294901760, %v1156_v40  ;;  %6903 = vmatprep.subr.bf16.mxu0 %v8680_v63  ;;  %v7831_v14 = vld [vmem:[#allocation2 + $0x30] sm:$0xff] }
 0x243   :  { %v10411_v37 = vand.u32 4294901760, %v8739_v52  ;;  %v10799_v40 = vand.u32 4294901760, %v8713_v5  ;;  %10803 = vst [vmem:[#allocation52_spill] sm:$0xff] %v8806_v6  ;;  %10809 = vst [vmem:[#allocation56_spill] sm:$0xff] %v8835_v42 }
 0x244   :  { %10796 = vst [vmem:[#allocation47_spill] sm:$0xff] %v8759_v2  ;;  %v8771_v46 = vsub.f32 %v8741_v43, %v8762_v39  ;;  %v8773_v32 = vadd.f32 %v7831_v14, %v866_v59  ;;  %5858 = vmatmul.mubr.f32.gmra.mrb[66].mxu0 %v1157_v1  ;;  %v8789_v1 = vpack.c.bf16 %v8583_v18, %v8579_v27  ;;  %v7832_v59 = vld [vmem:[#allocation2 + $0x38] sm:$0xff]  ;;  %v10804_v43 = vand.u32 4294901760, %v8754_v10 }
 0x245   :  { %v1166_v30 = vsub.f32 %v8739_v52, %v10411_v37  ;;  %v1531_v22 = vsub.f32 %v8713_v5, %v10799_v40  ;;  %v870_v53 = vpop.f32.mrb[14].mxu1  ;;  %6905 = vmatpush3.bf16.msra.mxu0 %v8680_v63  ;;  %v10805_v47 = vand.u32 4294901760, %v8759_v2 }
 0x246   :  { %10798 = vst [vmem:[#allocation49_spill] sm:$0xff] %v8773_v32  ;;  %10801 = vst [vmem:[#allocation50_spill] sm:$0xff] %v8789_v1  ;;  %v8792_v14 = vand.u32 4294901760, %v8773_v32  ;;  %v871_v40 = vadd.f32 %v8567_v45, %v870_v53  ;;  %v872_v37 = vpop.f32.mrb[15].mxu1  ;;  %v10421_v63 = vand.u32 4294901760, %v8771_v46  ;;  %6907 = vmatprep.subr.bf16.mxu0 %v8748_v56  ;;  %v1539_v53 = vand.u32 4294901760, %v1538_v4 }
 0x247   :  { %v1167_v28 = vand.u32 4294901760, %v1166_v30  ;;  %v1532_v30 = vand.u32 4294901760, %v1531_v22 }
 0x248   :  { %v8799_v25 = vsub.f32 %v8773_v32, %v8792_v14  ;;  %v8801_v61 = vadd.f32 %v7832_v59, %v871_v40  ;;  %v1176_v49 = vsub.f32 %v8771_v46, %v10421_v63  ;;  %v1545_v32 = vsub.f32 %v8754_v10, %v10804_v43  ;;  %v7833_v43 = vld [vmem:[#allocation2 + $0x40] sm:$0xff] }
 0x249   :  { %5860 = vmatprep.mubr.f32.mxu0 %v1167_v28  ;;  %v875_v37 = vpop.f32.mrb[16].mxu1  ;;  %6909 = vmatpush3.bf16.msra.mxu0 %v8748_v56  ;;  %v1552_v59 = vsub.f32 %v8759_v2, %v10805_v47 }
 0x24a   :  { %10802 = vst [vmem:[#allocation51_spill] sm:$0xff] %v8801_v61  ;;  %v8816_v28 = vand.u32 4294901760, %v8801_v61  ;;  %v876_v40 = vadd.f32 %v8567_v45, %v875_v37  ;;  %v877_v57 = vpop.f32.mrb[17].mxu1  ;;  %v1177_v58 = vand.u32 4294901760, %v1176_v49  ;;  %v10426_v63 = vand.u32 4294901760, %v8799_v25  ;;  %6911 = vmatprep.subr.bf16.mxu0 %v8767_v51 }
 0x24b   :  { %v8831_v49 = vpack.c.bf16 %v1539_v53, %v1532_v30  ;;  %v1546_v37 = vand.u32 4294901760, %v1545_v32  ;;  %v1553_v57 = vand.u32 4294901760, %v1552_v59  ;;  %v7834_v32 = vld [vmem:[#allocation2 + $0x48] sm:$0xff] }
 0x24c   :  { %v8823_v22 = vsub.f32 %v8801_v61, %v8816_v28  ;;  %v8825_v4 = vadd.f32 %v7833_v43, %v876_v40  ;;  %5861 = vmatmul.mubr.f32.gmra.mrb[68].mxu0 %v1177_v58  ;;  %v1186_v47 = vsub.f32 %v8799_v25, %v10426_v63 }
 0x24d   :  { %v880_v56 = vpop.f32.mrb[18].mxu1  ;;  %6913 = vmatpush3.bf16.msra.mxu0 %v8767_v51  ;;  %10808 = vst [vmem:[#allocation55_spill] sm:$0xff] %v8831_v49 }
 0x24e   :  { %10806 = vst [vmem:[#allocation53_spill] sm:$0xff] %v8823_v22  ;;  %10807 = vst [vmem:[#allocation54_spill] sm:$0xff] %v8825_v4  ;;  %v8838_v61 = vand.u32 4294901760, %v8825_v4  ;;  %v881_v40 = vadd.f32 %v8567_v45, %v880_v56  ;;  %v882_v58 = vpop.f32.mrb[19].mxu1  ;;  %v1187_v43 = vand.u32 4294901760, %v1186_v47  ;;  %v10431_v63 = vand.u32 4294901760, %v8823_v22  ;;  %6915 = vmatprep.subr.bf16.mxu0 %v8806_v6 }
 0x24f   :  { %v8853_v56 = vpack.c.bf16 %v1553_v57, %v1546_v37 }
 0x250   :  { %v8845_v30 = vsub.f32 %v8825_v4, %v8838_v61  ;;  %v8847_v53 = vadd.f32 %v7834_v32, %v881_v40  ;;  %5863 = vmatprep.mubr.f32.mxu0 %v1187_v43  ;;  %v1196_v59 = vsub.f32 %v8823_v22, %v10431_v63  ;;  %v7835_v32 = vld [vmem:[#allocation2 + $0x50] sm:$0xff] }
 0x251   :  { %v885_v51 = vpop.f32.mrb[20].mxu1  ;;  %6917 = vmatpush3.bf16.msra.mxu0 %v8806_v6  ;;  %10812 = vst [vmem:[#allocation59_spill] sm:$0xff] %v8853_v56 }
 0x252   :  { %10810 = vst [vmem:[#allocation57_spill] sm:$0xff] %v8845_v30  ;;  %10811 = vst [vmem:[#allocation58_spill] sm:$0xff] %v8847_v53  ;;  %v8856_v47 = vand.u32 4294901760, %v8847_v53  ;;  %v886_v58 = vadd.f32 %v8567_v45, %v885_v51  ;;  %v887_v4 = vpop.f32.mrb[21].mxu1  ;;  %v1197_v41 = vand.u32 4294901760, %v1196_v59  ;;  %v10434_v40 = vand.u32 4294901760, %v8845_v30  ;;  %6919 = vmatprep.subr.bf16.mxu0 %v8831_v49 }
 0x253   :  { %v8873_v51 = vpack.c.bf16 %v8635_v26, %v8630_v17 }
 0x254   :  { %v8863_v43 = vsub.f32 %v8847_v53, %v8856_v47  ;;  %v8865_v63 = vadd.f32 %v7835_v32, %v886_v58  ;;  %5864 = vmatmul.mubr.f32.gmra.mrb[70].mxu0 %v1197_v41  ;;  %v1206_v37 = vsub.f32 %v8845_v30, %v10434_v40  ;;  %v7836_v40 = vld [vmem:[#allocation2 + $0x58] sm:$0xff] }
 0x255   :  { %v890_v57 = vpop.f32.mrb[22].mxu1  ;;  %6921 = vmatpush3.bf16.msra.mxu0 %v8831_v49  ;;  %10815 = vst [vmem:[#allocation62_spill] sm:$0xff] %v8873_v51 }
 0x256   :  { %10813 = vst [vmem:[#allocation60_spill] sm:$0xff] %v8863_v43  ;;  %10814 = vst [vmem:[#allocation61_spill] sm:$0xff] %v8865_v63  ;;  %v8876_v4 = vand.u32 4294901760, %v8865_v63  ;;  %v891_v59 = vadd.f32 %v8567_v45, %v890_v57  ;;  %v892_v6 = vpop.f32.mrb[23].mxu1  ;;  %v1207_v58 = vand.u32 4294901760, %v1206_v37  ;;  %v10441_v41 = vand.u32 4294901760, %v8863_v43  ;;  %6923 = vmatprep.subr.bf16.mxu0 %v8853_v56 }
 0x258   :  { %v8883_v32 = vsub.f32 %v8865_v63, %v8876_v4  ;;  %v8885_v49 = vadd.f32 %v7836_v40, %v891_v59  ;;  %5866 = vmatprep.mubr.f32.mxu0 %v1207_v58  ;;  %v1216_v53 = vsub.f32 %v8863_v43, %v10441_v41  ;;  %v7837_v59 = vld [vmem:[#allocation2 + $0x60] sm:$0xff] }
 0x259   :  { %v895_v12 = vpop.f32.mrb[24].mxu1  ;;  %6925 = vmatpush3.bf16.msra.mxu0 %v8853_v56 }
 0x25a   :  { %10816 = vst [vmem:[#allocation63_spill] sm:$0xff] %v8883_v32  ;;  %10817 = vst [vmem:[#allocation64_spill] sm:$0xff] %v8885_v49  ;;  %v8892_v6 = vand.u32 4294901760, %v8885_v49  ;;  %v896_v37 = vadd.f32 %v8567_v45, %v895_v12  ;;  %v897_v57 = vpop.f32.mrb[25].mxu1  ;;  %v1217_v26 = vand.u32 4294901760, %v1216_v53  ;;  %v10446_v63 = vand.u32 4294901760, %v8883_v32  ;;  %6927 = vmatprep.subr.bf16.mxu0 %v8650_v23 }
 0x25b   :  { %v8908_v12 = vpack.c.bf16 %v8667_v9, %v8662_v19 }
 0x25c   :  { %v8899_v40 = vsub.f32 %v8885_v49, %v8892_v6  ;;  %v8901_v58 = vadd.f32 %v7837_v59, %v896_v37  ;;  %5867 = vmatmul.mubr.f32.gmra.mrb[72].mxu0 %v1217_v26  ;;  %v1226_v41 = vsub.f32 %v8883_v32, %v10446_v63  ;;  %v7838_v59 = vld [vmem:[#allocation2 + $0x68] sm:$0xff] }
 0x25d   :  { %v900_v56 = vpop.f32.mrb[26].mxu1  ;;  %10820 = vst [vmem:[#allocation67_spill] sm:$0xff] %v8908_v12 }
 0x25e   :  { %10818 = vst [vmem:[#allocation65_spill] sm:$0xff] %v8899_v40  ;;  %10819 = vst [vmem:[#allocation66_spill] sm:$0xff] %v8901_v58  ;;  %v8911_v53 = vand.u32 4294901760, %v8901_v58  ;;  %v901_v57 = vadd.f32 %v8567_v45, %v900_v56  ;;  %v902_v49 = vpop.f32.mrb[27].mxu1  ;;  %v1227_v17 = vand.u32 4294901760, %v1226_v41  ;;  %v10452_v37 = vand.u32 4294901760, %v8899_v40 }
 0x260   :  { %v8917_v26 = vsub.f32 %v8901_v58, %v8911_v53  ;;  %v8919_v63 = vadd.f32 %v7838_v59, %v901_v57  ;;  %5869 = vmatprep.mubr.f32.mxu0 %v1227_v17  ;;  %v1236_v9 = vsub.f32 %v8899_v40, %v10452_v37  ;;  %v7839_v57 = vld [vmem:[#allocation2 + $0x70] sm:$0xff] }
 0x261   :  { %v905_v19 = vpop.f32.mrb[28].mxu1 }
 0x262   :  { %10821 = vst [vmem:[#allocation68_spill] sm:$0xff] %v8917_v26  ;;  %10822 = vst [vmem:[#allocation69_spill] sm:$0xff] %v8919_v63  ;;  %v8925_v38 = vand.u32 4294901760, %v8919_v63  ;;  %v906_v49 = vadd.f32 %v8567_v45, %v905_v19  ;;  %v907_v56 = vpop.f32.mrb[29].mxu1  ;;  %v1237_v41 = vand.u32 4294901760, %v1236_v9  ;;  %v10455_v13 = vand.u32 4294901760, %v8917_v26 }
 0x263   :  { %v8940_v19 = vpack.c.bf16 %v8719_v11, %v8713_v5 }
 0x264   :  { %10823 = vst [vmem:[#allocation70_spill] sm:$0xff] %v8925_v38  ;;  %v8931_v58 = vsub.f32 %v8919_v63, %v8925_v38  ;;  %v8933_v17 = vadd.f32 %v7839_v57, %v906_v49  ;;  %5870 = vmatmul.mubr.f32.gmra.mrb[74].mxu0 %v1237_v41  ;;  %v1246_v59 = vsub.f32 %v8917_v26, %v10455_v13  ;;  %v7840_v57 = vld [vmem:[#allocation2 + $0x78] sm:$0xff] }
 0x265   :  { %v910_v37 = vpop.f32.mrb[30].mxu1  ;;  %10826 = vst [vmem:[#allocation73_spill] sm:$0xff] %v8940_v19 }
 0x266   :  { %10824 = vst [vmem:[#allocation71_spill] sm:$0xff] %v8931_v58  ;;  %10825 = vst [vmem:[#allocation72_spill] sm:$0xff] %v8933_v17  ;;  %v8943_v9 = vand.u32 4294901760, %v8933_v17  ;;  %v911_v56 = vadd.f32 %v8567_v45, %v910_v37  ;;  %v912_v63 = vpop.f32.mrb[31].mxu1  ;;  %v1247_v18 = vand.u32 4294901760, %v1246_v59  ;;  %v10461_v49 = vand.u32 4294901760, %v8931_v58 }
 0x268   :  { %10827 = vst [vmem:[#allocation74_spill] sm:$0xff] %v8943_v9  ;;  %v8949_v41 = vsub.f32 %v8933_v17, %v8943_v9  ;;  %v8951_v13 = vadd.f32 %v7840_v57, %v911_v56  ;;  %5872 = vmatprep.mubr.f32.mxu0 %v1247_v18  ;;  %v1256_v11 = vsub.f32 %v8931_v58, %v10461_v49  ;;  %v7841_v56 = vld [vmem:[#allocation2 + $0x80] sm:$0xff] }
 0x269   :  { %v915_v5 = vpop.f32.mrb[32].mxu1 }
 0x26a   :  { %10828 = vst [vmem:[#allocation75_spill] sm:$0xff] %v8949_v41  ;;  %10829 = vst [vmem:[#allocation76_spill] sm:$0xff] %v8951_v13  ;;  %v8957_v27 = vand.u32 4294901760, %v8951_v13  ;;  %v916_v63 = vadd.f32 %v8567_v45, %v915_v5  ;;  %v917_v37 = vpop.f32.mrb[33].mxu1  ;;  %v1257_v59 = vand.u32 4294901760, %v1256_v11  ;;  %v10464_v20 = vand.u32 4294901760, %v8949_v41 }
 0x26b   :  { %v8972_v5 = vpack.c.bf16 %v8759_v2, %v8754_v10 }
 0x26c   :  { %10830 = vst [vmem:[#allocation77_spill] sm:$0xff] %v8957_v27  ;;  %v8963_v17 = vsub.f32 %v8951_v13, %v8957_v27  ;;  %v8965_v18 = vadd.f32 %v7841_v56, %v916_v63  ;;  %5873 = vmatmul.mubr.f32.gmra.mrb[76].mxu0 %v1257_v59  ;;  %v1266_v57 = vsub.f32 %v8949_v41, %v10464_v20  ;;  %v7842_v56 = vld [vmem:[#allocation2 + $0x88] sm:$0xff] }
 0x26d   :  { %v920_v49 = vpop.f32.mrb[34].mxu1  ;;  %10833 = vst [vmem:[#allocation80_spill] sm:$0xff] %v8972_v5 }
 0x26e   :  { %10831 = vst [vmem:[#allocation78_spill] sm:$0xff] %v8963_v17  ;;  %10832 = vst [vmem:[#allocation79_spill] sm:$0xff] %v8965_v18  ;;  %v8975_v11 = vand.u32 4294901760, %v8965_v18  ;;  %v921_v37 = vadd.f32 %v8567_v45, %v920_v49  ;;  %v922_v13 = vpop.f32.mrb[35].mxu1  ;;  %v1267_v29 = vand.u32 4294901760, %v1266_v57  ;;  %v10470_v63 = vand.u32 4294901760, %v8963_v17 }
 0x270   :  { %10834 = vst [vmem:[#allocation81_spill] sm:$0xff] %v8975_v11  ;;  %v8981_v59 = vsub.f32 %v8965_v18, %v8975_v11  ;;  %v8983_v20 = vadd.f32 %v7842_v56, %v921_v37  ;;  %5875 = vmatprep.mubr.f32.mxu0 %v1267_v29  ;;  %v1276_v2 = vsub.f32 %v8963_v17, %v10470_v63  ;;  %v7843_v37 = vld [vmem:[#allocation2 + $0x90] sm:$0xff] }
 0x271   :  { %v925_v10 = vpop.f32.mrb[36].mxu1 }
 0x272   :  { %10835 = vst [vmem:[#allocation82_spill] sm:$0xff] %v8981_v59  ;;  %10836 = vst [vmem:[#allocation83_spill] sm:$0xff] %v8983_v20  ;;  %v8989_v50 = vand.u32 4294901760, %v8983_v20  ;;  %v926_v13 = vadd.f32 %v8567_v45, %v925_v10  ;;  %v927_v49 = vpop.f32.mrb[37].mxu1  ;;  %v1277_v57 = vand.u32 4294901760, %v1276_v2  ;;  %v10476_v55 = vand.u32 4294901760, %v8981_v59 }
 0x274   :  { %10837 = vst [vmem:[#allocation84_spill] sm:$0xff] %v8989_v50  ;;  %v8995_v18 = vsub.f32 %v8983_v20, %v8989_v50  ;;  %v8997_v29 = vadd.f32 %v7843_v37, %v926_v13  ;;  %5876 = vmatmul.mubr.f32.gmra.mrb[78].mxu0 %v1277_v57  ;;  %v1286_v56 = vsub.f32 %v8981_v59, %v10476_v55  ;;  %v7844_v13 = vld [vmem:[#allocation2 + $0x98] sm:$0xff] }
 0x275   :  { %v930_v63 = vpop.f32.mrb[38].mxu1 }
 0x276   :  { %10838 = vst [vmem:[#allocation85_spill] sm:$0xff] %v8995_v18  ;;  %10839 = vst [vmem:[#allocation86_spill] sm:$0xff] %v8997_v29  ;;  %v9003_v17 = vand.u32 4294901760, %v8997_v29  ;;  %v931_v10 = vadd.f32 %v8567_v45, %v930_v63  ;;  %v932_v2 = vpop.f32.mrb[39].mxu1  ;;  %v1287_v49 = vand.u32 4294901760, %v1286_v56  ;;  %v10482_v34 = vand.u32 4294901760, %v8995_v18 }
 0x278   :  { %10840 = vst [vmem:[#allocation87_spill] sm:$0xff] %v9003_v17  ;;  %v9009_v20 = vsub.f32 %v8997_v29, %v9003_v17  ;;  %v9011_v57 = vadd.f32 %v7844_v13, %v931_v10  ;;  %5878 = vmatprep.mubr.f32.mxu0 %v1287_v49  ;;  %v1296_v37 = vsub.f32 %v8995_v18, %v10482_v34  ;;  %v7845_v10 = vld [vmem:[#allocation2 + $0xa0] sm:$0xff] }
 0x279   :  { %v935_v55 = vpop.f32.mrb[40].mxu1 }
 0x27a   :  { %10841 = vst [vmem:[#allocation88_spill] sm:$0xff] %v9009_v20  ;;  %10842 = vst [vmem:[#allocation89_spill] sm:$0xff] %v9011_v57  ;;  %v9017_v59 = vand.u32 4294901760, %v9011_v57  ;;  %v936_v63 = vadd.f32 %v8567_v45, %v935_v55  ;;  %v937_v56 = vpop.f32.mrb[41].mxu1  ;;  %v1297_v2 = vand.u32 4294901760, %v1296_v37  ;;  %v10488_v41 = vand.u32 4294901760, %v9009_v20 }
 0x27c   :  { %10843 = vst [vmem:[#allocation90_spill] sm:$0xff] %v9017_v59  ;;  %v9023_v29 = vsub.f32 %v9011_v57, %v9017_v59  ;;  %v9025_v49 = vadd.f32 %v7845_v10, %v936_v63  ;;  %5879 = vmatmul.mubr.f32.gmra.mrb[80].mxu0 %v1297_v2  ;;  %v1306_v13 = vsub.f32 %v9009_v20, %v10488_v41  ;;  %v7846_v63 = vld [vmem:[#allocation2 + $0xa8] sm:$0xff] }
 0x27d   :  { %v940_v34 = vpop.f32.mrb[42].mxu1 }
 0x27e   :  { %10844 = vst [vmem:[#allocation91_spill] sm:$0xff] %v9023_v29  ;;  %10845 = vst [vmem:[#allocation92_spill] sm:$0xff] %v9025_v49  ;;  %v9031_v18 = vand.u32 4294901760, %v9025_v49  ;;  %v941_v55 = vadd.f32 %v8567_v45, %v940_v34  ;;  %v942_v37 = vpop.f32.mrb[43].mxu1  ;;  %v1307_v56 = vand.u32 4294901760, %v1306_v13  ;;  %v10494_v58 = vand.u32 4294901760, %v9023_v29 }
 0x280   :  { %10846 = vst [vmem:[#allocation93_spill] sm:$0xff] %v9031_v18  ;;  %v9037_v57 = vsub.f32 %v9025_v49, %v9031_v18  ;;  %v9039_v2 = vadd.f32 %v7846_v63, %v941_v55  ;;  %5881 = vmatprep.mubr.f32.mxu0 %v1307_v56  ;;  %v1316_v10 = vsub.f32 %v9023_v29, %v10494_v58  ;;  %v7847_v55 = vld [vmem:[#allocation2 + $0xb0] sm:$0xff] }
 0x281   :  { %v945_v41 = vpop.f32.mrb[44].mxu1 }
 0x282   :  { %10847 = vst [vmem:[#allocation94_spill] sm:$0xff] %v9037_v57  ;;  %10848 = vst [vmem:[#allocation95_spill] sm:$0xff] %v9039_v2  ;;  %v9045_v20 = vand.u32 4294901760, %v9039_v2  ;;  %v946_v34 = vadd.f32 %v8567_v45, %v945_v41  ;;  %v947_v13 = vpop.f32.mrb[45].mxu1  ;;  %v1317_v37 = vand.u32 4294901760, %v1316_v10  ;;  %v10500_v35 = vand.u32 4294901760, %v9037_v57 }
 0x284   :  { %10849 = vst [vmem:[#allocation96_spill] sm:$0xff] %v9045_v20  ;;  %v9051_v49 = vsub.f32 %v9039_v2, %v9045_v20  ;;  %v9053_v56 = vadd.f32 %v7847_v55, %v946_v34  ;;  %5882 = vmatmul.mubr.f32.gmra.mrb[82].mxu0 %v1317_v37  ;;  %v1326_v63 = vsub.f32 %v9037_v57, %v10500_v35  ;;  %v7848_v34 = vld [vmem:[#allocation2 + $0xb8] sm:$0xff] }
 0x285   :  { %v950_v58 = vpop.f32.mrb[46].mxu1 }
 0x286   :  { %10850 = vst [vmem:[#allocation97_spill] sm:$0xff] %v9051_v49  ;;  %10851 = vst [vmem:[#allocation98_spill] sm:$0xff] %v9053_v56  ;;  %v9059_v29 = vand.u32 4294901760, %v9053_v56  ;;  %v951_v41 = vadd.f32 %v8567_v45, %v950_v58  ;;  %v952_v10 = vpop.f32.mrb[47].mxu1  ;;  %v1327_v13 = vand.u32 4294901760, %v1326_v63  ;;  %v10506_v26 = vand.u32 4294901760, %v9051_v49 }
 0x288   :  { %10852 = vst [vmem:[#allocation99_spill] sm:$0xff] %v9059_v29  ;;  %v9065_v2 = vsub.f32 %v9053_v56, %v9059_v29  ;;  %v9067_v37 = vadd.f32 %v7848_v34, %v951_v41  ;;  %5884 = vmatprep.mubr.f32.mxu0 %v1327_v13  ;;  %v1336_v55 = vsub.f32 %v9051_v49, %v10506_v26  ;;  %v7849_v41 = vld [vmem:[#allocation2 + $0xc0] sm:$0xff] }
 0x289   :  { %v955_v35 = vpop.f32.mrb[48].mxu1 }
 0x28a   :  { %10853 = vst [vmem:[#allocation100_spill] sm:$0xff] %v9065_v2  ;;  %10854 = vst [vmem:[#allocation101_spill] sm:$0xff] %v9067_v37  ;;  %v9073_v57 = vand.u32 4294901760, %v9067_v37  ;;  %v956_v58 = vadd.f32 %v8567_v45, %v955_v35  ;;  %v957_v63 = vpop.f32.mrb[49].mxu1  ;;  %v1337_v10 = vand.u32 4294901760, %v1336_v55  ;;  %v10512_v40 = vand.u32 4294901760, %v9065_v2 }
 0x28c   :  { %10855 = vst [vmem:[#allocation102_spill] sm:$0xff] %v9073_v57  ;;  %v9079_v56 = vsub.f32 %v9067_v37, %v9073_v57  ;;  %v9081_v13 = vadd.f32 %v7849_v41, %v956_v58  ;;  %5885 = vmatmul.mubr.f32.gmra.mrb[84].mxu0 %v1337_v10  ;;  %v1346_v34 = vsub.f32 %v9065_v2, %v10512_v40  ;;  %v7850_v58 = vld [vmem:[#allocation2 + $0xc8] sm:$0xff] }
 0x28d   :  { %v960_v26 = vpop.f32.mrb[50].mxu1 }
 0x28e   :  { %10856 = vst [vmem:[#allocation103_spill] sm:$0xff] %v9079_v56  ;;  %10857 = vst [vmem:[#allocation104_spill] sm:$0xff] %v9081_v13  ;;  %v9087_v49 = vand.u32 4294901760, %v9081_v13  ;;  %v961_v35 = vadd.f32 %v8567_v45, %v960_v26  ;;  %v962_v55 = vpop.f32.mrb[51].mxu1  ;;  %v1347_v63 = vand.u32 4294901760, %v1346_v34  ;;  %v10518_v60 = vand.u32 4294901760, %v9079_v56 }
 0x290   :  { %10858 = vst [vmem:[#allocation105_spill] sm:$0xff] %v9087_v49  ;;  %v9093_v37 = vsub.f32 %v9081_v13, %v9087_v49  ;;  %v9095_v10 = vadd.f32 %v7850_v58, %v961_v35  ;;  %5887 = vmatprep.mubr.f32.mxu0 %v1347_v63  ;;  %v1356_v41 = vsub.f32 %v9079_v56, %v10518_v60  ;;  %v7851_v35 = vld [vmem:[#allocation2 + $0xd0] sm:$0xff] }
 0x291   :  { %v965_v40 = vpop.f32.mrb[52].mxu1 }
 0x292   :  { %10859 = vst [vmem:[#allocation106_spill] sm:$0xff] %v9093_v37  ;;  %10860 = vst [vmem:[#allocation107_spill] sm:$0xff] %v9095_v10  ;;  %v9101_v2 = vand.u32 4294901760, %v9095_v10  ;;  %v966_v26 = vadd.f32 %v8567_v45, %v965_v40  ;;  %v967_v34 = vpop.f32.mrb[53].mxu1  ;;  %v1357_v55 = vand.u32 4294901760, %v1356_v41  ;;  %v10524_v32 = vand.u32 4294901760, %v9093_v37 }
 0x294   :  { %10861 = vst [vmem:[#allocation108_spill] sm:$0xff] %v9101_v2  ;;  %v9107_v13 = vsub.f32 %v9095_v10, %v9101_v2  ;;  %v9109_v63 = vadd.f32 %v7851_v35, %v966_v26  ;;  %5888 = vmatmul.mubr.f32.gmra.mrb[86].mxu0 %v1357_v55  ;;  %v1366_v58 = vsub.f32 %v9093_v37, %v10524_v32  ;;  %v7852_v26 = vld [vmem:[#allocation2 + $0xd8] sm:$0xff] }
 0x295   :  { %v970_v60 = vpop.f32.mrb[54].mxu1 }
 0x296   :  { %10862 = vst [vmem:[#allocation109_spill] sm:$0xff] %v9107_v13  ;;  %10863 = vst [vmem:[#allocation110_spill] sm:$0xff] %v9109_v63  ;;  %v9115_v56 = vand.u32 4294901760, %v9109_v63  ;;  %v971_v40 = vadd.f32 %v8567_v45, %v970_v60  ;;  %v972_v41 = vpop.f32.mrb[55].mxu1  ;;  %v1367_v34 = vand.u32 4294901760, %v1366_v58  ;;  %v10530_v43 = vand.u32 4294901760, %v9107_v13 }
 0x298   :  { %10864 = vst [vmem:[#allocation111_spill] sm:$0xff] %v9115_v56  ;;  %v9121_v10 = vsub.f32 %v9109_v63, %v9115_v56  ;;  %v9123_v55 = vadd.f32 %v7852_v26, %v971_v40  ;;  %5890 = vmatprep.mubr.f32.mxu0 %v1367_v34  ;;  %v1376_v35 = vsub.f32 %v9107_v13, %v10530_v43  ;;  %v7853_v40 = vld [vmem:[#allocation2 + $0xe0] sm:$0xff] }
 0x299   :  { %v975_v32 = vpop.f32.mrb[56].mxu1 }
 0x29a   :  { %10865 = vst [vmem:[#allocation112_spill] sm:$0xff] %v9121_v10  ;;  %10866 = vst [vmem:[#allocation113_spill] sm:$0xff] %v9123_v55  ;;  %v9129_v37 = vand.u32 4294901760, %v9123_v55  ;;  %v976_v60 = vadd.f32 %v8567_v45, %v975_v32  ;;  %v977_v58 = vpop.f32.mrb[57].mxu1  ;;  %v1377_v41 = vand.u32 4294901760, %v1376_v35  ;;  %v10536_v24 = vand.u32 4294901760, %v9121_v10 }
 0x29c   :  { %10867 = vst [vmem:[#allocation114_spill] sm:$0xff] %v9129_v37  ;;  %v9135_v63 = vsub.f32 %v9123_v55, %v9129_v37  ;;  %v9137_v34 = vadd.f32 %v7853_v40, %v976_v60  ;;  %5891 = vmatmul.mubr.f32.gmra.mrb[88].mxu0 %v1377_v41  ;;  %v1386_v26 = vsub.f32 %v9121_v10, %v10536_v24  ;;  %v7854_v60 = vld [vmem:[#allocation2 + $0xe8] sm:$0xff] }
 0x29d   :  { %v980_v43 = vpop.f32.mrb[58].mxu1 }
 0x29e   :  { %10868 = vst [vmem:[#allocation115_spill] sm:$0xff] %v9135_v63  ;;  %10869 = vst [vmem:[#allocation116_spill] sm:$0xff] %v9137_v34  ;;  %v9143_v13 = vand.u32 4294901760, %v9137_v34  ;;  %v981_v32 = vadd.f32 %v8567_v45, %v980_v43  ;;  %v982_v35 = vpop.f32.mrb[59].mxu1  ;;  %v1387_v58 = vand.u32 4294901760, %v1386_v26  ;;  %v10542_v30 = vand.u32 4294901760, %v9135_v63 }
 0x2a0   :  { %10870 = vst [vmem:[#allocation117_spill] sm:$0xff] %v9143_v13  ;;  %v9149_v55 = vsub.f32 %v9137_v34, %v9143_v13  ;;  %v9151_v41 = vadd.f32 %v7854_v60, %v981_v32  ;;  %5893 = vmatprep.mubr.f32.mxu0 %v1387_v58  ;;  %v1396_v40 = vsub.f32 %v9135_v63, %v10542_v30  ;;  %v7855_v32 = vld [vmem:[#allocation2 + $0xf0] sm:$0xff] }
 0x2a1   :  { %v985_v24 = vpop.f32.mrb[60].mxu1 }
 0x2a2   :  { %10871 = vst [vmem:[#allocation118_spill] sm:$0xff] %v9151_v41  ;;  %v9157_v10 = vand.u32 4294901760, %v9151_v41  ;;  %v986_v43 = vadd.f32 %v8567_v45, %v985_v24  ;;  %v987_v26 = vpop.f32.mrb[61].mxu1  ;;  %v1397_v35 = vand.u32 4294901760, %v1396_v40  ;;  %v10548_v22 = vand.u32 4294901760, %v9149_v55 }
 0x2a4   :  { %10872 = vst [vmem:[#allocation119_spill] sm:$0xff] %v9157_v10  ;;  %v9163_v34 = vsub.f32 %v9151_v41, %v9157_v10  ;;  %v9165_v58 = vadd.f32 %v7855_v32, %v986_v43  ;;  %5894 = vmatmul.mubr.f32.gmra.mrb[90].mxu0 %v1397_v35  ;;  %v1406_v60 = vsub.f32 %v9149_v55, %v10548_v22  ;;  %v7856_v43 = vld [vmem:[#allocation2 + $0xf8] sm:$0xff] }
 0x2a5   :  { %v990_v30 = vpop.f32.mrb[62].mxu1 }
 0x2a6   :  { %10873 = vst [vmem:[#allocation120_spill] sm:$0xff] %v9165_v58  ;;  %v9171_v63 = vand.u32 4294901760, %v9165_v58  ;;  %v991_v24 = vadd.f32 %v8567_v45, %v990_v30  ;;  %v992_v40 = vpop.f32.mrb[63].mxu1  ;;  %v1407_v26 = vand.u32 4294901760, %v1406_v60  ;;  %v10551_v54 = vand.u32 4294901760, %v9163_v34 }
 0x2a8   :  { %10874 = vst [vmem:[#allocation121_spill] sm:$0xff] %v9171_v63  ;;  %v9177_v41 = vsub.f32 %v9165_v58, %v9171_v63  ;;  %v9179_v35 = vadd.f32 %v7856_v43, %v991_v24  ;;  %5896 = vmatprep.mubr.f32.mxu0 %v1407_v26  ;;  %v1416_v32 = vsub.f32 %v9163_v34, %v10551_v54  ;;  %v10884_v54 = vld [vmem:[#allocation65_spill] sm:$0xff] }
 0x2aa   :  { %10875 = vst [vmem:[#allocation122_spill] sm:$0xff] %v9179_v35  ;;  %v9185_v22 = vand.u32 4294901760, %v9179_v35  ;;  %v1417_v45 = vand.u32 4294901760, %v1416_v32  ;;  %v10550_v30 = vand.u32 4294901760, %v9177_v41 }
 0x2ac   :  { %10876 = vst [vmem:[#allocation123_spill] sm:$0xff] %v9185_v22  ;;  %v9190_v60 = vsub.f32 %v9179_v35, %v9185_v22  ;;  %5897 = vmatmul.mubr.f32.gmra.mrb[92].mxu0 %v1417_v45  ;;  %v1426_v24 = vsub.f32 %v9177_v41, %v10550_v30  ;;  %v10877_v45 = vld [vmem:[#allocation15_spill] sm:$0xff]  ;;  %v10883_v30 = vld [vmem:[#allocation17_spill] sm:$0xff] }
 0x2ae   :  { %v1427_v40 = vand.u32 4294901760, %v1426_v24  ;;  %v10549_v26 = vand.u32 4294901760, %v9190_v60  ;;  %v10878_v24 = vld [vmem:[#allocation53_spill] sm:$0xff] }
 0x2b0   :  { %5899 = vmatprep.mubr.f32.mxu0 %v1427_v40  ;;  %v1436_v43 = vsub.f32 %v9190_v60, %v10549_v26  ;;  %v10879_v40 = vld [vmem:[#allocation57_spill] sm:$0xff]  ;;  %v10882_v26 = vld [vmem:[#allocation63_spill] sm:$0xff] }
 0x2b2   :  { %v1437_v32 = vand.u32 4294901760, %v1436_v43  ;;  %v10880_v43 = vld [vmem:[#allocation16_spill] sm:$0xff] }
 0x2b4   :  { %5900 = vmatmul.mubr.f32.gmra.mrb[94].mxu0 %v1437_v32  ;;  %v10881_v32 = vld [vmem:[#allocation60_spill] sm:$0xff] }
 0x2b5   :  { %5934 = vmatprep.mubr.f32.mxu0 %v8593_v36 }
 0x2b8   :  { %5935 = vmatmul.mubr.f32.vlgmr.msra.gmra.mrb[64].mxu0 %v8623_v0 }
 0x2b9   :  { %6929 = vmatpush3.bf16.msra.mxu0 %v8650_v23  ;;  %5937 = vmatprep.mubr.f32.mxu0 %v8654_v16  ;;  %v10892_v23 = vld [vmem:[#allocation21_spill] sm:$0xff] }
 0x2ba   :  { %6931 = vmatprep.subr.bf16.mxu0 %v8723_v62  ;;  %v10893_v58 = vand.u32 4294901760, %v10892_v23  ;;  %v10902_v23 = vld [vmem:[#allocation100_spill] sm:$0xff] }
 0x2bc   :  { %5938 = vmatmul.mubr.f32.gmra.mrb[66].mxu0 %v8689_v48 }
 0x2bd   :  { %5940 = vmatprep.mubr.f32.mxu0 %v8726_v15  ;;  %6933 = vmatpush3.bf16.msra.mxu0 %v8723_v62 }
 0x2be   :  { %6935 = vmatprep.subr.bf16.mxu0 %v8789_v1 }
 0x2c0   :  { %5941 = vmatmul.mubr.f32.gmra.mrb[68].mxu0 %v8762_v39 }
 0x2c1   :  { %5943 = vmatprep.mubr.f32.mxu0 %v8792_v14  ;;  %6937 = vmatpush3.bf16.msra.mxu0 %v8789_v1  ;;  %v10890_v1 = vld [vmem:[#allocation20_spill] sm:$0xff] }
 0x2c2   :  { %6939 = vmatprep.subr.bf16.mxu0 %v8835_v42  ;;  %v10891_v62 = vand.u32 4294901760, %v10890_v1  ;;  %v10901_v1 = vld [vmem:[#allocation97_spill] sm:$0xff] }
 0x2c4   :  { %5944 = vmatmul.mubr.f32.gmra.mrb[70].mxu0 %v8816_v28  ;;  %v9280_v35 = vpack.c.bf16 %v10893_v58, %v10891_v62  ;;  %v10903_v62 = vld [vmem:[#allocation103_spill] sm:$0xff]  ;;  %v10904_v58 = vld [vmem:[#allocation106_spill] sm:$0xff] }
 0x2c5   :  { %5946 = vmatprep.mubr.f32.mxu0 %v8838_v61  ;;  %6941 = vmatpush3.bf16.msra.mxu0 %v8835_v42  ;;  %v10889_v42 = vld [vmem:[#allocation19_spill] sm:$0xff] }
 0x2c6   :  { %6943 = vmatprep.subr.bf16.mxu0 %v8873_v51  ;;  %10894 = vst [vmem:[#allocation15_spill] sm:$0xff] %v9280_v35 }
 0x2c8   :  { %5947 = vmatmul.mubr.f32.gmra.mrb[72].mxu0 %v8856_v47 }
 0x2c9   :  { %5949 = vmatprep.mubr.f32.mxu0 %v8876_v4  ;;  %6945 = vmatpush3.bf16.msra.mxu0 %v8873_v51  ;;  %v10888_v51 = vld [vmem:[#allocation75_spill] sm:$0xff] }
 0x2ca   :  { %6947 = vmatprep.subr.bf16.mxu0 %v8908_v12 }
 0x2cc   :  { %5950 = vmatmul.mubr.f32.gmra.mrb[74].mxu0 %v8892_v6 }
 0x2cd   :  { %5952 = vmatprep.mubr.f32.mxu0 %v8911_v53  ;;  %6949 = vmatpush3.bf16.msra.mxu0 %v8908_v12  ;;  %v10887_v12 = vld [vmem:[#allocation71_spill] sm:$0xff] }
 0x2ce   :  { %6951 = vmatprep.subr.bf16.mxu0 %v8940_v19 }
 0x2d0   :  { %5953 = vmatmul.mubr.f32.gmra.mrb[76].mxu0 %v8925_v38 }
 0x2d1   :  { %5955 = vmatprep.mubr.f32.mxu0 %v8943_v9  ;;  %6953 = vmatpush3.bf16.msra.mxu0 %v8940_v19  ;;  %v10886_v19 = vld [vmem:[#allocation18_spill] sm:$0xff] }
 0x2d2   :  { %6955 = vmatprep.subr.bf16.mxu0 %v8972_v5 }
 0x2d4   :  { %5956 = vmatmul.mubr.f32.gmra.mrb[78].mxu0 %v8957_v27  ;;  %v10915_v27 = vand.u32 4294901760, %v8674_v44 }
 0x2d5   :  { %5958 = vmatprep.mubr.f32.mxu0 %v8975_v11  ;;  %6957 = vmatpush3.bf16.msra.mxu0 %v8972_v5  ;;  %v10885_v5 = vld [vmem:[#allocation68_spill] sm:$0xff]  ;;  %v10914_v11 = vand.u32 4294901760, %v8639_v33 }
 0x2d6   :  { %6959 = vmatprep.subr.bf16.mxu0 %v8188_v3 }
 0x2d8   :  { %5959 = vmatmul.mubr.f32.gmra.mrb[80].mxu0 %v8989_v50 }
 0x2d9   :  { %5961 = vmatprep.mubr.f32.mxu0 %v9003_v17 }
 0x2dc   :  { %5962 = vmatmul.mubr.f32.gmra.mrb[82].mxu0 %v9017_v59  ;;  %v10911_v59 = vld [vmem:[#allocation24_spill] sm:$0xff] }
 0x2dd   :  { %5964 = vmatprep.mubr.f32.mxu0 %v9031_v18  ;;  %v10912_v17 = vand.u32 4294901760, %v10911_v59  ;;  %v10932_v59 = vld [vmem:[#allocation32_spill] sm:$0xff] }
 0x2e0   :  { %5965 = vmatmul.mubr.f32.gmra.mrb[84].mxu0 %v9045_v20  ;;  %v10909_v20 = vld [vmem:[#allocation23_spill] sm:$0xff] }
 0x2e1   :  { %5967 = vmatprep.mubr.f32.mxu0 %v9059_v29  ;;  %v10908_v29 = vand.u32 4294901760, %v8604_v7  ;;  %v10910_v18 = vand.u32 4294901760, %v10909_v20  ;;  %v10921_v20 = vand.u32 4294901760, %v8703_v8 }
 0x2e3   :  { %v9307_v50 = vpack.c.bf16 %v10912_v17, %v10910_v18  ;;  %v10922_v17 = vand.u32 4294901760, %v8739_v52 }
 0x2e4   :  { %5968 = vmatmul.mubr.f32.gmra.mrb[86].mxu0 %v9073_v57  ;;  %v10907_v57 = vld [vmem:[#allocation115_spill] sm:$0xff] }
 0x2e5   :  { %5970 = vmatprep.mubr.f32.mxu0 %v9087_v49  ;;  %v10906_v49 = vld [vmem:[#allocation112_spill] sm:$0xff]  ;;  %10913 = vst [vmem:[#allocation53_spill] sm:$0xff] %v9307_v50 }
 0x2e8   :  { %5971 = vmatmul.mubr.f32.gmra.mrb[88].mxu0 %v9101_v2  ;;  %v10905_v2 = vld [vmem:[#allocation109_spill] sm:$0xff] }
 0x2e9   :  { %5973 = vmatprep.mubr.f32.mxu0 %v9115_v56  ;;  %v10900_v56 = vld [vmem:[#allocation94_spill] sm:$0xff] }
 0x2ec   :  { %5974 = vmatmul.mubr.f32.gmra.mrb[90].mxu0 %v9129_v37  ;;  %v10899_v37 = vld [vmem:[#allocation91_spill] sm:$0xff] }
 0x2ed   :  { %5976 = vmatprep.mubr.f32.mxu0 %v9143_v13  ;;  %v10898_v13 = vld [vmem:[#allocation88_spill] sm:$0xff] }
 0x2f0   :  { %5977 = vmatmul.mubr.f32.gmra.mrb[92].mxu0 %v9157_v10  ;;  %v10897_v10 = vld [vmem:[#allocation85_spill] sm:$0xff] }
 0x2f1   :  { %5979 = vmatprep.mubr.f32.mxu0 %v9171_v63  ;;  %v10896_v63 = vld [vmem:[#allocation82_spill] sm:$0xff] }
 0x2f4   :  { %5980 = vmatmul.mubr.f32.gmra.mrb[94].mxu0 %v9185_v22  ;;  %v10895_v22 = vld [vmem:[#allocation78_spill] sm:$0xff] }
 0x2f5   :  { %6014 = vmatprep.mubr.f32.mxu0 %v8604_v7  ;;  %v10918_v7 = vld [vmem:[#allocation26_spill] sm:$0xff] }
 0x2f8   :  { %6015 = vmatmul.mubr.f32.vlgmr.msra.gmra.mrb[64].mxu0 %v8639_v33  ;;  %v10923_v33 = vld [vmem:[#allocation29_spill] sm:$0xff] }
 0x2f9   :  { %6961 = vmatpush3.bf16.msra.mxu0 %v8188_v3  ;;  %6017 = vmatprep.mubr.f32.mxu0 %v8674_v44  ;;  %v10925_v44 = vld [vmem:[#allocation30_spill] sm:$0xff] }
 0x2fa   :  { %6963 = vmatprep.subr.bf16.mxu0 %v8208_v21  ;;  %v10926_v18 = vand.u32 4294901760, %v10925_v44 }
 0x2fc   :  { %6018 = vmatmul.mubr.f32.gmra.mrb[66].mxu0 %v8703_v8 }
 0x2fd   :  { %6020 = vmatprep.mubr.f32.mxu0 %v8739_v52  ;;  %6965 = vmatpush3.bf16.msra.mxu0 %v8208_v21  ;;  %v10930_v52 = vld [vmem:[#allocation31_spill] sm:$0xff] }
 0x2fe   :  { %6967 = vmatprep.subr.bf16.mxu0 %v8227_v31  ;;  %v10931_v8 = vand.u32 4294901760, %v10930_v52 }
 0x300   :  { %6021 = vmatmul.mubr.f32.gmra.mrb[68].mxu0 %v8771_v46 }
 0x301   :  { %6023 = vmatprep.mubr.f32.mxu0 %v8799_v25  ;;  %6969 = vmatpush3.bf16.msra.mxu0 %v8227_v31 }
 0x302   :  { %6971 = vmatprep.subr.bf16.mxu0 %v10877_v45 }
 0x304   :  { %6024 = vmatmul.mubr.f32.gmra.mrb[70].mxu0 %v10878_v24 }
 0x305   :  { %6026 = vmatprep.mubr.f32.mxu0 %v10879_v40  ;;  %6973 = vmatpush3.bf16.msra.mxu0 %v10877_v45 }
 0x306   :  { %6975 = vmatprep.subr.bf16.mxu0 %v10880_v43 }
 0x308   :  { %6027 = vmatmul.mubr.f32.gmra.mrb[72].mxu0 %v10881_v32 }
 0x309   :  { %6029 = vmatprep.mubr.f32.mxu0 %v10882_v26  ;;  %6977 = vmatpush3.bf16.msra.mxu0 %v10880_v43 }
 0x30a   :  { %6979 = vmatprep.subr.bf16.mxu0 %v10883_v30 }
 0x30c   :  { %6030 = vmatmul.mubr.f32.gmra.mrb[74].mxu0 %v10884_v54 }
 0x30d   :  { %6032 = vmatprep.mubr.f32.mxu0 %v10885_v5  ;;  %6981 = vmatpush3.bf16.msra.mxu0 %v10883_v30 }
 0x30e   :  { %6983 = vmatprep.subr.bf16.mxu0 %v10886_v19 }
 0x310   :  { %6033 = vmatmul.mubr.f32.gmra.mrb[76].mxu0 %v10887_v12 }
 0x311   :  { %6035 = vmatprep.mubr.f32.mxu0 %v10888_v51  ;;  %6985 = vmatpush3.bf16.msra.mxu0 %v10886_v19 }
 0x312   :  { %6987 = vmatprep.subr.bf16.mxu0 %v10889_v42 }
 0x314   :  { %6036 = vmatmul.mubr.f32.gmra.mrb[78].mxu0 %v10895_v22 }
 0x315   :  { %6038 = vmatprep.mubr.f32.mxu0 %v10896_v63  ;;  %6989 = vmatpush3.bf16.msra.mxu0 %v10889_v42  ;;  %v10916_v42 = vld [vmem:[#allocation25_spill] sm:$0xff] }
 0x316   :  { %6991 = vmatprep.subr.bf16.mxu0 %v9280_v35  ;;  %v10917_v9 = vand.u32 4294901760, %v10916_v42  ;;  %v10928_v42 = vand.u32 4294901760, %v8771_v46  ;;  %v10937_v46 = vld [vmem:[#allocation35_spill] sm:$0xff] }
 0x318   :  { %6039 = vmatmul.mubr.f32.gmra.mrb[80].mxu0 %v10897_v10 }
 0x319   :  { %6041 = vmatprep.mubr.f32.mxu0 %v10898_v13 }
 0x31c   :  { %6042 = vmatmul.mubr.f32.gmra.mrb[82].mxu0 %v10899_v37 }
 0x31d   :  { %6044 = vmatprep.mubr.f32.mxu0 %v10900_v56 }
 0x320   :  { %6045 = vmatmul.mubr.f32.gmra.mrb[84].mxu0 %v10901_v1 }
 0x321   :  { %6047 = vmatprep.mubr.f32.mxu0 %v10902_v23 }
 0x324   :  { %6048 = vmatmul.mubr.f32.gmra.mrb[86].mxu0 %v10903_v62 }
 0x325   :  { %6050 = vmatprep.mubr.f32.mxu0 %v10904_v58 }
 0x328   :  { %6051 = vmatmul.mubr.f32.gmra.mrb[88].mxu0 %v10905_v2 }
 0x329   :  { %6053 = vmatprep.mubr.f32.mxu0 %v10906_v49 }
 0x32c   :  { %6054 = vmatmul.mubr.f32.gmra.mrb[90].mxu0 %v10907_v57 }
 0x32d   :  { %6056 = vmatprep.mubr.f32.mxu0 %v9149_v55 }
 0x330   :  { %6057 = vmatmul.mubr.f32.gmra.mrb[92].mxu0 %v9163_v34 }
 0x331   :  { %6059 = vmatprep.mubr.f32.mxu0 %v9177_v41 }
 0x334   :  { %6060 = vmatmul.mubr.f32.gmra.mrb[94].mxu0 %v9190_v60 }
 0x335   :  { %6094 = vmatprep.mubr.f32.mxu0 %v10908_v29  ;;  %v10919_v29 = vand.u32 4294901760, %v10918_v7  ;;  %v10933_v7 = vand.u32 4294901760, %v10932_v59  ;;  %v10949_v59 = vand.u32 4294901760, %v10884_v54  ;;  %v10958_v54 = vand.u32 4294901760, %v10895_v22 }
 0x336   :  { %v10964_v22 = vand.u32 4294901760, %v10901_v1  ;;  %v10971_v1 = vand.u32 4294901760, %v9149_v55  ;;  %v10978_v55 = vld [vmem:[#allocation77_spill] sm:$0xff] }
 0x337   :  { %v9319_v38 = vpack.c.bf16 %v10919_v29, %v10917_v9  ;;  %v10929_v9 = vand.u32 4294901760, %v8799_v25  ;;  %v9343_v29 = vpack.c.bf16 %v10933_v7, %v10931_v8  ;;  %v10938_v25 = vand.u32 4294901760, %v10937_v46 }
 0x338   :  { %6095 = vmatmul.mubr.f32.vlgmr.msra.gmra.mrb[64].mxu0 %v10914_v11  ;;  %v10950_v7 = vand.u32 4294901760, %v10885_v5  ;;  %v10959_v5 = vand.u32 4294901760, %v10896_v63  ;;  %v10965_v63 = vand.u32 4294901760, %v10902_v23  ;;  %v10972_v23 = vand.u32 4294901760, %v9163_v34  ;;  %v10979_v34 = vld [vmem:[#allocation81_spill] sm:$0xff] }
 0x339   :  { %6993 = vmatpush3.bf16.msra.mxu0 %v9280_v35  ;;  %6097 = vmatprep.mubr.f32.mxu0 %v10915_v27  ;;  %10920 = vst [vmem:[#allocation57_spill] sm:$0xff] %v9319_v38  ;;  %v10924_v27 = vand.u32 4294901760, %v10923_v33  ;;  %10934 = vst [vmem:[#allocation60_spill] sm:$0xff] %v9343_v29  ;;  %v10939_v33 = vld [vmem:[#allocation36_spill] sm:$0xff]  ;;  %v11060_v35 = vld [vmem:[#allocation98_spill] sm:$0xff] }
 0x33a   :  { %6995 = vmatprep.subr.bf16.mxu0 %v9307_v50 }
 0x33b   :  { %v9331_v11 = vpack.c.bf16 %v10926_v18, %v10924_v27  ;;  %v10940_v27 = vand.u32 4294901760, %v10939_v33  ;;  %v10942_v18 = vand.u32 4294901760, %v10881_v32  ;;  %v10957_v33 = vand.u32 4294901760, %v10888_v51 }
 0x33c   :  { %6098 = vmatmul.mubr.f32.gmra.mrb[66].mxu0 %v10921_v20  ;;  %v10935_v20 = vand.u32 4294901760, %v10878_v24  ;;  %v10944_v24 = vld [vmem:[#allocation41_spill] sm:$0xff]  ;;  %v10961_v51 = vand.u32 4294901760, %v10898_v13  ;;  %v10968_v13 = vand.u32 4294901760, %v10905_v2  ;;  %v10977_v2 = vld [vmem:[#allocation19_spill] sm:$0xff] }
 0x33d   :  { %6100 = vmatprep.mubr.f32.mxu0 %v10922_v17  ;;  %6997 = vmatpush3.bf16.msra.mxu0 %v9307_v50  ;;  %10927 = vst [vmem:[#allocation16_spill] sm:$0xff] %v9331_v11  ;;  %v10936_v17 = vand.u32 4294901760, %v10879_v40  ;;  %v9355_v44 = vpack.c.bf16 %v10940_v27, %v10938_v25  ;;  %v10945_v40 = vand.u32 4294901760, %v10944_v24  ;;  %v10956_v25 = vand.u32 4294901760, %v10887_v12  ;;  %v10982_v24 = vld [vmem:[#allocation90_spill] sm:$0xff]  ;;  %v11054_v50 = vld [vmem:[#allocation45_spill] sm:$0xff] }
 0x33e   :  { %6999 = vmatprep.subr.bf16.mxu0 %v9319_v38  ;;  %v10960_v12 = vand.u32 4294901760, %v10897_v10  ;;  %v10962_v27 = vand.u32 4294901760, %v10899_v37  ;;  %v10967_v10 = vand.u32 4294901760, %v10904_v58  ;;  %v10969_v37 = vand.u32 4294901760, %v10906_v49  ;;  %v10976_v49 = vld [vmem:[#allocation74_spill] sm:$0xff] }
 0x33f   :  { %10941 = vst [vmem:[#allocation63_spill] sm:$0xff] %v9355_v44  ;;  %v10974_v58 = vand.u32 4294901760, %v9190_v60  ;;  %v10981_v60 = vld [vmem:[#allocation87_spill] sm:$0xff] }
 0x340   :  { %6101 = vmatmul.mubr.f32.gmra.mrb[68].mxu0 %v10928_v42  ;;  %v10943_v42 = vand.u32 4294901760, %v10882_v26  ;;  %v10951_v26 = vld [vmem:[#allocation46_spill] sm:$0xff] }
 0x341   :  { %6103 = vmatprep.mubr.f32.mxu0 %v10929_v9  ;;  %7001 = vmatpush3.bf16.msra.mxu0 %v9319_v38  ;;  %v10946_v9 = vld [vmem:[#allocation42_spill] sm:$0xff]  ;;  %v10952_v32 = vand.u32 4294901760, %v10951_v26  ;;  %v10988_v26 = vld [vmem:[#allocation108_spill] sm:$0xff] }
 0x342   :  { %7003 = vmatprep.subr.bf16.mxu0 %v9331_v11  ;;  %v10947_v52 = vand.u32 4294901760, %v10946_v9  ;;  %v10984_v9 = vld [vmem:[#allocation96_spill] sm:$0xff] }
 0x344   :  { %6104 = vmatmul.mubr.f32.gmra.mrb[70].mxu0 %v10935_v20  ;;  %v9367_v8 = vpack.c.bf16 %v10947_v52, %v10945_v40  ;;  %v10953_v20 = vld [vmem:[#allocation47_spill] sm:$0xff]  ;;  %v10983_v40 = vld [vmem:[#allocation93_spill] sm:$0xff] }
 0x345   :  { %6106 = vmatprep.mubr.f32.mxu0 %v10936_v17  ;;  %7005 = vmatpush3.bf16.msra.mxu0 %v9331_v11  ;;  %v10954_v17 = vand.u32 4294901760, %v10953_v20  ;;  %v10985_v52 = vld [vmem:[#allocation99_spill] sm:$0xff]  ;;  %v10990_v20 = vld [vmem:[#allocation114_spill] sm:$0xff]  ;;  %v11051_v11 = vld [vmem:[#allocation92_spill] sm:$0xff] }
 0x346   :  { %7007 = vmatprep.subr.bf16.mxu0 %v9343_v29  ;;  %10948 = vst [vmem:[#allocation65_spill] sm:$0xff] %v9367_v8 }
 0x347   :  { %v9379_v46 = vpack.c.bf16 %v10954_v17, %v10952_v32  ;;  %v10989_v32 = vld [vmem:[#allocation111_spill] sm:$0xff]  ;;  %v10991_v17 = vld [vmem:[#allocation117_spill] sm:$0xff] }
 0x348   :  { %6107 = vmatmul.mubr.f32.gmra.mrb[72].mxu0 %v10942_v18  ;;  %v10963_v18 = vand.u32 4294901760, %v10900_v56  ;;  %v10970_v56 = vand.u32 4294901760, %v10907_v57  ;;  %v10975_v57 = vld [vmem:[#allocation70_spill] sm:$0xff] }
 0x349   :  { %6109 = vmatprep.mubr.f32.mxu0 %v10943_v42  ;;  %7009 = vmatpush3.bf16.msra.mxu0 %v9343_v29  ;;  %10955 = vst [vmem:[#allocation68_spill] sm:$0xff] %v9379_v46  ;;  %v10966_v42 = vand.u32 4294901760, %v10903_v62  ;;  %v10973_v62 = vand.u32 4294901760, %v9177_v41  ;;  %v10980_v41 = vld [vmem:[#allocation84_spill] sm:$0xff] }
 0x34a   :  { %7011 = vmatprep.subr.bf16.mxu0 %v9355_v44 }
 0x34c   :  { %6110 = vmatmul.mubr.f32.gmra.mrb[74].mxu0 %v10949_v59  ;;  %v10986_v59 = vld [vmem:[#allocation102_spill] sm:$0xff] }
 0x34d   :  { %6112 = vmatprep.mubr.f32.mxu0 %v10950_v7  ;;  %7013 = vmatpush3.bf16.msra.mxu0 %v9355_v44  ;;  %v10987_v7 = vld [vmem:[#allocation105_spill] sm:$0xff] }
 0x34e   :  { %7015 = vmatprep.subr.bf16.mxu0 %v9367_v8 }
 0x350   :  { %6113 = vmatmul.mubr.f32.gmra.mrb[76].mxu0 %v10956_v25  ;;  %v10992_v25 = vld [vmem:[#allocation119_spill] sm:$0xff] }
 0x351   :  { %6115 = vmatprep.mubr.f32.mxu0 %v10957_v33  ;;  %7017 = vmatpush3.bf16.msra.mxu0 %v9367_v8  ;;  %v10993_v33 = vld [vmem:[#allocation121_spill] sm:$0xff] }
 0x352   :  { %7019 = vmatprep.subr.bf16.mxu0 %v9379_v46 }
 0x354   :  { %6116 = vmatmul.mubr.f32.gmra.mrb[78].mxu0 %v10958_v54  ;;  %v10994_v54 = vld [vmem:[#allocation123_spill] sm:$0xff] }
 0x355   :  { %6118 = vmatprep.mubr.f32.mxu0 %v10959_v5  ;;  %7021 = vmatpush3.bf16.msra.mxu0 %v9379_v46  ;;  %v11042_v46 = vld [vmem:[#allocation86_spill] sm:$0xff] }
 0x356   :  { %7023 = vmatprep.subr.bf16.mxu0 %v8188_v3 }
 0x358   :  { %6119 = vmatmul.mubr.f32.gmra.mrb[80].mxu0 %v10960_v12  ;;  %v11001_v12 = vld [vmem:[#allocation33_spill] sm:$0xff] }
 0x359   :  { %6121 = vmatprep.mubr.f32.mxu0 %v10961_v51 }
 0x35c   :  { %6122 = vmatmul.mubr.f32.gmra.mrb[82].mxu0 %v10962_v27 }
 0x35d   :  { %6124 = vmatprep.mubr.f32.mxu0 %v10963_v18 }
 0x360   :  { %6125 = vmatmul.mubr.f32.gmra.mrb[84].mxu0 %v10964_v22 }
 0x361   :  { %6127 = vmatprep.mubr.f32.mxu0 %v10965_v63 }
 0x364   :  { %6128 = vmatmul.mubr.f32.gmra.mrb[86].mxu0 %v10966_v42 }
 0x365   :  { %6130 = vmatprep.mubr.f32.mxu0 %v10967_v10 }
 0x368   :  { %6131 = vmatmul.mubr.f32.gmra.mrb[88].mxu0 %v10968_v13 }
 0x369   :  { %6133 = vmatprep.mubr.f32.mxu0 %v10969_v37  ;;  %v11003_v37 = vld [vmem:[#allocation44_spill] sm:$0xff] }
 0x36c   :  { %6134 = vmatmul.mubr.f32.gmra.mrb[90].mxu0 %v10970_v56 }
 0x36d   :  { %6136 = vmatprep.mubr.f32.mxu0 %v10971_v1 }
 0x370   :  { %6137 = vmatmul.mubr.f32.gmra.mrb[92].mxu0 %v10972_v23 }
 0x371   :  { %6139 = vmatprep.mubr.f32.mxu0 %v10973_v62  ;;  %v11005_v62 = vld [vmem:[#allocation40_spill] sm:$0xff] }
 0x374   :  { %6140 = vmatmul.mubr.f32.gmra.mrb[94].mxu0 %v10974_v58 }
 0x375   :  { %6174 = vmatprep.mubr.f32.mxu0 %v8593_v36 }
 0x378   :  { %6175 = vmatmul.mubr.f32.vlgmr.msra.gmra.mrb[64].mxu0 %v8623_v0 }
 0x379   :  { %7025 = vmatpush3.bf16.msra.mxu0 %v8188_v3  ;;  %6177 = vmatprep.mubr.f32.mxu0 %v8654_v16 }
 0x37a   :  { %7027 = vmatprep.subr.bf16.mxu0 %v8208_v21 }
 0x37c   :  { %6178 = vmatmul.mubr.f32.gmra.mrb[66].mxu0 %v8689_v48 }
 0x37d   :  { %6180 = vmatprep.mubr.f32.mxu0 %v8726_v15  ;;  %7029 = vmatpush3.bf16.msra.mxu0 %v8208_v21 }
 0x37e   :  { %7031 = vmatprep.subr.bf16.mxu0 %v8227_v31 }
 0x380   :  { %6181 = vmatmul.mubr.f32.gmra.mrb[68].mxu0 %v8762_v39 }
 0x381   :  { %6183 = vmatprep.mubr.f32.mxu0 %v8792_v14  ;;  %7033 = vmatpush3.bf16.msra.mxu0 %v8227_v31 }
 0x382   :  { %7035 = vmatprep.subr.bf16.mxu0 %v10877_v45 }
 0x384   :  { %6184 = vmatmul.mubr.f32.gmra.mrb[70].mxu0 %v8816_v28 }
 0x385   :  { %6186 = vmatprep.mubr.f32.mxu0 %v8838_v61  ;;  %7037 = vmatpush3.bf16.msra.mxu0 %v10877_v45 }
 0x386   :  { %7039 = vmatprep.subr.bf16.mxu0 %v10880_v43 }
 0x388   :  { %6187 = vmatmul.mubr.f32.gmra.mrb[72].mxu0 %v8856_v47 }
 0x389   :  { %6189 = vmatprep.mubr.f32.mxu0 %v8876_v4  ;;  %7041 = vmatpush3.bf16.msra.mxu0 %v10880_v43 }
 0x38a   :  { %7043 = vmatprep.subr.bf16.mxu0 %v10883_v30 }
 0x38c   :  { %6190 = vmatmul.mubr.f32.gmra.mrb[74].mxu0 %v8892_v6 }
 0x38d   :  { %6192 = vmatprep.mubr.f32.mxu0 %v8911_v53  ;;  %7045 = vmatpush3.bf16.msra.mxu0 %v10883_v30 }
 0x38e   :  { %7047 = vmatprep.subr.bf16.mxu0 %v10886_v19 }
 0x390   :  { %6193 = vmatmul.mubr.f32.gmra.mrb[76].mxu0 %v10975_v57 }
 0x391   :  { %6195 = vmatprep.mubr.f32.mxu0 %v10976_v49  ;;  %7049 = vmatpush3.bf16.msra.mxu0 %v10886_v19 }
 0x392   :  { %7051 = vmatprep.subr.bf16.mxu0 %v10977_v2 }
 0x394   :  { %6196 = vmatmul.mubr.f32.gmra.mrb[78].mxu0 %v10978_v55 }
 0x395   :  { %6198 = vmatprep.mubr.f32.mxu0 %v10979_v34  ;;  %7053 = vmatpush3.bf16.msra.mxu0 %v10977_v2 }
 0x396   :  { %7055 = vmatprep.subr.bf16.mxu0 %v8188_v3 }
 0x398   :  { %6199 = vmatmul.mubr.f32.gmra.mrb[80].mxu0 %v10980_v41 }
 0x399   :  { %6201 = vmatprep.mubr.f32.mxu0 %v10981_v60 }
 0x39c   :  { %6202 = vmatmul.mubr.f32.gmra.mrb[82].mxu0 %v10982_v24 }
 0x39d   :  { %6204 = vmatprep.mubr.f32.mxu0 %v10983_v40 }
 0x3a0   :  { %6205 = vmatmul.mubr.f32.gmra.mrb[84].mxu0 %v10984_v9 }
 0x3a1   :  { %6207 = vmatprep.mubr.f32.mxu0 %v10985_v52 }
 0x3a4   :  { %6208 = vmatmul.mubr.f32.gmra.mrb[86].mxu0 %v10986_v59 }
 0x3a5   :  { %6210 = vmatprep.mubr.f32.mxu0 %v10987_v7 }
 0x3a8   :  { %6211 = vmatmul.mubr.f32.gmra.mrb[88].mxu0 %v10988_v26 }
 0x3a9   :  { %6213 = vmatprep.mubr.f32.mxu0 %v10989_v32 }
 0x3ac   :  { %6214 = vmatmul.mubr.f32.gmra.mrb[90].mxu0 %v10990_v20 }
 0x3ad   :  { %6216 = vmatprep.mubr.f32.mxu0 %v10991_v17 }
 0x3b0   :  { %6217 = vmatmul.mubr.f32.gmra.mrb[92].mxu0 %v10992_v25 }
 0x3b1   :  { %6219 = vmatprep.mubr.f32.mxu0 %v10993_v33 }
 0x3b4   :  { %6220 = vmatmul.mubr.f32.gmra.mrb[94].mxu0 %v10994_v54 }
 0x3b5   :  { %6254 = vmatprep.mubr.f32.mxu0 %v8593_v36 }
 0x3b8   :  { %6255 = vmatmul.mubr.f32.vlgmr.msra.gmra.mrb[64].mxu0 %v8623_v0  ;;  %v10995_v0 = vld [vmem:[#allocation28_spill] sm:$0xff] }
 0x3b9   :  { %6257 = vmatprep.mubr.f32.mxu0 %v8654_v16  ;;  %7057 = vmatpush3.bf16.msra.mxu0 %v8188_v3 }
 0x3ba   :  { %7059 = vmatprep.subr.bf16.mxu0 %v8208_v21 }
 0x3bc   :  { %6258 = vmatmul.mubr.f32.gmra.mrb[66].mxu0 %v8689_v48 }
 0x3bd   :  { %6260 = vmatprep.mubr.f32.mxu0 %v8726_v15  ;;  %7061 = vmatpush3.bf16.msra.mxu0 %v8208_v21  ;;  %v10997_v15 = vld [vmem:[#allocation27_spill] sm:$0xff] }
 0x3be   :  { %7063 = vmatprep.subr.bf16.mxu0 %v8227_v31 }
 0x3c0   :  { %6261 = vmatmul.mubr.f32.gmra.mrb[68].mxu0 %v8762_v39 }
 0x3c1   :  { %6263 = vmatprep.mubr.f32.mxu0 %v8792_v14  ;;  %7065 = vmatpush3.bf16.msra.mxu0 %v8227_v31 }
 0x3c2   :  { %7067 = vmatprep.subr.bf16.mxu0 %v10877_v45 }
 0x3c4   :  { %6264 = vmatmul.mubr.f32.gmra.mrb[70].mxu0 %v8816_v28 }
 0x3c5   :  { %6266 = vmatprep.mubr.f32.mxu0 %v8838_v61  ;;  %7069 = vmatpush3.bf16.msra.mxu0 %v10877_v45 }
 0x3c6   :  { %7071 = vmatprep.subr.bf16.mxu0 %v10880_v43 }
 0x3c8   :  { %6267 = vmatmul.mubr.f32.gmra.mrb[72].mxu0 %v8856_v47 }
 0x3c9   :  { %6269 = vmatprep.mubr.f32.mxu0 %v8876_v4  ;;  %7073 = vmatpush3.bf16.msra.mxu0 %v10880_v43  ;;  %v10999_v4 = vld [vmem:[#allocation37_spill] sm:$0xff] }
 0x3ca   :  { %7075 = vmatprep.subr.bf16.mxu0 %v10883_v30 }
 0x3cc   :  { %6270 = vmatmul.mubr.f32.gmra.mrb[74].mxu0 %v8892_v6 }
 0x3cd   :  { %6272 = vmatprep.mubr.f32.mxu0 %v8911_v53  ;;  %7077 = vmatpush3.bf16.msra.mxu0 %v10883_v30  ;;  %v11096_v30 = vld [vmem:[#allocation120_spill] sm:$0xff] }
 0x3ce   :  { %7079 = vmatprep.subr.bf16.mxu0 %v10886_v19 }
 0x3d0   :  { %6273 = vmatmul.mubr.f32.gmra.mrb[76].mxu0 %v10975_v57 }
 0x3d1   :  { %6275 = vmatprep.mubr.f32.mxu0 %v10976_v49  ;;  %7081 = vmatpush3.bf16.msra.mxu0 %v10886_v19 }
 0x3d2   :  { %7083 = vmatprep.subr.bf16.mxu0 %v10977_v2 }
 0x3d4   :  { %6276 = vmatmul.mubr.f32.gmra.mrb[78].mxu0 %v10978_v55 }
 0x3d5   :  { %6278 = vmatprep.mubr.f32.mxu0 %v10979_v34  ;;  %7085 = vmatpush3.bf16.msra.mxu0 %v10977_v2  ;;  %v11069_v2 = vld [vmem:[#allocation104_spill] sm:$0xff] }
 0x3d8   :  { %6279 = vmatmul.mubr.f32.gmra.mrb[80].mxu0 %v10980_v41 }
 0x3d9   :  { %6281 = vmatprep.mubr.f32.mxu0 %v10981_v60 }
 0x3dc   :  { %6282 = vmatmul.mubr.f32.gmra.mrb[82].mxu0 %v10982_v24 }
 0x3dd   :  { %6284 = vmatprep.mubr.f32.mxu0 %v10983_v40 }
 0x3e0   :  { %6285 = vmatmul.mubr.f32.gmra.mrb[84].mxu0 %v10984_v9 }
 0x3e1   :  { %6287 = vmatprep.mubr.f32.mxu0 %v10985_v52  ;;  %v11007_v52 = vld [vmem:[#allocation51_spill] sm:$0xff] }
 0x3e4   :  { %6288 = vmatmul.mubr.f32.gmra.mrb[86].mxu0 %v10986_v59 }
 0x3e5   :  { %6290 = vmatprep.mubr.f32.mxu0 %v10987_v7 }
 0x3e8   :  { %6291 = vmatmul.mubr.f32.gmra.mrb[88].mxu0 %v10988_v26 }
 0x3e9   :  { %6293 = vmatprep.mubr.f32.mxu0 %v10989_v32 }
 0x3ec   :  { %6294 = vmatmul.mubr.f32.gmra.mrb[90].mxu0 %v10990_v20  ;;  %v11009_v20 = vld [vmem:[#allocation49_spill] sm:$0xff] }
 0x3ed   :  { %6296 = vmatprep.mubr.f32.mxu0 %v10991_v17 }
 0x3f0   :  { %6297 = vmatmul.mubr.f32.gmra.mrb[92].mxu0 %v10992_v25 }
 0x3f1   :  { %6299 = vmatprep.mubr.f32.mxu0 %v10993_v33 }
 0x3f4   :  { %6300 = vmatmul.mubr.f32.gmra.mrb[94].mxu0 %v10994_v54 }
 0x48b   :  { %v6256_v36 = vpop.f32.mrb[64].mxu0 }
 0x48c   :  { %v9519_v16 = vsub.f32 %v10995_v0, %v6256_v36  ;;  %v2826_v48 = vpop.f32.mrb[65].mxu0 }
 0x48d   :  { %v9522_v39 = vsub.f32 %v10997_v15, %v2826_v48 }
 0x48e   :  { %10996 = vst [vmem:[#allocation71_spill] sm:$0xff] %v9519_v16  ;;  %v3049_v61 = vmul.f32 %v9519_v16, %v9519_v16 }
 0x48f   :  { %10998 = vst [vmem:[#allocation75_spill] sm:$0xff] %v9522_v39  ;;  %v3048_v14 = vmul.f32 %v9522_v39, %v9522_v39  ;;  %v6259_v28 = vpop.f32.mrb[66].mxu0 }
 0x490   :  { %v9528_v47 = vand.u32 4294901760, %v3049_v61  ;;  %v9531_v6 = vsub.f32 %v10999_v4, %v6259_v28  ;;  %v2838_v53 = vpop.f32.mrb[67].mxu0 }
 0x491   :  { %v9533_v5 = vand.u32 4294901760, %v3048_v14  ;;  %v9536_v51 = vsub.f32 %v11001_v12, %v2838_v53  ;;  %v11011_v53 = vld [vmem:[#allocation58_spill] sm:$0xff] }
 0x492   :  { %11000 = vst [vmem:[#allocation20_spill] sm:$0xff] %v9531_v6  ;;  %v9539_v27 = vsub.f32 %v3049_v61, %v9528_v47  ;;  %v3051_v18 = vmul.f32 %v9531_v6, %v9531_v6 }
 0x493   :  { %11002 = vst [vmem:[#allocation21_spill] sm:$0xff] %v9536_v51  ;;  %v9544_v22 = vsub.f32 %v3048_v14, %v9533_v5  ;;  %v3050_v63 = vmul.f32 %v9536_v51, %v9536_v51  ;;  %v6262_v42 = vpop.f32.mrb[68].mxu0 }
 0x494   :  { %v10614_v10 = vand.u32 4294901760, %v9539_v27  ;;  %v9549_v13 = vand.u32 4294901760, %v3051_v18  ;;  %v9552_v56 = vsub.f32 %v11003_v37, %v6262_v42  ;;  %v2850_v1 = vpop.f32.mrb[69].mxu0  ;;  %v11013_v37 = vld [vmem:[#allocation54_spill] sm:$0xff] }
 0x495   :  { %v9554_v23 = vand.u32 4294901760, %v3050_v63  ;;  %v9557_v58 = vsub.f32 %v11005_v62, %v2850_v1  ;;  %v10615_v57 = vand.u32 4294901760, %v9544_v22 }
 0x496   :  { %11004 = vst [vmem:[#allocation78_spill] sm:$0xff] %v9552_v56  ;;  %v3174_v49 = vsub.f32 %v9539_v27, %v10614_v10  ;;  %v9564_v55 = vsub.f32 %v3051_v18, %v9549_v13  ;;  %v3053_v34 = vmul.f32 %v9552_v56, %v9552_v56  ;;  %v11021_v10 = vld [vmem:[#allocation66_spill] sm:$0xff]  ;;  %v11033_v56 = vld [vmem:[#allocation79_spill] sm:$0xff] }
 0x497   :  { %11006 = vst [vmem:[#allocation82_spill] sm:$0xff] %v9557_v58  ;;  %v9569_v41 = vsub.f32 %v3050_v63, %v9554_v23  ;;  %v3052_v60 = vmul.f32 %v9557_v58, %v9557_v58  ;;  %v6265_v24 = vpop.f32.mrb[70].mxu0  ;;  %v3164_v40 = vsub.f32 %v9544_v22, %v10615_v57 }
 0x498   :  { %v9576_v9 = vand.u32 4294901760, %v3053_v34  ;;  %v9579_v59 = vsub.f32 %v11007_v52, %v6265_v24  ;;  %v2862_v7 = vpop.f32.mrb[71].mxu0  ;;  %v10611_v26 = vand.u32 4294901760, %v9564_v55  ;;  %v3175_v54 = vand.u32 4294901760, %v3174_v49 }
 0x499   :  { %v9582_v32 = vand.u32 4294901760, %v3052_v60  ;;  %v9585_v17 = vsub.f32 %v11009_v20, %v2862_v7  ;;  %v3165_v25 = vand.u32 4294901760, %v3164_v40  ;;  %v10612_v33 = vand.u32 4294901760, %v9569_v41 }
 0x49a   :  { %11008 = vst [vmem:[#allocation85_spill] sm:$0xff] %v9579_v59  ;;  %v9589_v36 = vsub.f32 %v3053_v34, %v9576_v9  ;;  %v3055_v0 = vmul.f32 %v9579_v59, %v9579_v59  ;;  %v3194_v48 = vsub.f32 %v9564_v55, %v10611_v26 }
 0x49b   :  { %11010 = vst [vmem:[#allocation88_spill] sm:$0xff] %v9585_v17  ;;  %v9597_v15 = vsub.f32 %v3052_v60, %v9582_v32  ;;  %v3054_v61 = vmul.f32 %v9585_v17, %v9585_v17  ;;  %v6268_v14 = vpop.f32.mrb[72].mxu0  ;;  %6334 = vmatprep.mubr.f32.mxu0 %v3165_v25  ;;  %v3184_v28 = vsub.f32 %v9569_v41, %v10612_v33 }
 0x49c   :  { %v9604_v4 = vand.u32 4294901760, %v3055_v0  ;;  %v9607_v12 = vsub.f32 %v11011_v53, %v6268_v14  ;;  %v2874_v18 = vpop.f32.mrb[73].mxu0  ;;  %6335 = vmatmul.mubr.f32.vlgmr.msra.gmra.mrb[96].mxu0 %v3175_v54  ;;  %v10609_v63 = vand.u32 4294901760, %v9589_v36  ;;  %v3195_v24 = vand.u32 4294901760, %v3194_v48  ;;  %v11017_v53 = vld [vmem:[#allocation61_spill] sm:$0xff] }
 0x49d   :  { %v9610_v42 = vand.u32 4294901760, %v3054_v61  ;;  %v9613_v1 = vsub.f32 %v11013_v37, %v2874_v18  ;;  %v3185_v62 = vand.u32 4294901760, %v3184_v28  ;;  %v10610_v49 = vand.u32 4294901760, %v9597_v15 }
 0x49e   :  { %11012 = vst [vmem:[#allocation91_spill] sm:$0xff] %v9607_v12  ;;  %v9617_v34 = vsub.f32 %v3055_v0, %v9604_v4  ;;  %v3057_v60 = vmul.f32 %v9607_v12, %v9607_v12  ;;  %v3214_v40 = vsub.f32 %v9589_v36, %v10609_v63  ;;  %v11015_v0 = vld [vmem:[#allocation64_spill] sm:$0xff] }
 0x49f   :  { %11014 = vst [vmem:[#allocation94_spill] sm:$0xff] %v9613_v1  ;;  %v9625_v52 = vsub.f32 %v3054_v61, %v9610_v42  ;;  %v3056_v7 = vmul.f32 %v9613_v1, %v9613_v1  ;;  %v6271_v20 = vpop.f32.mrb[74].mxu0  ;;  %6337 = vmatprep.mubr.f32.mxu0 %v3185_v62  ;;  %v3204_v25 = vsub.f32 %v9597_v15, %v10610_v49 }
 0x4a0   :  { %v9632_v54 = vand.u32 4294901760, %v3057_v60  ;;  %v9635_v48 = vsub.f32 %v11015_v0, %v6271_v20  ;;  %v2886_v14 = vpop.f32.mrb[75].mxu0  ;;  %6338 = vmatmul.mubr.f32.gmra.mrb[98].mxu0 %v3195_v24  ;;  %v10613_v28 = vand.u32 4294901760, %v9617_v34  ;;  %v3215_v20 = vand.u32 4294901760, %v3214_v40  ;;  %v11019_v40 = vld [vmem:[#allocation69_spill] sm:$0xff] }
 0x4a1   :  { %v9638_v61 = vand.u32 4294901760, %v3056_v7  ;;  %v9641_v18 = vsub.f32 %v11017_v53, %v2886_v14  ;;  %v3205_v37 = vand.u32 4294901760, %v3204_v25  ;;  %v10617_v62 = vand.u32 4294901760, %v9625_v52 }
 0x4a2   :  { %11016 = vst [vmem:[#allocation97_spill] sm:$0xff] %v9635_v48  ;;  %v9645_v63 = vsub.f32 %v3057_v60, %v9632_v54  ;;  %v3059_v49 = vmul.f32 %v9635_v48, %v9635_v48  ;;  %v3234_v24 = vsub.f32 %v9617_v34, %v10613_v28 }
 0x4a3   :  { %11018 = vst [vmem:[#allocation100_spill] sm:$0xff] %v9641_v18  ;;  %v9653_v0 = vsub.f32 %v3056_v7, %v9638_v61  ;;  %v3058_v14 = vmul.f32 %v9641_v18, %v9641_v18  ;;  %v6274_v25 = vpop.f32.mrb[76].mxu0  ;;  %6340 = vmatprep.mubr.f32.mxu0 %v3205_v37  ;;  %v3224_v60 = vsub.f32 %v9625_v52, %v10617_v62 }
 0x4a4   :  { %v10619_v53 = vand.u32 4294901760, %v9645_v63  ;;  %v9661_v26 = vand.u32 4294901760, %v3059_v49  ;;  %v9664_v33 = vsub.f32 %v11019_v40, %v6274_v25  ;;  %v2898_v28 = vpop.f32.mrb[77].mxu0  ;;  %6341 = vmatmul.mubr.f32.gmra.mrb[100].mxu0 %v3215_v20  ;;  %v3235_v40 = vand.u32 4294901760, %v3234_v24 }
 0x4a5   :  { %v9666_v7 = vand.u32 4294901760, %v3058_v14  ;;  %v9669_v57 = vsub.f32 %v11021_v10, %v2898_v28  ;;  %v3225_v18 = vand.u32 4294901760, %v3224_v60  ;;  %v10626_v37 = vand.u32 4294901760, %v9653_v0 }
 0x4a6   :  { %11020 = vst [vmem:[#allocation103_spill] sm:$0xff] %v9664_v33  ;;  %v3254_v62 = vsub.f32 %v9645_v63, %v10619_v53  ;;  %v9676_v48 = vsub.f32 %v3059_v49, %v9661_v26  ;;  %v3061_v25 = vmul.f32 %v9664_v33, %v9664_v33  ;;  %v11025_v49 = vld [vmem:[#allocation76_spill] sm:$0xff] }
 0x4a7   :  { %11022 = vst [vmem:[#allocation106_spill] sm:$0xff] %v9669_v57  ;;  %v9681_v20 = vsub.f32 %v3058_v14, %v9666_v7  ;;  %v3060_v10 = vmul.f32 %v9669_v57, %v9669_v57  ;;  %v6277_v28 = vpop.f32.mrb[78].mxu0  ;;  %6343 = vmatprep.mubr.f32.mxu0 %v3225_v18  ;;  %v3244_v60 = vsub.f32 %v9653_v0, %v10626_v37  ;;  %v11027_v33 = vld [vmem:[#allocation72_spill] sm:$0xff] }
 0x4a8   :  { %11023 = vst [vmem:[#allocation109_spill] sm:$0xff] %v9676_v48  ;;  %v9688_v53 = vand.u32 4294901760, %v3061_v25  ;;  %v9691_v1 = vsub.f32 %v11025_v49, %v6277_v28  ;;  %v2910_v12 = vpop.f32.mrb[79].mxu0  ;;  %6344 = vmatmul.mubr.f32.gmra.mrb[102].mxu0 %v3235_v40  ;;  %v10629_v24 = vand.u32 4294901760, %v9676_v48  ;;  %v3255_v59 = vand.u32 4294901760, %v3254_v62 }
 0x4a9   :  { %11024 = vst [vmem:[#allocation112_spill] sm:$0xff] %v9681_v20  ;;  %v9694_v14 = vand.u32 4294901760, %v3060_v10  ;;  %v9697_v17 = vsub.f32 %v11027_v33, %v2910_v12  ;;  %v3245_v57 = vand.u32 4294901760, %v3244_v60  ;;  %v10634_v18 = vand.u32 4294901760, %v9681_v20  ;;  %v11031_v60 = vld [vmem:[#allocation83_spill] sm:$0xff] }
 0x4aa   :  { %11026 = vst [vmem:[#allocation115_spill] sm:$0xff] %v9691_v1  ;;  %v9701_v37 = vsub.f32 %v3061_v25, %v9688_v53  ;;  %v3063_v28 = vmul.f32 %v9691_v1, %v9691_v1  ;;  %v3274_v40 = vsub.f32 %v9676_v48, %v10629_v24 }
 0x4ab   :  { %11028 = vst [vmem:[#allocation23_spill] sm:$0xff] %v9697_v17  ;;  %v9709_v49 = vsub.f32 %v3060_v10, %v9694_v14  ;;  %v3062_v33 = vmul.f32 %v9697_v17, %v9697_v17  ;;  %v6280_v12 = vpop.f32.mrb[80].mxu0  ;;  %6346 = vmatprep.mubr.f32.mxu1 %v3245_v57  ;;  %v3264_v62 = vsub.f32 %v9681_v20, %v10634_v18  ;;  %v11035_v17 = vld [vmem:[#allocation22_spill] sm:$0xff] }
 0x4ac   :  { %11029 = vst [vmem:[#allocation24_spill] sm:$0xff] %v9701_v37  ;;  %v9716_v25 = vand.u32 4294901760, %v3063_v28  ;;  %v9719_v1 = vsub.f32 %v11031_v60, %v6280_v12  ;;  %v2922_v58 = vpop.f32.mrb[81].mxu0  ;;  %6347 = vmatmul.mubr.f32.vlgmr.msra.gmra.mrb[64].mxu1 %v3255_v59  ;;  %v10638_v24 = vand.u32 4294901760, %v9701_v37  ;;  %v3275_v60 = vand.u32 4294901760, %v3274_v40  ;;  %v11037_v59 = vld [vmem:[#allocation38_spill] sm:$0xff] }
 0x4ad   :  { %11030 = vst [vmem:[#allocation25_spill] sm:$0xff] %v9709_v49  ;;  %v9722_v10 = vand.u32 4294901760, %v3062_v33  ;;  %v9725_v51 = vsub.f32 %v11033_v56, %v2922_v58  ;;  %7089 = vmatpush3.bf16.msra.mxu1 %v11035_v17  ;;  %v3265_v57 = vand.u32 4294901760, %v3264_v62  ;;  %v10644_v6 = vand.u32 4294901760, %v9709_v49  ;;  %v11040_v40 = vld [vmem:[#allocation89_spill] sm:$0xff] }
 0x4ae   :  { %11032 = vst [vmem:[#allocation26_spill] sm:$0xff] %v9719_v1  ;;  %v9730_v18 = vsub.f32 %v3063_v28, %v9716_v25  ;;  %v3065_v12 = vmul.f32 %v9719_v1, %v9719_v1  ;;  %7091 = vmatprep.subr.bf16.mxu1 %v11037_v59  ;;  %v3294_v39 = vsub.f32 %v9701_v37, %v10638_v24  ;;  %v11078_v37 = vld [vmem:[#allocation110_spill] sm:$0xff] }
 0x4af   :  { %11034 = vst [vmem:[#allocation29_spill] sm:$0xff] %v9725_v51  ;;  %v9739_v56 = vsub.f32 %v3062_v33, %v9722_v10  ;;  %v3064_v58 = vmul.f32 %v9725_v51, %v9725_v51  ;;  %v6283_v17 = vpop.f32.mrb[82].mxu0  ;;  %6349 = vmatprep.mubr.f32.mxu1 %v3265_v57  ;;  %v3284_v28 = vsub.f32 %v9709_v49, %v10644_v6  ;;  %v11087_v49 = vld [vmem:[#allocation116_spill] sm:$0xff] }
 0x4b0   :  { %11036 = vst [vmem:[#allocation30_spill] sm:$0xff] %v9730_v18  ;;  %v9746_v62 = vand.u32 4294901760, %v3065_v12  ;;  %v9749_v1 = vsub.f32 %v11040_v40, %v6283_v17  ;;  %v2934_v16 = vpop.f32.mrb[83].mxu0  ;;  %6350 = vmatmul.mubr.f32.gmra.mrb[66].mxu1 %v3275_v60  ;;  %v10650_v24 = vand.u32 4294901760, %v9730_v18  ;;  %v3295_v40 = vand.u32 4294901760, %v3294_v39  ;;  %v11045_v60 = vld [vmem:[#allocation39_spill] sm:$0xff] }
 0x4b1   :  { %11038 = vst [vmem:[#allocation31_spill] sm:$0xff] %v9739_v56  ;;  %v9752_v33 = vand.u32 4294901760, %v3064_v58  ;;  %v9755_v8 = vsub.f32 %v11042_v46, %v2934_v16  ;;  %7093 = vmatpush3.bf16.msra.mxu1 %v11037_v59  ;;  %v3285_v57 = vand.u32 4294901760, %v3284_v28  ;;  %v10656_v51 = vand.u32 4294901760, %v9739_v56  ;;  %v11048_v39 = vld [vmem:[#allocation95_spill] sm:$0xff] }
 0x4b2   :  { %11039 = vst [vmem:[#allocation32_spill] sm:$0xff] %v9746_v62  ;;  %11041 = vst [vmem:[#allocation35_spill] sm:$0xff] %v9749_v1  ;;  %v9760_v6 = vsub.f32 %v3065_v12, %v9746_v62  ;;  %v3067_v17 = vmul.f32 %v9749_v1, %v9749_v1  ;;  %7095 = vmatprep.subr.bf16.mxu1 %v11045_v60  ;;  %v3314_v44 = vsub.f32 %v9730_v18, %v10650_v24 }
 0x4b3   :  { %11043 = vst [vmem:[#allocation36_spill] sm:$0xff] %v9755_v8  ;;  %v9769_v46 = vsub.f32 %v3064_v58, %v9752_v33  ;;  %v3066_v16 = vmul.f32 %v9755_v8, %v9755_v8  ;;  %v6286_v59 = vpop.f32.mrb[84].mxu0  ;;  %6352 = vmatprep.mubr.f32.mxu1 %v3285_v57  ;;  %v3304_v12 = vsub.f32 %v9739_v56, %v10656_v51 }
 0x4b4   :  { %11044 = vst [vmem:[#allocation41_spill] sm:$0xff] %v9760_v6  ;;  %v9776_v28 = vand.u32 4294901760, %v3067_v17  ;;  %v9779_v1 = vsub.f32 %v11048_v39, %v6286_v59  ;;  %v2946_v29 = vpop.f32.mrb[85].mxu0  ;;  %6353 = vmatmul.mubr.f32.gmra.mrb[68].mxu1 %v3295_v40  ;;  %v10660_v24 = vand.u32 4294901760, %v9760_v6  ;;  %v3315_v39 = vand.u32 4294901760, %v3314_v44  ;;  %v11057_v44 = vld [vmem:[#allocation101_spill] sm:$0xff] }
 0x4b5   :  { %11046 = vst [vmem:[#allocation42_spill] sm:$0xff] %v9769_v46  ;;  %v9782_v58 = vand.u32 4294901760, %v3066_v16  ;;  %v9785_v38 = vsub.f32 %v11051_v11, %v2946_v29  ;;  %v3305_v8 = vand.u32 4294901760, %v3304_v12  ;;  %7097 = vmatpush3.bf16.msra.mxu1 %v11045_v60  ;;  %v10668_v57 = vand.u32 4294901760, %v9769_v46 }
 0x4b6   :  { %11047 = vst [vmem:[#allocation46_spill] sm:$0xff] %v9776_v28  ;;  %11049 = vst [vmem:[#allocation47_spill] sm:$0xff] %v9779_v1  ;;  %v9790_v51 = vsub.f32 %v3067_v17, %v9776_v28  ;;  %v3069_v59 = vmul.f32 %v9779_v1, %v9779_v1  ;;  %v3334_v40 = vsub.f32 %v9760_v6, %v10660_v24  ;;  %7099 = vmatprep.subr.bf16.mxu1 %v11054_v50 }
 0x4b7   :  { %11050 = vst [vmem:[#allocation70_spill] sm:$0xff] %v9782_v58  ;;  %11052 = vst [vmem:[#allocation74_spill] sm:$0xff] %v9785_v38  ;;  %v9799_v11 = vsub.f32 %v3066_v16, %v9782_v58  ;;  %v3068_v29 = vmul.f32 %v9785_v38, %v9785_v38  ;;  %v6289_v60 = vpop.f32.mrb[86].mxu0  ;;  %6355 = vmatprep.mubr.f32.mxu1 %v3305_v8  ;;  %v3324_v17 = vsub.f32 %v9769_v46, %v10668_v57  ;;  %v11063_v46 = vld [vmem:[#allocation48_spill] sm:$0xff] }
 0x4b8   :  { %11053 = vst [vmem:[#allocation77_spill] sm:$0xff] %v9790_v51  ;;  %v9806_v12 = vand.u32 4294901760, %v3069_v59  ;;  %v9809_v1 = vsub.f32 %v11057_v44, %v6289_v60  ;;  %v2958_v24 = vpop.f32.mrb[87].mxu0  ;;  %6356 = vmatmul.mubr.f32.gmra.mrb[70].mxu1 %v3315_v39  ;;  %v10672_v6 = vand.u32 4294901760, %v9790_v51  ;;  %v3335_v44 = vand.u32 4294901760, %v3334_v40  ;;  %v11066_v40 = vld [vmem:[#allocation107_spill] sm:$0xff] }
 0x4b9   :  { %11055 = vst [vmem:[#allocation81_spill] sm:$0xff] %v9799_v11  ;;  %v9812_v16 = vand.u32 4294901760, %v3068_v29  ;;  %v9815_v18 = vsub.f32 %v11060_v35, %v2958_v24  ;;  %v3325_v38 = vand.u32 4294901760, %v3324_v17  ;;  %7101 = vmatpush3.bf16.msra.mxu1 %v11054_v50  ;;  %v10679_v8 = vand.u32 4294901760, %v9799_v11 }
 0x4ba   :  { %11056 = vst [vmem:[#allocation84_spill] sm:$0xff] %v9806_v12  ;;  %11058 = vst [vmem:[#allocation87_spill] sm:$0xff] %v9809_v1  ;;  %v9820_v57 = vsub.f32 %v3069_v59, %v9806_v12  ;;  %v3071_v60 = vmul.f32 %v9809_v1, %v9809_v1  ;;  %v3354_v39 = vsub.f32 %v9790_v51, %v10672_v6  ;;  %7103 = vmatprep.subr.bf16.mxu1 %v11063_v46 }
 0x4bb   :  { %11059 = vst [vmem:[#allocation90_spill] sm:$0xff] %v9812_v16  ;;  %11061 = vst [vmem:[#allocation93_spill] sm:$0xff] %v9815_v18  ;;  %v9829_v35 = vsub.f32 %v3068_v29, %v9812_v16  ;;  %v3070_v50 = vmul.f32 %v9815_v18, %v9815_v18  ;;  %v6292_v24 = vpop.f32.mrb[88].mxu0  ;;  %6358 = vmatprep.mubr.f32.mxu1 %v3325_v38  ;;  %v3344_v59 = vsub.f32 %v9799_v11, %v10679_v8  ;;  %v11072_v11 = vld [vmem:[#allocation52_spill] sm:$0xff] }
 0x4bc   :  { %11062 = vst [vmem:[#allocation96_spill] sm:$0xff] %v9820_v57  ;;  %v9836_v17 = vand.u32 4294901760, %v3071_v60  ;;  %v9839_v1 = vsub.f32 %v11066_v40, %v6292_v24  ;;  %v2970_v6 = vpop.f32.mrb[89].mxu0  ;;  %6359 = vmatmul.mubr.f32.gmra.mrb[72].mxu1 %v3335_v44  ;;  %v10683_v51 = vand.u32 4294901760, %v9820_v57  ;;  %v3355_v40 = vand.u32 4294901760, %v3354_v39  ;;  %v11075_v39 = vld [vmem:[#allocation113_spill] sm:$0xff] }
 0x4bd   :  { %11064 = vst [vmem:[#allocation99_spill] sm:$0xff] %v9829_v35  ;;  %v9842_v29 = vand.u32 4294901760, %v3070_v50  ;;  %v9845_v56 = vsub.f32 %v11069_v2, %v2970_v6  ;;  %v3345_v18 = vand.u32 4294901760, %v3344_v59  ;;  %v10690_v38 = vand.u32 4294901760, %v9829_v35  ;;  %7105 = vmatpush3.bf16.msra.mxu1 %v11063_v46 }
 0x4be   :  { %11065 = vst [vmem:[#allocation102_spill] sm:$0xff] %v9836_v17  ;;  %11067 = vst [vmem:[#allocation105_spill] sm:$0xff] %v9839_v1  ;;  %v9850_v8 = vsub.f32 %v3071_v60, %v9836_v17  ;;  %v3073_v24 = vmul.f32 %v9839_v1, %v9839_v1  ;;  %v3374_v44 = vsub.f32 %v9820_v57, %v10683_v51  ;;  %7107 = vmatprep.subr.bf16.mxu1 %v11072_v11 }
 0x4bf   :  { %11068 = vst [vmem:[#allocation108_spill] sm:$0xff] %v9842_v29  ;;  %11070 = vst [vmem:[#allocation111_spill] sm:$0xff] %v9845_v56  ;;  %v9859_v2 = vsub.f32 %v3070_v50, %v9842_v29  ;;  %v3072_v6 = vmul.f32 %v9845_v56, %v9845_v56  ;;  %v6295_v46 = vpop.f32.mrb[90].mxu0  ;;  %6361 = vmatprep.mubr.f32.mxu1 %v3345_v18  ;;  %v3364_v60 = vsub.f32 %v9829_v35, %v10690_v38  ;;  %v11081_v35 = vld [vmem:[#allocation55_spill] sm:$0xff] }
 0x4c0   :  { %11071 = vst [vmem:[#allocation114_spill] sm:$0xff] %v9850_v8  ;;  %v9866_v59 = vand.u32 4294901760, %v3073_v24  ;;  %v9869_v1 = vsub.f32 %v11075_v39, %v6295_v46  ;;  %v2982_v51 = vpop.f32.mrb[91].mxu0  ;;  %6362 = vmatmul.mubr.f32.gmra.mrb[74].mxu1 %v3355_v40  ;;  %v10694_v57 = vand.u32 4294901760, %v9850_v8  ;;  %v3375_v39 = vand.u32 4294901760, %v3374_v44  ;;  %v11084_v44 = vld [vmem:[#allocation118_spill] sm:$0xff] }
 0x4c1   :  { %11073 = vst [vmem:[#allocation117_spill] sm:$0xff] %v9859_v2  ;;  %v9872_v50 = vand.u32 4294901760, %v3072_v6  ;;  %v9875_v19 = vsub.f32 %v11078_v37, %v2982_v51  ;;  %v3365_v56 = vand.u32 4294901760, %v3364_v60  ;;  %v10702_v18 = vand.u32 4294901760, %v9859_v2  ;;  %7109 = vmatpush3.bf16.msra.mxu1 %v11072_v11 }
 0x4c2   :  { %11074 = vst [vmem:[#allocation119_spill] sm:$0xff] %v9866_v59  ;;  %11076 = vst [vmem:[#allocation121_spill] sm:$0xff] %v9869_v1  ;;  %v9880_v38 = vsub.f32 %v3073_v24, %v9866_v59  ;;  %v3075_v46 = vmul.f32 %v9869_v1, %v9869_v1  ;;  %v3394_v40 = vsub.f32 %v9850_v8, %v10694_v57  ;;  %7111 = vmatprep.subr.bf16.mxu1 %v11081_v35 }
 0x4c3   :  { %11077 = vst [vmem:[#allocation123_spill] sm:$0xff] %v9872_v50  ;;  %11079 = vst [vmem:[#allocation28_spill] sm:$0xff] %v9875_v19  ;;  %v9889_v51 = vsub.f32 %v3072_v6, %v9872_v50  ;;  %v3074_v37 = vmul.f32 %v9875_v19, %v9875_v19  ;;  %v6298_v11 = vpop.f32.mrb[92].mxu0  ;;  %6364 = vmatprep.mubr.f32.mxu1 %v3365_v56  ;;  %v3384_v24 = vsub.f32 %v9859_v2, %v10702_v18  ;;  %v11090_v2 = vld [vmem:[#allocation59_spill] sm:$0xff] }
 0x4c4   :  { %11080 = vst [vmem:[#allocation27_spill] sm:$0xff] %v9880_v38  ;;  %v9896_v60 = vand.u32 4294901760, %v3075_v46  ;;  %v9899_v1 = vsub.f32 %v11084_v44, %v6298_v11  ;;  %v2994_v57 = vpop.f32.mrb[93].mxu0  ;;  %6365 = vmatmul.mubr.f32.gmra.mrb[76].mxu1 %v3375_v39  ;;  %v10706_v8 = vand.u32 4294901760, %v9880_v38  ;;  %v3395_v44 = vand.u32 4294901760, %v3394_v40  ;;  %v11093_v40 = vld [vmem:[#allocation122_spill] sm:$0xff] }
 0x4c5   :  { %11082 = vst [vmem:[#allocation37_spill] sm:$0xff] %v9889_v51  ;;  %v9902_v6 = vand.u32 4294901760, %v3074_v37  ;;  %v9905_v48 = vsub.f32 %v11087_v49, %v2994_v57  ;;  %v3385_v19 = vand.u32 4294901760, %v3384_v24  ;;  %v10713_v56 = vand.u32 4294901760, %v9889_v51  ;;  %7113 = vmatpush3.bf16.msra.mxu1 %v11081_v35 }
 0x4c6   :  { %11083 = vst [vmem:[#allocation33_spill] sm:$0xff] %v9896_v60  ;;  %11085 = vst [vmem:[#allocation44_spill] sm:$0xff] %v9899_v1  ;;  %v9910_v18 = vsub.f32 %v3075_v46, %v9896_v60  ;;  %v3077_v11 = vmul.f32 %v9899_v1, %v9899_v1  ;;  %v3414_v39 = vsub.f32 %v9880_v38, %v10706_v8  ;;  %7115 = vmatprep.subr.bf16.mxu1 %v11090_v2 }
 0x4c7   :  { %11086 = vst [vmem:[#allocation40_spill] sm:$0xff] %v9902_v6  ;;  %11088 = vst [vmem:[#allocation51_spill] sm:$0xff] %v9905_v48  ;;  %v9919_v49 = vsub.f32 %v3074_v37, %v9902_v6  ;;  %v3076_v57 = vmul.f32 %v9905_v48, %v9905_v48  ;;  %v6301_v35 = vpop.f32.mrb[94].mxu0  ;;  %6367 = vmatprep.mubr.f32.mxu1 %v3385_v19  ;;  %v3404_v46 = vsub.f32 %v9889_v51, %v10713_v56  ;;  %v11098_v51 = vld [vmem:[#allocation34_spill] sm:$0xff] }
 0x4c8   :  { %11089 = vst [vmem:[#allocation49_spill] sm:$0xff] %v9910_v18  ;;  %v9926_v24 = vand.u32 4294901760, %v3077_v11  ;;  %v9929_v1 = vsub.f32 %v11093_v40, %v6301_v35  ;;  %v3006_v8 = vpop.f32.mrb[95].mxu0  ;;  %6368 = vmatmul.mubr.f32.gmra.mrb[78].mxu1 %v3395_v44  ;;  %v10716_v38 = vand.u32 4294901760, %v9910_v18  ;;  %v3415_v40 = vand.u32 4294901760, %v3414_v39 }
 0x4c9   :  { %11091 = vst [vmem:[#allocation58_spill] sm:$0xff] %v9919_v49  ;;  %v9932_v37 = vand.u32 4294901760, %v3076_v57  ;;  %v9935_v20 = vsub.f32 %v11096_v30, %v3006_v8  ;;  %v3405_v48 = vand.u32 4294901760, %v3404_v46  ;;  %v10720_v19 = vand.u32 4294901760, %v9919_v49  ;;  %7117 = vmatpush3.bf16.msra.mxu1 %v11090_v2 }
 0x4ca   :  { %11092 = vst [vmem:[#allocation54_spill] sm:$0xff] %v9926_v24  ;;  %11094 = vst [vmem:[#allocation64_spill] sm:$0xff] %v9929_v1  ;;  %v9940_v56 = vsub.f32 %v3077_v11, %v9926_v24  ;;  %v3079_v35 = vmul.f32 %v9929_v1, %v9929_v1  ;;  %v3434_v44 = vsub.f32 %v9910_v18, %v10716_v38  ;;  %7119 = vmatprep.subr.bf16.mxu1 %v11098_v51 }
 0x4cb   :  { %11095 = vst [vmem:[#allocation61_spill] sm:$0xff] %v9932_v37  ;;  %11097 = vst [vmem:[#allocation69_spill] sm:$0xff] %v9935_v20  ;;  %v9949_v30 = vsub.f32 %v3076_v57, %v9932_v37  ;;  %v3078_v8 = vmul.f32 %v9935_v20, %v9935_v20  ;;  %6370 = vmatprep.mubr.f32.mxu1 %v3405_v48  ;;  %v3424_v2 = vsub.f32 %v9919_v49, %v10720_v19 }
 0x4cc   :  { %v9956_v11 = vand.u32 4294901760, %v3079_v35  ;;  %6371 = vmatmul.mubr.f32.gmra.mrb[80].mxu1 %v3415_v40  ;;  %v10724_v39 = vand.u32 4294901760, %v9940_v56  ;;  %v3435_v18 = vand.u32 4294901760, %v3434_v44 }
 0x4cd   :  { %v9959_v46 = vand.u32 4294901760, %v3078_v8  ;;  %v3425_v38 = vand.u32 4294901760, %v3424_v2  ;;  %v10727_v1 = vand.u32 4294901760, %v9949_v30 }
 0x4ce   :  { %11099 = vst [vmem:[#allocation66_spill] sm:$0xff] %v9956_v11  ;;  %v9963_v57 = vsub.f32 %v3079_v35, %v9956_v11  ;;  %v3454_v48 = vsub.f32 %v9940_v56, %v10724_v39 }
 0x4cf   :  { %11100 = vst [vmem:[#allocation76_spill] sm:$0xff] %v9959_v46  ;;  %v9969_v19 = vsub.f32 %v3078_v8, %v9959_v46  ;;  %6373 = vmatprep.mubr.f32.mxu1 %v3425_v38  ;;  %v3444_v40 = vsub.f32 %v9949_v30, %v10727_v1  ;;  %v11120_v1 = vld [vmem:[#allocation81_spill] sm:$0xff] }
 0x4d0   :  { %6374 = vmatmul.mubr.f32.gmra.mrb[82].mxu1 %v3435_v18  ;;  %v10725_v2 = vand.u32 4294901760, %v9963_v57  ;;  %v3455_v49 = vand.u32 4294901760, %v3454_v48  ;;  %v11101_v18 = vld [vmem:[#allocation43_spill] sm:$0xff]  ;;  %v11106_v48 = vld [vmem:[#allocation73_spill] sm:$0xff] }
 0x4d1   :  { %v3445_v20 = vand.u32 4294901760, %v3444_v40  ;;  %v10726_v35 = vand.u32 4294901760, %v9969_v19  ;;  %v11107_v40 = vld [vmem:[#allocation80_spill] sm:$0xff] }
 0x4d2   :  { %v3474_v44 = vsub.f32 %v9963_v57, %v10725_v2  ;;  %v11118_v2 = vld [vmem:[#allocation15_spill] sm:$0xff] }
 0x4d3   :  { %6376 = vmatprep.mubr.f32.mxu1 %v3445_v20  ;;  %v3464_v38 = vsub.f32 %v9969_v19, %v10726_v35  ;;  %v11102_v20 = vld [vmem:[#allocation50_spill] sm:$0xff]  ;;  %v11119_v35 = vld [vmem:[#allocation41_spill] sm:$0xff] }
 0x4d4   :  { %6377 = vmatmul.mubr.f32.gmra.mrb[84].mxu1 %v3455_v49  ;;  %v3475_v39 = vand.u32 4294901760, %v3474_v44  ;;  %v11103_v49 = vld [vmem:[#allocation56_spill] sm:$0xff] }
 0x4d5   :  { %v3465_v8 = vand.u32 4294901760, %v3464_v38  ;;  %v11108_v44 = vld [vmem:[#allocation112_spill] sm:$0xff]  ;;  %v11109_v38 = vld [vmem:[#allocation17_spill] sm:$0xff] }
 0x4d7   :  { %6379 = vmatprep.mubr.f32.mxu1 %v3465_v8  ;;  %v11110_v8 = vld [vmem:[#allocation109_spill] sm:$0xff] }
 0x4d8   :  { %6380 = vmatmul.mubr.f32.gmra.mrb[86].mxu1 %v3475_v39  ;;  %v11105_v39 = vld [vmem:[#allocation67_spill] sm:$0xff] }
 0x4d9   :  { %6414 = vmatprep.mubr.f32.mxu1 %v9533_v5 }
 0x4dc   :  { %6415 = vmatmul.mubr.f32.vlgmr.msra.gmra.mrb[88].mxu1 %v9528_v47 }
 0x4dd   :  { %7121 = vmatpush3.bf16.msra.mxu1 %v11098_v51  ;;  %6417 = vmatprep.mubr.f32.mxu1 %v9554_v23  ;;  %v11104_v51 = vld [vmem:[#allocation62_spill] sm:$0xff] }
 0x4de   :  { %7123 = vmatprep.subr.bf16.mxu1 %v11101_v18 }
 0x4e0   :  { %6418 = vmatmul.mubr.f32.gmra.mrb[90].mxu1 %v9549_v13 }
 0x4e1   :  { %6420 = vmatprep.mubr.f32.mxu1 %v9582_v32  ;;  %7125 = vmatpush3.bf16.msra.mxu1 %v11101_v18  ;;  %v11111_v18 = vld [vmem:[#allocation25_spill] sm:$0xff] }
 0x4e2   :  { %7127 = vmatprep.subr.bf16.mxu1 %v11102_v20 }
 0x4e4   :  { %6421 = vmatmul.mubr.f32.gmra.mrb[92].mxu1 %v9576_v9 }
 0x4e5   :  { %6423 = vmatprep.mubr.f32.mxu1 %v9610_v42  ;;  %7129 = vmatpush3.bf16.msra.mxu1 %v11102_v20  ;;  %v11112_v20 = vld [vmem:[#allocation18_spill] sm:$0xff] }
 0x4e6   :  { %7131 = vmatprep.subr.bf16.mxu1 %v11103_v49 }
 0x4e8   :  { %6424 = vmatmul.mubr.f32.gmra.mrb[94].mxu1 %v9604_v4 }
 0x4e9   :  { %6426 = vmatprep.mubr.f32.mxu1 %v9638_v61  ;;  %7133 = vmatpush3.bf16.msra.mxu1 %v11103_v49  ;;  %v11113_v49 = vld [vmem:[#allocation24_spill] sm:$0xff] }
 0x4ea   :  { %7135 = vmatprep.subr.bf16.mxu1 %v11104_v51 }
 0x4ec   :  { %6427 = vmatmul.mubr.f32.gmra.mrb[64].mxu1 %v9632_v54 }
 0x4ed   :  { %6429 = vmatprep.mubr.f32.mxu1 %v9666_v7  ;;  %7137 = vmatpush3.bf16.msra.mxu1 %v11104_v51  ;;  %v11114_v51 = vld [vmem:[#allocation31_spill] sm:$0xff] }
 0x4ee   :  { %7139 = vmatprep.subr.bf16.mxu1 %v11105_v39 }
 0x4f0   :  { %6430 = vmatmul.mubr.f32.gmra.mrb[66].mxu1 %v9661_v26 }
 0x4f1   :  { %6432 = vmatprep.mubr.f32.mxu1 %v9694_v14  ;;  %7141 = vmatpush3.bf16.msra.mxu1 %v11105_v39  ;;  %v11115_v39 = vld [vmem:[#allocation19_spill] sm:$0xff] }
 0x4f2   :  { %7143 = vmatprep.subr.bf16.mxu1 %v11106_v48 }
 0x4f4   :  { %6433 = vmatmul.mubr.f32.gmra.mrb[68].mxu1 %v9688_v53 }
 0x4f5   :  { %6435 = vmatprep.mubr.f32.mxu1 %v9722_v10  ;;  %7145 = vmatpush3.bf16.msra.mxu1 %v11106_v48  ;;  %v11116_v48 = vld [vmem:[#allocation30_spill] sm:$0xff] }
 0x4f6   :  { %7147 = vmatprep.subr.bf16.mxu1 %v11107_v40 }
 0x4f8   :  { %6436 = vmatmul.mubr.f32.gmra.mrb[70].mxu1 %v9716_v25 }
 0x4f9   :  { %6438 = vmatprep.mubr.f32.mxu1 %v9752_v33  ;;  %7149 = vmatpush3.bf16.msra.mxu1 %v11107_v40  ;;  %v11117_v40 = vld [vmem:[#allocation42_spill] sm:$0xff] }
 0x4fa   :  { %7151 = vmatprep.subr.bf16.mxu1 %v8188_v3 }
 0x4fc   :  { %6439 = vmatmul.mubr.f32.gmra.mrb[72].mxu1 %v9746_v62  ;;  %v11135_v62 = vand.u32 4294901760, %v9597_v15 }
 0x4fd   :  { %6441 = vmatprep.mubr.f32.mxu1 %v9782_v58  ;;  %v11134_v58 = vand.u32 4294901760, %v9564_v55 }
 0x500   :  { %6442 = vmatmul.mubr.f32.gmra.mrb[74].mxu1 %v9776_v28  ;;  %v11133_v28 = vld [vmem:[#allocation53_spill] sm:$0xff] }
 0x501   :  { %6444 = vmatprep.mubr.f32.mxu1 %v9812_v16  ;;  %v11132_v16 = vand.u32 4294901760, %v9569_v41 }
 0x504   :  { %6445 = vmatmul.mubr.f32.gmra.mrb[76].mxu1 %v9806_v12  ;;  %v11131_v12 = vand.u32 4294901760, %v9539_v27 }
 0x505   :  { %6447 = vmatprep.mubr.f32.mxu1 %v9842_v29  ;;  %v11130_v29 = vand.u32 4294901760, %v9544_v22 }
 0x508   :  { %6448 = vmatmul.mubr.f32.gmra.mrb[78].mxu1 %v9836_v17  ;;  %v11129_v17 = vld [vmem:[#allocation49_spill] sm:$0xff] }
 0x509   :  { %6450 = vmatprep.mubr.f32.mxu1 %v9872_v50  ;;  %v11128_v50 = vld [vmem:[#allocation58_spill] sm:$0xff] }
 0x50c   :  { %6451 = vmatmul.mubr.f32.gmra.mrb[80].mxu1 %v9866_v59  ;;  %v11127_v59 = vld [vmem:[#allocation27_spill] sm:$0xff] }
 0x50d   :  { %6453 = vmatprep.mubr.f32.mxu1 %v9902_v6  ;;  %v11126_v6 = vld [vmem:[#allocation37_spill] sm:$0xff] }
 0x510   :  { %6454 = vmatmul.mubr.f32.gmra.mrb[82].mxu1 %v9896_v60  ;;  %v11125_v60 = vld [vmem:[#allocation114_spill] sm:$0xff] }
 0x511   :  { %6456 = vmatprep.mubr.f32.mxu1 %v9932_v37  ;;  %v11124_v37 = vld [vmem:[#allocation117_spill] sm:$0xff] }
 0x514   :  { %6457 = vmatmul.mubr.f32.gmra.mrb[84].mxu1 %v9926_v24  ;;  %v11123_v24 = vld [vmem:[#allocation96_spill] sm:$0xff] }
 0x515   :  { %6459 = vmatprep.mubr.f32.mxu1 %v9959_v46  ;;  %v11122_v46 = vld [vmem:[#allocation99_spill] sm:$0xff] }
 0x518   :  { %6460 = vmatmul.mubr.f32.gmra.mrb[86].mxu1 %v9956_v11  ;;  %v11121_v11 = vld [vmem:[#allocation77_spill] sm:$0xff] }
 0x519   :  { %6494 = vmatprep.mubr.f32.mxu1 %v9544_v22  ;;  %v11136_v22 = vld [vmem:[#allocation57_spill] sm:$0xff] }
 0x51c   :  { %6495 = vmatmul.mubr.f32.vlgmr.msra.gmra.mrb[88].mxu1 %v9539_v27  ;;  %v11137_v27 = vand.u32 4294901760, %v9589_v36 }
 0x51d   :  { %7153 = vmatpush3.bf16.msra.mxu1 %v8188_v3  ;;  %6497 = vmatprep.mubr.f32.mxu1 %v9569_v41  ;;  %v11139_v41 = vld [vmem:[#allocation16_spill] sm:$0xff] }
 0x51e   :  { %7155 = vmatprep.subr.bf16.mxu1 %v8208_v21 }
 0x520   :  { %6498 = vmatmul.mubr.f32.gmra.mrb[90].mxu1 %v9564_v55  ;;  %v11140_v55 = vand.u32 4294901760, %v9617_v34 }
 0x521   :  { %6500 = vmatprep.mubr.f32.mxu1 %v9597_v15  ;;  %7157 = vmatpush3.bf16.msra.mxu1 %v8208_v21  ;;  %v11141_v15 = vand.u32 4294901760, %v9653_v0 }
 0x522   :  { %7159 = vmatprep.subr.bf16.mxu1 %v8227_v31 }
 0x524   :  { %6501 = vmatmul.mubr.f32.gmra.mrb[92].mxu1 %v9589_v36  ;;  %v11143_v36 = vand.u32 4294901760, %v9645_v63 }
 0x525   :  { %6503 = vmatprep.mubr.f32.mxu1 %v9625_v52  ;;  %7161 = vmatpush3.bf16.msra.mxu1 %v8227_v31 }
 0x526   :  { %7163 = vmatprep.subr.bf16.mxu1 %v10877_v45 }
 0x528   :  { %6504 = vmatmul.mubr.f32.gmra.mrb[94].mxu1 %v9617_v34 }
 0x529   :  { %6506 = vmatprep.mubr.f32.mxu1 %v9653_v0  ;;  %7165 = vmatpush3.bf16.msra.mxu1 %v10877_v45  ;;  %v11146_v0 = vand.u32 4294901760, %v11110_v8 }
 0x52a   :  { %7167 = vmatprep.subr.bf16.mxu1 %v10880_v43 }
 0x52c   :  { %6507 = vmatmul.mubr.f32.gmra.mrb[64].mxu1 %v9645_v63  ;;  %v11148_v63 = vld [vmem:[#allocation65_spill] sm:$0xff] }
 0x52d   :  { %6509 = vmatprep.mubr.f32.mxu1 %v11108_v44  ;;  %7169 = vmatpush3.bf16.msra.mxu1 %v10880_v43 }
 0x52e   :  { %7171 = vmatprep.subr.bf16.mxu1 %v11109_v38 }
 0x530   :  { %6510 = vmatmul.mubr.f32.gmra.mrb[66].mxu1 %v11110_v8  ;;  %v11151_v8 = vld [vmem:[#allocation68_spill] sm:$0xff] }
 0x531   :  { %6512 = vmatprep.mubr.f32.mxu1 %v11111_v18  ;;  %7173 = vmatpush3.bf16.msra.mxu1 %v11109_v38 }
 0x532   :  { %7175 = vmatprep.subr.bf16.mxu1 %v11112_v20 }
 0x534   :  { %6513 = vmatmul.mubr.f32.gmra.mrb[68].mxu1 %v11113_v49 }
 0x535   :  { %6515 = vmatprep.mubr.f32.mxu1 %v11114_v51  ;;  %7177 = vmatpush3.bf16.msra.mxu1 %v11112_v20 }
 0x536   :  { %7179 = vmatprep.subr.bf16.mxu1 %v11115_v39 }
 0x538   :  { %6516 = vmatmul.mubr.f32.gmra.mrb[70].mxu1 %v11116_v48 }
 0x539   :  { %6518 = vmatprep.mubr.f32.mxu1 %v11117_v40  ;;  %7181 = vmatpush3.bf16.msra.mxu1 %v11115_v39 }
 0x53a   :  { %7183 = vmatprep.subr.bf16.mxu1 %v11118_v2 }
 0x53c   :  { %6519 = vmatmul.mubr.f32.gmra.mrb[72].mxu1 %v11119_v35 }
 0x53d   :  { %6521 = vmatprep.mubr.f32.mxu1 %v11120_v1 }
 0x540   :  { %6522 = vmatmul.mubr.f32.gmra.mrb[74].mxu1 %v11121_v11 }
 0x541   :  { %6524 = vmatprep.mubr.f32.mxu1 %v11122_v46 }
 0x544   :  { %6525 = vmatmul.mubr.f32.gmra.mrb[76].mxu1 %v11123_v24 }
 0x545   :  { %6527 = vmatprep.mubr.f32.mxu1 %v11124_v37 }
 0x548   :  { %6528 = vmatmul.mubr.f32.gmra.mrb[78].mxu1 %v11125_v60 }
 0x549   :  { %6530 = vmatprep.mubr.f32.mxu1 %v11126_v6 }
 0x54c   :  { %6531 = vmatmul.mubr.f32.gmra.mrb[80].mxu1 %v11127_v59 }
 0x54d   :  { %6533 = vmatprep.mubr.f32.mxu1 %v11128_v50 }
 0x550   :  { %6534 = vmatmul.mubr.f32.gmra.mrb[82].mxu1 %v11129_v17 }
 0x551   :  { %6536 = vmatprep.mubr.f32.mxu1 %v9949_v30 }
 0x554   :  { %6537 = vmatmul.mubr.f32.gmra.mrb[84].mxu1 %v9940_v56 }
 0x555   :  { %6539 = vmatprep.mubr.f32.mxu1 %v9969_v19 }
 0x558   :  { %6540 = vmatmul.mubr.f32.gmra.mrb[86].mxu1 %v9963_v57 }
 0x559   :  { %6574 = vmatprep.mubr.f32.mxu1 %v11130_v29 }
 0x55c   :  { %6575 = vmatmul.mubr.f32.vlgmr.msra.gmra.mrb[88].mxu1 %v11131_v12  ;;  %v11138_v12 = vand.u32 4294901760, %v9625_v52  ;;  %v11144_v52 = vand.u32 4294901760, %v11108_v44  ;;  %v11149_v44 = vand.u32 4294901760, %v11113_v49 }
 0x55d   :  { %7185 = vmatpush3.bf16.msra.mxu1 %v11118_v2  ;;  %6577 = vmatprep.mubr.f32.mxu1 %v11132_v16  ;;  %v11147_v16 = vand.u32 4294901760, %v11111_v18 }
 0x55e   :  { %7187 = vmatprep.subr.bf16.mxu1 %v11133_v28 }
 0x560   :  { %6578 = vmatmul.mubr.f32.gmra.mrb[90].mxu1 %v11134_v58 }
 0x561   :  { %6580 = vmatprep.mubr.f32.mxu1 %v11135_v62  ;;  %7189 = vmatpush3.bf16.msra.mxu1 %v11133_v28  ;;  %v11142_v62 = vld [vmem:[#allocation60_spill] sm:$0xff]  ;;  %v11145_v28 = vld [vmem:[#allocation63_spill] sm:$0xff] }
 0x562   :  { %7191 = vmatprep.subr.bf16.mxu1 %v11136_v22 }
 0x564   :  { %6581 = vmatmul.mubr.f32.gmra.mrb[92].mxu1 %v11137_v27 }
 0x565   :  { %6583 = vmatprep.mubr.f32.mxu1 %v11138_v12  ;;  %7193 = vmatpush3.bf16.msra.mxu1 %v11136_v22  ;;  %v11150_v22 = vand.u32 4294901760, %v11114_v51  ;;  %v11152_v12 = vand.u32 4294901760, %v11116_v48  ;;  %v11156_v48 = vand.u32 4294901760, %v11121_v11  ;;  %v11163_v11 = vand.u32 4294901760, %v11128_v50  ;;  %v11176_v50 = vld [vmem:[#allocation123_spill] sm:$0xff] }
 0x566   :  { %7195 = vmatprep.subr.bf16.mxu1 %v11139_v41 }
 0x568   :  { %6584 = vmatmul.mubr.f32.gmra.mrb[94].mxu1 %v11140_v55  ;;  %v11154_v55 = vand.u32 4294901760, %v11119_v35  ;;  %v11161_v35 = vand.u32 4294901760, %v11126_v6  ;;  %v11168_v6 = vand.u32 4294901760, %v9963_v57  ;;  %v11180_v57 = vld [vmem:[#allocation61_spill] sm:$0xff] }
 0x569   :  { %6586 = vmatprep.mubr.f32.mxu1 %v11141_v15  ;;  %7197 = vmatpush3.bf16.msra.mxu1 %v11139_v41  ;;  %v11153_v41 = vand.u32 4294901760, %v11117_v40  ;;  %v11155_v15 = vand.u32 4294901760, %v11120_v1  ;;  %v11157_v40 = vand.u32 4294901760, %v11122_v46  ;;  %v11162_v1 = vand.u32 4294901760, %v11127_v59  ;;  %v11175_v59 = vld [vmem:[#allocation102_spill] sm:$0xff] }
 0x56a   :  { %7199 = vmatprep.subr.bf16.mxu1 %v11142_v62  ;;  %v11164_v46 = vand.u32 4294901760, %v11129_v17  ;;  %v11174_v17 = vld [vmem:[#allocation108_spill] sm:$0xff] }
 0x56c   :  { %6587 = vmatmul.mubr.f32.gmra.mrb[64].mxu1 %v11143_v36  ;;  %v11159_v36 = vand.u32 4294901760, %v11124_v37  ;;  %v11166_v37 = vand.u32 4294901760, %v9940_v56  ;;  %v11177_v56 = vld [vmem:[#allocation119_spill] sm:$0xff] }
 0x56d   :  { %6589 = vmatprep.mubr.f32.mxu1 %v11144_v52  ;;  %7201 = vmatpush3.bf16.msra.mxu1 %v11142_v62  ;;  %v11158_v62 = vand.u32 4294901760, %v11123_v24  ;;  %v11160_v52 = vand.u32 4294901760, %v11125_v60  ;;  %v11165_v24 = vand.u32 4294901760, %v9949_v30  ;;  %v11167_v60 = vand.u32 4294901760, %v9969_v19  ;;  %v11178_v19 = vld [vmem:[#allocation40_spill] sm:$0xff]  ;;  %v11179_v30 = vld [vmem:[#allocation33_spill] sm:$0xff] }
 0x56e   :  { %7203 = vmatprep.subr.bf16.mxu1 %v11145_v28 }
 0x56f   :  { %v10110_v58 = vpop.f32.mrb[96].mxu0 }
 0x570   :  { %v10112_v34 = vpop.f32.mrb[97].mxu0  ;;  %6590 = vmatmul.mubr.f32.gmra.mrb[66].mxu1 %v11146_v0 }
 0x571   :  { %6592 = vmatprep.mubr.f32.mxu1 %v11147_v16  ;;  %7205 = vmatpush3.bf16.msra.mxu1 %v11145_v28 }
 0x572   :  { %7207 = vmatprep.subr.bf16.mxu1 %v11148_v63 }
 0x573   :  { %v10120_v29 = vpop.f32.mrb[98].mxu0 }
 0x574   :  { %v10122_v2 = vpop.f32.mrb[99].mxu0  ;;  %6593 = vmatmul.mubr.f32.gmra.mrb[68].mxu1 %v11149_v44 }
 0x575   :  { %6595 = vmatprep.mubr.f32.mxu1 %v11150_v22  ;;  %7209 = vmatpush3.bf16.msra.mxu1 %v11148_v63  ;;  %v10264_v63 = vld [vmem:[%s10386_s4 + $0x1] ss:$0 sm:$0xff] }
 0x576   :  { %7211 = vmatprep.subr.bf16.mxu1 %v11151_v8  ;;  %v11184_v22 = vld [vmem:[#allocation71_spill] sm:$0xff] }
 0x577   :  { %v10130_v18 = vpop.f32.mrb[100].mxu0 }
 0x578   :  { %v10132_v27 = vpop.f32.mrb[101].mxu0  ;;  %6596 = vmatmul.mubr.f32.gmra.mrb[70].mxu1 %v11152_v12  ;;  %v11185_v12 = vld [vmem:[#allocation75_spill] sm:$0xff] }
 0x579   :  { %6598 = vmatprep.mubr.f32.mxu1 %v11153_v41  ;;  %7213 = vmatpush3.bf16.msra.mxu1 %v11151_v8 }
 0x57a   :  { %7215 = vmatprep.subr.bf16.mxu1 %v8188_v3 }
 0x57b   :  { %v10140_v49 = vpop.f32.mrb[102].mxu0 }
 0x57c   :  { %v10142_v51 = vpop.f32.mrb[103].mxu0  ;;  %6599 = vmatmul.mubr.f32.gmra.mrb[72].mxu1 %v11154_v55 }
 0x57d   :  { %6601 = vmatprep.mubr.f32.mxu1 %v11155_v15 }
 0x580   :  { %6602 = vmatmul.mubr.f32.gmra.mrb[74].mxu1 %v11156_v48 }
 0x581   :  { %6604 = vmatprep.mubr.f32.mxu1 %v11157_v40 }
 0x584   :  { %6605 = vmatmul.mubr.f32.gmra.mrb[76].mxu1 %v11158_v62 }
 0x585   :  { %6607 = vmatprep.mubr.f32.mxu1 %v11159_v36 }
 0x588   :  { %6608 = vmatmul.mubr.f32.gmra.mrb[78].mxu1 %v11160_v52  ;;  %v11186_v52 = vld [vmem:[#allocation20_spill] sm:$0xff] }
 0x589   :  { %6610 = vmatprep.mubr.f32.mxu1 %v11161_v35 }
 0x58c   :  { %6611 = vmatmul.mubr.f32.gmra.mrb[80].mxu1 %v11162_v1 }
 0x58d   :  { %6613 = vmatprep.mubr.f32.mxu1 %v11163_v11 }
 0x590   :  { %6614 = vmatmul.mubr.f32.gmra.mrb[82].mxu1 %v11164_v46  ;;  %v11187_v46 = vld [vmem:[#allocation21_spill] sm:$0xff] }
 0x591   :  { %6616 = vmatprep.mubr.f32.mxu1 %v11165_v24 }
 0x594   :  { %6617 = vmatmul.mubr.f32.gmra.mrb[84].mxu1 %v11166_v37 }
 0x595   :  { %6619 = vmatprep.mubr.f32.mxu1 %v11167_v60 }
 0x598   :  { %6620 = vmatmul.mubr.f32.gmra.mrb[86].mxu1 %v11168_v6 }
 0x599   :  { %6654 = vmatprep.mubr.f32.mxu1 %v9533_v5 }
 0x59c   :  { %6655 = vmatmul.mubr.f32.vlgmr.msra.gmra.mrb[88].mxu1 %v9528_v47 }
 0x59d   :  { %7217 = vmatpush3.bf16.msra.mxu1 %v8188_v3  ;;  %6657 = vmatprep.mubr.f32.mxu1 %v9554_v23  ;;  %v11169_v3 = vld [vmem:[#allocation32_spill] sm:$0xff] }
 0x59e   :  { %7219 = vmatprep.subr.bf16.mxu1 %v8208_v21 }
 0x5a0   :  { %6658 = vmatmul.mubr.f32.gmra.mrb[90].mxu1 %v9549_v13 }
 0x5a1   :  { %6660 = vmatprep.mubr.f32.mxu1 %v9582_v32  ;;  %7221 = vmatpush3.bf16.msra.mxu1 %v8208_v21  ;;  %v11170_v21 = vld [vmem:[#allocation70_spill] sm:$0xff] }
 0x5a2   :  { %7223 = vmatprep.subr.bf16.mxu1 %v8227_v31 }
 0x5a4   :  { %6661 = vmatmul.mubr.f32.gmra.mrb[92].mxu1 %v9576_v9 }
 0x5a5   :  { %6663 = vmatprep.mubr.f32.mxu1 %v9610_v42  ;;  %7225 = vmatpush3.bf16.msra.mxu1 %v8227_v31  ;;  %v11171_v31 = vld [vmem:[#allocation46_spill] sm:$0xff] }
 0x5a6   :  { %7227 = vmatprep.subr.bf16.mxu1 %v10877_v45 }
 0x5a8   :  { %6664 = vmatmul.mubr.f32.gmra.mrb[94].mxu1 %v9604_v4 }
 0x5a9   :  { %6666 = vmatprep.mubr.f32.mxu1 %v9638_v61  ;;  %7229 = vmatpush3.bf16.msra.mxu1 %v10877_v45  ;;  %v11172_v45 = vld [vmem:[#allocation90_spill] sm:$0xff] }
 0x5aa   :  { %7231 = vmatprep.subr.bf16.mxu1 %v10880_v43 }
 0x5ac   :  { %6667 = vmatmul.mubr.f32.gmra.mrb[64].mxu1 %v9632_v54 }
 0x5ad   :  { %6669 = vmatprep.mubr.f32.mxu1 %v9666_v7  ;;  %7233 = vmatpush3.bf16.msra.mxu1 %v10880_v43  ;;  %v11173_v43 = vld [vmem:[#allocation84_spill] sm:$0xff] }
 0x5ae   :  { %7235 = vmatprep.subr.bf16.mxu1 %v11109_v38 }
 0x5b0   :  { %6670 = vmatmul.mubr.f32.gmra.mrb[66].mxu1 %v9661_v26 }
 0x5b1   :  { %6672 = vmatprep.mubr.f32.mxu1 %v9694_v14  ;;  %7237 = vmatpush3.bf16.msra.mxu1 %v11109_v38  ;;  %v11181_v38 = vld [vmem:[#allocation54_spill] sm:$0xff] }
 0x5b2   :  { %7239 = vmatprep.subr.bf16.mxu1 %v11112_v20 }
 0x5b4   :  { %6673 = vmatmul.mubr.f32.gmra.mrb[68].mxu1 %v9688_v53 }
 0x5b5   :  { %6675 = vmatprep.mubr.f32.mxu1 %v9722_v10  ;;  %7241 = vmatpush3.bf16.msra.mxu1 %v11112_v20  ;;  %v11182_v20 = vld [vmem:[#allocation76_spill] sm:$0xff] }
 0x5b6   :  { %7243 = vmatprep.subr.bf16.mxu1 %v11115_v39 }
 0x5b8   :  { %6676 = vmatmul.mubr.f32.gmra.mrb[70].mxu1 %v9716_v25 }
 0x5b9   :  { %6678 = vmatprep.mubr.f32.mxu1 %v9752_v33  ;;  %7245 = vmatpush3.bf16.msra.mxu1 %v11115_v39  ;;  %v11183_v39 = vld [vmem:[#allocation66_spill] sm:$0xff] }
 0x5bc   :  { %6679 = vmatmul.mubr.f32.gmra.mrb[72].mxu1 %v11169_v3 }
 0x5bd   :  { %6681 = vmatprep.mubr.f32.mxu1 %v11170_v21 }
 0x5c0   :  { %6682 = vmatmul.mubr.f32.gmra.mrb[74].mxu1 %v11171_v31 }
 0x5c1   :  { %6684 = vmatprep.mubr.f32.mxu1 %v11172_v45 }
 0x5c4   :  { %6685 = vmatmul.mubr.f32.gmra.mrb[76].mxu1 %v11173_v43 }
 0x5c5   :  { %6687 = vmatprep.mubr.f32.mxu1 %v11174_v17 }
 0x5c8   :  { %6688 = vmatmul.mubr.f32.gmra.mrb[78].mxu1 %v11175_v59 }
 0x5c9   :  { %6690 = vmatprep.mubr.f32.mxu1 %v11176_v50 }
 0x5cc   :  { %6691 = vmatmul.mubr.f32.gmra.mrb[80].mxu1 %v11177_v56 }
 0x5cd   :  { %6693 = vmatprep.mubr.f32.mxu1 %v11178_v19 }
 0x5d0   :  { %6694 = vmatmul.mubr.f32.gmra.mrb[82].mxu1 %v11179_v30 }
 0x5d1   :  { %6696 = vmatprep.mubr.f32.mxu1 %v11180_v57 }
 0x5d4   :  { %6697 = vmatmul.mubr.f32.gmra.mrb[84].mxu1 %v11181_v38 }
 0x5d5   :  { %6699 = vmatprep.mubr.f32.mxu1 %v11182_v20 }
 0x5d8   :  { %6700 = vmatmul.mubr.f32.gmra.mrb[86].mxu1 %v11183_v39 }
 0x5d9   :  { %6734 = vmatprep.mubr.f32.mxu1 %v9533_v5  ;;  %v3168_v5 = vadd.f32 1e-12, %v10112_v34  ;;  %v3228_v34 = vadd.f32 1e-12, %v10142_v51 }
 0x5dc   :  { %6735 = vmatmul.mubr.f32.vlgmr.msra.gmra.mrb[88].mxu1 %v9528_v47  ;;  %v3178_v47 = vadd.f32 1e-12, %v10110_v58  ;;  %v3238_v58 = vadd.f32 1e-12, %v10140_v49 }
 0x5dd   :  { %6737 = vmatprep.mubr.f32.mxu1 %v9554_v23 }
 0x5e0   :  { %6738 = vmatmul.mubr.f32.gmra.mrb[90].mxu1 %v9549_v13 }
 0x5e1   :  { %6740 = vmatprep.mubr.f32.mxu1 %v9582_v32  ;;  %v3198_v32 = vadd.f32 1e-12, %v10120_v29 }
 0x5e4   :  { %6741 = vmatmul.mubr.f32.gmra.mrb[92].mxu1 %v9576_v9 }
 0x5e5   :  { %6743 = vmatprep.mubr.f32.mxu1 %v9610_v42 }
 0x5e8   :  { %6744 = vmatmul.mubr.f32.gmra.mrb[94].mxu1 %v9604_v4  ;;  %v3188_v4 = vadd.f32 1e-12, %v10122_v2 }
 0x5e9   :  { %6746 = vmatprep.mubr.f32.mxu1 %v9638_v61 }
 0x5ec   :  { %6747 = vmatmul.mubr.f32.gmra.mrb[64].mxu1 %v9632_v54 }
 0x5ed   :  { %6749 = vmatprep.mubr.f32.mxu1 %v9666_v7  ;;  %v3218_v7 = vadd.f32 1e-12, %v10130_v18 }
 0x5f0   :  { %6750 = vmatmul.mubr.f32.gmra.mrb[66].mxu1 %v9661_v26 }
 0x5f1   :  { %6752 = vmatprep.mubr.f32.mxu1 %v9694_v14  ;;  %v3208_v14 = vadd.f32 1e-12, %v10132_v27  ;;  %v10270_v27 = vld [vmem:[%s10386_s4 + $0x2] ss:$0 sm:$0xff]  ;;  %s7985_s4 = smov [#allocation10]  }
 0x5f2   :  { %s5229_s29 = sshll.u32 %s7985_s4, 4  ;;  %s5230_s29 = int_to_ptr.vmem [resolvable:$true] %s5229_s29 }
 0x5f3   :  { %s7945_s30 = scalar_lea.vmem %s5230_s29, 4096  ;;  %p7950_p5 = scmp.lt.s32.totalorder %s5230_s29, %s5230_s29 }
 0x5f4   :  { %6753 = vmatmul.mubr.f32.gmra.mrb[68].mxu1 %v9688_v53  ;;  %p7946_p4 = scmp.ne.s32.totalorder %s5230_s29, %s7945_s30  ;;  %p7951_p6 = scmp.lt.s32.totalorder %s7945_s30, %s7945_s30 }
 0x5f5   :  { %6755 = vmatprep.mubr.f32.mxu1 %v9722_v10 }
 0x5f6   :  { %p7952_p7 = por %p7951_p6, %p7950_p5 }
 0x5f8   :  { %6756 = vmatmul.mubr.f32.gmra.mrb[70].mxu1 %v9716_v25  ;;  %p7953_p8 = pnand %p7952_p7, %p7946_p4 }
 0x5f9   :  { %6758 = vmatprep.mubr.f32.mxu1 %v9752_v33 }
 0x5fc   :  { %6759 = vmatmul.mubr.f32.gmra.mrb[72].mxu1 %v11169_v3 }
 0x5fd   :  { %6761 = vmatprep.mubr.f32.mxu1 %v11170_v21 }
 0x600   :  { %6762 = vmatmul.mubr.f32.gmra.mrb[74].mxu1 %v11171_v31 }
 0x601   :  { %6764 = vmatprep.mubr.f32.mxu1 %v11172_v45 }
 0x604   :  { %6765 = vmatmul.mubr.f32.gmra.mrb[76].mxu1 %v11173_v43 }
 0x605   :  { %6767 = vmatprep.mubr.f32.mxu1 %v11174_v17  ;;  %v11188_v17 = vld [vmem:[#allocation78_spill] sm:$0xff] }
 0x608   :  { %6768 = vmatmul.mubr.f32.gmra.mrb[78].mxu1 %v11175_v59 }
 0x609   :  { %6770 = vmatprep.mubr.f32.mxu1 %v11176_v50 }
 0x60c   :  { %6771 = vmatmul.mubr.f32.gmra.mrb[80].mxu1 %v11177_v56 }
 0x60d   :  { %6773 = vmatprep.mubr.f32.mxu1 %v11178_v19  ;;  %v11189_v19 = vld [vmem:[#allocation82_spill] sm:$0xff] }
 0x610   :  { %6774 = vmatmul.mubr.f32.gmra.mrb[82].mxu1 %v11179_v30 }
 0x611   :  { %6776 = vmatprep.mubr.f32.mxu1 %v11180_v57 }
 0x614   :  { %6777 = vmatmul.mubr.f32.gmra.mrb[84].mxu1 %v11181_v38 }
 0x615   :  { %6779 = vmatprep.mubr.f32.mxu1 %v11182_v20 }
 0x618   :  { %6780 = vmatmul.mubr.f32.gmra.mrb[86].mxu1 %v11183_v39 }
 0x6af   :  { %v6736_v13 = vpop.f32.mrb[88].mxu1 }
 0x6b0   :  { %v7263_v23 = vadd.f32 %v6736_v13, %v3178_v47  ;;  %v4864_v9 = vpop.f32.mrb[89].mxu1 }
 0x6b1   :  { %v7265_v26 = vadd.f32 %v4864_v9, %v3168_v5  ;;  %v11190_v9 = vld [vmem:[#allocation85_spill] sm:$0xff] }
 0x6b2   :  { %7753 = vrsqrt.f32 %v7263_v23 }
 0x6b3   :  { %7755 = vrsqrt.f32 %v7265_v26  ;;  %v6739_v42 = vpop.f32.mrb[90].mxu1 }
 0x6b4   :  { %v7267_v54 = vadd.f32 %v6739_v42, %v3198_v32  ;;  %v4876_v61 = vpop.f32.mrb[91].mxu1  ;;  %v11191_v42 = vld [vmem:[#allocation88_spill] sm:$0xff] }
 0x6b5   :  { %v7269_v53 = vadd.f32 %v4876_v61, %v3188_v4 }
 0x6b6   :  { %7757 = vrsqrt.f32 %v7267_v54 }
 0x6b7   :  { %7759 = vrsqrt.f32 %v7269_v53  ;;  %v6742_v25 = vpop.f32.mrb[92].mxu1 }
 0x6b8   :  { %v7271_v10 = vadd.f32 %v6742_v25, %v3218_v7  ;;  %v4888_v33 = vpop.f32.mrb[93].mxu1 }
 0x6b9   :  { %v7273_v28 = vadd.f32 %v4888_v33, %v3208_v14 }
 0x6ba   :  { %7761 = vrsqrt.f32 %v7271_v10 }
 0x6bb   :  { %7763 = vrsqrt.f32 %v7273_v28  ;;  %v6745_v0 = vpop.f32.mrb[94].mxu1 }
 0x6bc   :  { %v7754_v16 = vpop.eup %7753  ;;  %v7275_v29 = vadd.f32 %v6745_v0, %v3238_v58  ;;  %v4900_v2 = vpop.f32.mrb[95].mxu1  ;;  %v11192_v58 = vld [vmem:[#allocation91_spill] sm:$0xff] }
 0x6bd   :  { %v7756_v44 = vpop.eup %7755  ;;  %v5087_v8 = vmul.f32 %v7754_v16, %v11184_v22  ;;  %v7277_v18 = vadd.f32 %v4900_v2, %v3228_v34 }
 0x6be   :  { %v5086_v41 = vmul.f32 %v7756_v44, %v11185_v12  ;;  %7765 = vrsqrt.f32 %v7275_v29  ;;  %v11193_v29 = vld [vmem:[#allocation94_spill] sm:$0xff] }
 0x6bf   :  { %v5124_v49 = vmul.f32 %v10264_v63, %v5087_v8  ;;  %7767 = vrsqrt.f32 %v7277_v18  ;;  %v6748_v51 = vpop.f32.mrb[64].mxu1 }
 0x6c0   :  { %v7758_v55 = vpop.eup %7757  ;;  %v5123_v15 = vmul.f32 %v10264_v63, %v5086_v41  ;;  %v7278_v48 = vadd.f32 1e-12, %v6748_v51  ;;  %v4912_v40 = vpop.f32.mrb[65].mxu1 }
 0x6c1   :  { %v7760_v62 = vpop.eup %7759  ;;  %v5161_v36 = vadd.f32 %v10270_v27, %v5124_v49  ;;  %v5089_v35 = vmul.f32 %v7758_v55, %v11186_v52  ;;  %v7279_v1 = vadd.f32 1e-12, %v4912_v40  ;;  %v11194_v55 = vld [vmem:[#allocation97_spill] sm:$0xff] }
 0x6c2   :  { %v5160_v11 = vadd.f32 %v10270_v27, %v5123_v15  ;;  %v5088_v24 = vmul.f32 %v7760_v62, %v11187_v46  ;;  %7769 = vrsqrt.f32 %v7278_v48  ;;  %v11195_v62 = vld [vmem:[#allocation100_spill] sm:$0xff] }
 0x6c3   :  { %5193 = vst [vmem:[#allocation10 + $0x8] sm:$0xff] %v5161_v36  ;;  %v5126_v37 = vmul.f32 %v10264_v63, %v5089_v35  ;;  %7771 = vrsqrt.f32 %v7279_v1  ;;  %v6751_v60 = vpop.f32.mrb[66].mxu1 }
 0x6c4   :  { %v7762_v6 = vpop.eup %7761  ;;  %5192 = vst [vmem:[#allocation10] sm:$0xff] %v5160_v11  ;;  %v5125_v3 = vmul.f32 %v10264_v63, %v5088_v24  ;;  %v7280_v21 = vadd.f32 1e-12, %v6751_v60  ;;  %v4924_v31 = vpop.f32.mrb[67].mxu1 }
 0x6c5   :  { %v7764_v45 = vpop.eup %7763  ;;  %v5163_v43 = vadd.f32 %v10270_v27, %v5126_v37  ;;  %v5091_v59 = vmul.f32 %v7762_v6, %v11188_v17  ;;  %v7281_v50 = vadd.f32 1e-12, %v4924_v31  ;;  %v11196_v6 = vld [vmem:[#allocation103_spill] sm:$0xff] }
 0x6c6   :  { %v5162_v56 = vadd.f32 %v10270_v27, %v5125_v3  ;;  %v5090_v30 = vmul.f32 %v7764_v45, %v11189_v19  ;;  %7773 = vrsqrt.f32 %v7280_v21  ;;  %v11197_v45 = vld [vmem:[#allocation106_spill] sm:$0xff] }
 0x6c7   :  { %5195 = vst [vmem:[#allocation10 + $0x18] sm:$0xff] %v5163_v43  ;;  %v5128_v57 = vmul.f32 %v10264_v63, %v5091_v59  ;;  %7775 = vrsqrt.f32 %v7281_v50  ;;  %v6754_v38 = vpop.f32.mrb[68].mxu1 }
 0x6c8   :  { %v7766_v20 = vpop.eup %7765  ;;  %5194 = vst [vmem:[#allocation10 + $0x10] sm:$0xff] %v5162_v56  ;;  %v5127_v39 = vmul.f32 %v10264_v63, %v5090_v30  ;;  %v7282_v47 = vadd.f32 1e-12, %v6754_v38  ;;  %v4936_v5 = vpop.f32.mrb[69].mxu1 }
 0x6c9   :  { %v7768_v13 = vpop.eup %7767  ;;  %v5165_v23 = vadd.f32 %v10270_v27, %v5128_v57  ;;  %v5093_v26 = vmul.f32 %v7766_v20, %v11190_v9  ;;  %v7283_v32 = vadd.f32 1e-12, %v4936_v5  ;;  %v11198_v20 = vld [vmem:[#allocation115_spill] sm:$0xff] }
 0x6ca   :  { %v5164_v4 = vadd.f32 %v10270_v27, %v5127_v39  ;;  %v5092_v54 = vmul.f32 %v7768_v13, %v11191_v42  ;;  %7777 = vrsqrt.f32 %v7282_v47  ;;  %v11199_v13 = vld [vmem:[#allocation23_spill] sm:$0xff] }
 0x6cb   :  { %5197 = vst [vmem:[#allocation10 + $0x28] sm:$0xff] %v5165_v23  ;;  %v5130_v61 = vmul.f32 %v10264_v63, %v5093_v26  ;;  %7779 = vrsqrt.f32 %v7283_v32  ;;  %v6757_v53 = vpop.f32.mrb[70].mxu1 }
 0x6cc   :  { %v7770_v7 = vpop.eup %7769  ;;  %5196 = vst [vmem:[#allocation10 + $0x20] sm:$0xff] %v5164_v4  ;;  %v5129_v14 = vmul.f32 %v10264_v63, %v5092_v54  ;;  %v7284_v25 = vadd.f32 1e-12, %v6757_v53  ;;  %v4948_v10 = vpop.f32.mrb[71].mxu1 }
 0x6cd   :  { %v7772_v33 = vpop.eup %7771  ;;  %v5167_v28 = vadd.f32 %v10270_v27, %v5130_v61  ;;  %v5095_v34 = vmul.f32 %v7770_v7, %v11192_v58  ;;  %v7285_v0 = vadd.f32 1e-12, %v4948_v10  ;;  %v11200_v7 = vld [vmem:[#allocation26_spill] sm:$0xff] }
 0x6ce   :  { %v5166_v16 = vadd.f32 %v10270_v27, %v5129_v14  ;;  %v5094_v2 = vmul.f32 %v7772_v33, %v11193_v29  ;;  %7781 = vrsqrt.f32 %v7284_v25  ;;  %v11201_v33 = vld [vmem:[#allocation29_spill] sm:$0xff] }
 0x6cf   :  { %5199 = vst [vmem:[#allocation10 + $0x38] sm:$0xff] %v5167_v28  ;;  %v5132_v44 = vmul.f32 %v10264_v63, %v5095_v34  ;;  %7783 = vrsqrt.f32 %v7285_v0  ;;  %v6760_v22 = vpop.f32.mrb[72].mxu1 }
 0x6d0   :  { %v7774_v8 = vpop.eup %7773  ;;  %5198 = vst [vmem:[#allocation10 + $0x30] sm:$0xff] %v5166_v16  ;;  %v5131_v18 = vmul.f32 %v10264_v63, %v5094_v2  ;;  %v7286_v12 = vadd.f32 1e-12, %v6760_v22  ;;  %v4960_v41 = vpop.f32.mrb[73].mxu1 }
 0x6d1   :  { %v7776_v49 = vpop.eup %7775  ;;  %v5169_v51 = vadd.f32 %v10270_v27, %v5132_v44  ;;  %v5097_v15 = vmul.f32 %v7774_v8, %v11194_v55  ;;  %v7287_v48 = vadd.f32 1e-12, %v4960_v41  ;;  %v11202_v8 = vld [vmem:[#allocation35_spill] sm:$0xff] }
 0x6d2   :  { %v5168_v40 = vadd.f32 %v10270_v27, %v5131_v18  ;;  %v5096_v36 = vmul.f32 %v7776_v49, %v11195_v62  ;;  %7785 = vrsqrt.f32 %v7286_v12  ;;  %v11203_v49 = vld [vmem:[#allocation36_spill] sm:$0xff] }
 0x6d3   :  { %5201 = vst [vmem:[#allocation10 + $0x48] sm:$0xff] %v5169_v51  ;;  %v5134_v52 = vmul.f32 %v10264_v63, %v5097_v15  ;;  %7787 = vrsqrt.f32 %v7287_v48  ;;  %v6763_v35 = vpop.f32.mrb[74].mxu1 }
 0x6d4   :  { %v7778_v1 = vpop.eup %7777  ;;  %5200 = vst [vmem:[#allocation10 + $0x40] sm:$0xff] %v5168_v40  ;;  %v5133_v11 = vmul.f32 %v10264_v63, %v5096_v36  ;;  %v7288_v46 = vadd.f32 1e-12, %v6763_v35  ;;  %v4972_v24 = vpop.f32.mrb[75].mxu1 }
 0x6d5   :  { %v7780_v37 = vpop.eup %7779  ;;  %v5171_v60 = vadd.f32 %v10270_v27, %v5134_v52  ;;  %v5099_v3 = vmul.f32 %v7778_v1, %v11196_v6  ;;  %v7289_v21 = vadd.f32 1e-12, %v4972_v24  ;;  %v11204_v1 = vld [vmem:[#allocation47_spill] sm:$0xff] }
 0x6d6   :  { %v5170_v31 = vadd.f32 %v10270_v27, %v5133_v11  ;;  %v5098_v43 = vmul.f32 %v7780_v37, %v11197_v45  ;;  %7789 = vrsqrt.f32 %v7288_v46  ;;  %v11205_v37 = vld [vmem:[#allocation74_spill] sm:$0xff] }
 0x6d7   :  { %5203 = vst [vmem:[#allocation10 + $0x58] sm:$0xff] %v5171_v60  ;;  %v5136_v17 = vmul.f32 %v10264_v63, %v5099_v3  ;;  %7791 = vrsqrt.f32 %v7289_v21  ;;  %v6766_v59 = vpop.f32.mrb[76].mxu1 }
 0x6d8   :  { %v7782_v50 = vpop.eup %7781  ;;  %5202 = vst [vmem:[#allocation10 + $0x50] sm:$0xff] %v5170_v31  ;;  %v5135_v56 = vmul.f32 %v10264_v63, %v5098_v43  ;;  %v7290_v19 = vadd.f32 1e-12, %v6766_v59  ;;  %v4984_v30 = vpop.f32.mrb[77].mxu1 }
 0x6d9   :  { %v7784_v57 = vpop.eup %7783  ;;  %v5173_v38 = vadd.f32 %v10270_v27, %v5136_v17  ;;  %v5101_v39 = vmul.f32 %v7782_v50, %v11198_v20  ;;  %v7291_v47 = vadd.f32 1e-12, %v4984_v30  ;;  %v11206_v50 = vld [vmem:[#allocation87_spill] sm:$0xff] }
 0x6da   :  { %v5172_v5 = vadd.f32 %v10270_v27, %v5135_v56  ;;  %v5100_v23 = vmul.f32 %v7784_v57, %v11199_v13  ;;  %7793 = vrsqrt.f32 %v7290_v19  ;;  %v11207_v57 = vld [vmem:[#allocation93_spill] sm:$0xff] }
 0x6db   :  { %5205 = vst [vmem:[#allocation10 + $0x68] sm:$0xff] %v5173_v38  ;;  %v5138_v9 = vmul.f32 %v10264_v63, %v5101_v39  ;;  %7795 = vrsqrt.f32 %v7291_v47  ;;  %v6769_v26 = vpop.f32.mrb[78].mxu1 }
 0x6dc   :  { %v7786_v32 = vpop.eup %7785  ;;  %5204 = vst [vmem:[#allocation10 + $0x60] sm:$0xff] %v5172_v5  ;;  %v5137_v4 = vmul.f32 %v10264_v63, %v5100_v23  ;;  %v7292_v42 = vadd.f32 1e-12, %v6769_v26  ;;  %v4996_v54 = vpop.f32.mrb[79].mxu1 }
 0x6dd   :  { %v7788_v61 = vpop.eup %7787  ;;  %v5175_v53 = vadd.f32 %v10270_v27, %v5138_v9  ;;  %v5103_v14 = vmul.f32 %v7786_v32, %v11200_v7  ;;  %v7293_v25 = vadd.f32 1e-12, %v4996_v54  ;;  %v11208_v32 = vld [vmem:[#allocation105_spill] sm:$0xff] }
 0x6de   :  { %v5174_v10 = vadd.f32 %v10270_v27, %v5137_v4  ;;  %v5102_v28 = vmul.f32 %v7788_v61, %v11201_v33  ;;  %7797 = vrsqrt.f32 %v7292_v42  ;;  %v11209_v61 = vld [vmem:[#allocation111_spill] sm:$0xff] }
 0x6df   :  { %5207 = vst [vmem:[#allocation10 + $0x78] sm:$0xff] %v5175_v53  ;;  %v5140_v58 = vmul.f32 %v10264_v63, %v5103_v14  ;;  %7799 = vrsqrt.f32 %v7293_v25  ;;  %v6772_v34 = vpop.f32.mrb[80].mxu1 }
 0x6e0   :  { %v7790_v0 = vpop.eup %7789  ;;  %5206 = vst [vmem:[#allocation10 + $0x70] sm:$0xff] %v5174_v10  ;;  %v5139_v16 = vmul.f32 %v10264_v63, %v5102_v28  ;;  %v7294_v29 = vadd.f32 1e-12, %v6772_v34  ;;  %v5008_v2 = vpop.f32.mrb[81].mxu1  ;;  %v11210_v28 = vld [vmem:[#allocation121_spill] sm:$0xff] }
 0x6e1   :  { %v7792_v44 = vpop.eup %7791  ;;  %v5177_v22 = vadd.f32 %v10270_v27, %v5140_v58  ;;  %v5105_v18 = vmul.f32 %v7790_v0, %v11202_v8  ;;  %v7295_v12 = vadd.f32 1e-12, %v5008_v2  ;;  %v11211_v0 = vld [vmem:[#allocation28_spill] sm:$0xff] }
 0x6e2   :  { %v5176_v41 = vadd.f32 %v10270_v27, %v5139_v16  ;;  %v5104_v51 = vmul.f32 %v7792_v44, %v11203_v49  ;;  %7801 = vrsqrt.f32 %v7294_v29  ;;  %v11213_v49 = vld [vmem:[#allocation51_spill] sm:$0xff] }
 0x6e3   :  { %5209 = vst [vmem:[#allocation10 + $0x88] sm:$0xff] %v5177_v22  ;;  %v5142_v55 = vmul.f32 %v10264_v63, %v5105_v18  ;;  %7803 = vrsqrt.f32 %v7295_v12  ;;  %v6775_v15 = vpop.f32.mrb[82].mxu1  ;;  %v11212_v18 = vld [vmem:[#allocation44_spill] sm:$0xff] }
 0x6e4   :  { %v7794_v48 = vpop.eup %7793  ;;  %5208 = vst [vmem:[#allocation10 + $0x80] sm:$0xff] %v5176_v41  ;;  %v5141_v40 = vmul.f32 %v10264_v63, %v5104_v51  ;;  %v7296_v62 = vadd.f32 1e-12, %v6775_v15  ;;  %v5020_v36 = vpop.f32.mrb[83].mxu1 }
 0x6e5   :  { %v7796_v52 = vpop.eup %7795  ;;  %v5179_v35 = vadd.f32 %v10270_v27, %v5142_v55  ;;  %v5107_v11 = vmul.f32 %v7794_v48, %v11204_v1  ;;  %v7297_v46 = vadd.f32 1e-12, %v5020_v36  ;;  %v11214_v36 = vld [vmem:[#allocation64_spill] sm:$0xff]  ;;  %v11215_v1 = vld [vmem:[#allocation69_spill] sm:$0xff] }
 0x6e6   :  { %v5178_v24 = vadd.f32 %v10270_v27, %v5141_v40  ;;  %v5106_v60 = vmul.f32 %v7796_v52, %v11205_v37  ;;  %7805 = vrsqrt.f32 %v7296_v62 }
 0x6e7   :  { %5211 = vst [vmem:[#allocation10 + $0x98] sm:$0xff] %v5179_v35  ;;  %v5144_v6 = vmul.f32 %v10264_v63, %v5107_v11  ;;  %7807 = vrsqrt.f32 %v7297_v46  ;;  %v6778_v3 = vpop.f32.mrb[84].mxu1 }
 0x6e8   :  { %v7798_v21 = vpop.eup %7797  ;;  %5210 = vst [vmem:[#allocation10 + $0x90] sm:$0xff] %v5178_v24  ;;  %v5143_v31 = vmul.f32 %v10264_v63, %v5106_v60  ;;  %v7298_v45 = vadd.f32 1e-12, %v6778_v3  ;;  %v5032_v43 = vpop.f32.mrb[85].mxu1 }
 0x6e9   :  { %v7800_v17 = vpop.eup %7799  ;;  %v5181_v59 = vadd.f32 %v10270_v27, %v5144_v6  ;;  %v5109_v56 = vmul.f32 %v7798_v21, %v11206_v50  ;;  %v7299_v19 = vadd.f32 1e-12, %v5032_v43 }
 0x6ea   :  { %v5180_v30 = vadd.f32 %v10270_v27, %v5143_v31  ;;  %v5108_v38 = vmul.f32 %v7800_v17, %v11207_v57  ;;  %7809 = vrsqrt.f32 %v7298_v45 }
 0x6eb   :  { %5213 = vst [vmem:[#allocation10 + $0xa8] sm:$0xff] %v5181_v59  ;;  %v5146_v20 = vmul.f32 %v10264_v63, %v5109_v56  ;;  %7811 = vrsqrt.f32 %v7299_v19  ;;  %v6781_v39 = vpop.f32.mrb[86].mxu1 }
 0x6ec   :  { %v7802_v47 = vpop.eup %7801  ;;  %5212 = vst [vmem:[#allocation10 + $0xa0] sm:$0xff] %v5180_v30  ;;  %v5145_v5 = vmul.f32 %v10264_v63, %v5108_v38  ;;  %v7300_v13 = vadd.f32 1e-12, %v6781_v39  ;;  %v5044_v23 = vpop.f32.mrb[87].mxu1 }
 0x6ed   :  { %v7804_v9 = vpop.eup %7803  ;;  %v5183_v26 = vadd.f32 %v10270_v27, %v5146_v20  ;;  %v5111_v4 = vmul.f32 %v7802_v47, %v11208_v32  ;;  %v7301_v42 = vadd.f32 1e-12, %v5044_v23 }
 0x6ee   :  { %v5182_v54 = vadd.f32 %v10270_v27, %v5145_v5  ;;  %v5110_v53 = vmul.f32 %v7804_v9, %v11209_v61  ;;  %7813 = vrsqrt.f32 %v7300_v13 }
 0x6ef   :  { %5215 = vst [vmem:[#allocation10 + $0xb8] sm:$0xff] %v5183_v26  ;;  %v5148_v7 = vmul.f32 %v10264_v63, %v5111_v4  ;;  %7815 = vrsqrt.f32 %v7301_v42 }
 0x6f0   :  { %v7806_v14 = vpop.eup %7805  ;;  %5214 = vst [vmem:[#allocation10 + $0xb0] sm:$0xff] %v5182_v54  ;;  %v5147_v25 = vmul.f32 %v10264_v63, %v5110_v53 }
 0x6f1   :  { %v7808_v10 = vpop.eup %7807  ;;  %v5185_v33 = vadd.f32 %v10270_v27, %v5148_v7  ;;  %v5113_v58 = vmul.f32 %v7806_v14, %v11210_v28 }
 0x6f2   :  { %v5184_v34 = vadd.f32 %v10270_v27, %v5147_v25  ;;  %v5112_v16 = vmul.f32 %v7808_v10, %v11211_v0 }
 0x6f3   :  { %5217 = vst [vmem:[#allocation10 + $0xc8] sm:$0xff] %v5185_v33  ;;  %v5150_v29 = vmul.f32 %v10264_v63, %v5113_v58 }
 0x6f4   :  { %v7810_v2 = vpop.eup %7809  ;;  %5216 = vst [vmem:[#allocation10 + $0xc0] sm:$0xff] %v5184_v34  ;;  %v5149_v44 = vmul.f32 %v10264_v63, %v5112_v16 }
 0x6f5   :  { %v7812_v22 = vpop.eup %7811  ;;  %v5187_v8 = vadd.f32 %v10270_v27, %v5150_v29  ;;  %v5115_v12 = vmul.f32 %v7810_v2, %v11212_v18 }
 0x6f6   :  { %v5186_v41 = vadd.f32 %v10270_v27, %v5149_v44  ;;  %v5114_v51 = vmul.f32 %v7812_v22, %v11213_v49 }
 0x6f7   :  { %5219 = vst [vmem:[#allocation10 + $0xd8] sm:$0xff] %v5187_v8  ;;  %v5152_v55 = vmul.f32 %v10264_v63, %v5115_v12 }
 0x6f8   :  { %v7814_v15 = vpop.eup %7813  ;;  %5218 = vst [vmem:[#allocation10 + $0xd0] sm:$0xff] %v5186_v41  ;;  %v5151_v48 = vmul.f32 %v10264_v63, %v5114_v51 }
 0x6f9   :  { %v7816_v40 = vpop.eup %7815  ;;  %v5189_v62 = vadd.f32 %v10270_v27, %v5152_v55  ;;  %v5117_v52 = vmul.f32 %v7814_v15, %v11214_v36 }
 0x6fa   :  { %v5188_v35 = vadd.f32 %v10270_v27, %v5151_v48  ;;  %v5116_v11 = vmul.f32 %v7816_v40, %v11215_v1 }
 0x6fb   :  { %5221 = vst [vmem:[#allocation10 + $0xe8] sm:$0xff] %v5189_v62  ;;  %v5154_v46 = vmul.f32 %v10264_v63, %v5117_v52 }
 0x6fc   :  { %5220 = vst [vmem:[#allocation10 + $0xe0] sm:$0xff] %v5188_v35  ;;  %v5153_v24 = vmul.f32 %v10264_v63, %v5116_v11 }
 0x6fd   :  { %v5191_v37 = vadd.f32 %v10270_v27, %v5154_v46 }
 0x6fe   :  { %v5190_v60 = vadd.f32 %v10270_v27, %v5153_v24 }
 0x6ff   :  { %5223 = vst [vmem:[#allocation10 + $0xf8] sm:$0xff] %v5191_v37 }
 0x700   :  { %5222 = vst [vmem:[#allocation10 + $0xf0] sm:$0xff] %v5190_v60 }
 0x701   :  { %7956 = shalt.err (!%p7953_p8)
}
 0x702   :  { %s7957_s9 = scalar_lea.hbm %s10388_s6, 4096 }
 0x703   :  { %p7958_p9 = scmp.ne.s32.totalorder %s10388_s6, %s7957_s9  ;;  %p7961_p10 = scmp.lt.u32.totalorder %s7957_s9, %s10388_s6 }
 0x705   :  { %p7963_p11 = pnand %p7961_p10, %p7958_p9 }
 0x707   :  { %7966 = shalt.err (!%p7963_p11)
}
 0x708   :  { %5235 = dma.vmem_to_hbm [thread:$0]  %s5230_s29, 4096, %s10388_s6, [#allocation4], %s7979_s1, %s7979_s1, %s7980_s21  }
 0x709   :  { %7973 = dma.done.wait [#allocation4], 4096  }
 0x70a   :  { %7974 = vsyncadd [#allocation4], 4294963200 }
 0x70b   :  { %5239 = vsyncpa [#allocation3], 1 }
 0x70c   :  { %5240 = vsyncpa [#allocation6], 1 }
 0x70d   :  { %5241 = vsyncpa [#allocation9], 1 }
 0x70e   :  { %5242 = vsyncpa [#allocation4], 1 }

</bundles_post_ra>
